<compile_context>
chip_gen: v7x
topology: tpu7x:2x2x1
jax: 0.10.0
libtpu: 0.0.40
codegen_flags: <defaults>
</compile_context>

<pallas_src>
import functools

import jax
import jax.numpy as jnp
from jax import lax
from jax.experimental import pallas as pl
from jax.experimental.pallas import tpu as pltpu

VMEM_SPEC = pl.BlockSpec(memory_space=pltpu.MemorySpace.VMEM)
NEG_BIG = -1e30        # Python float: jnp scalars captured by the kernel are illegal
LEAKY_SLOPE = 0.2
BN_EPS = 1e-5


# ------------------------------ packing helpers ----------------------------- #

class ColPacker:
    """Concatenate [r_i, c_i] pieces along lanes into one [rows, sum(c_i)] slab."""

    def __init__(self, rows, dtype):
        self.rows, self.dtype = rows, dtype
        self.pieces, self.layout, self.off = [], {}, 0

    def add(self, name, a):
        a = jnp.asarray(a, self.dtype)
        r, c = a.shape
        self.pieces.append(jnp.pad(a, ((0, self.rows - r), (0, 0))))
        self.layout[name] = (r, self.off, c)          # (rows, col_off, cols)
        self.off += c

    def finish(self):
        return jnp.concatenate(self.pieces, axis=1), self.layout


class RowPacker:
    """Stack [r_i, c_i] pieces along sublanes into one [sum(r_i), cols] slab."""

    def __init__(self, cols, dtype):
        self.cols, self.dtype = cols, dtype
        self.pieces, self.layout, self.off = [], {}, 0

    def add(self, name, a):
        a = jnp.asarray(a, self.dtype)
        r, c = a.shape
        self.pieces.append(jnp.pad(a, ((0, 0), (0, self.cols - c))))
        self.layout[name] = (self.off, r, c)          # (row_off, rows, cols)
        self.off += r

    def finish(self):
        return jnp.concatenate(self.pieces, axis=0), self.layout


# ------------------------------ graph / constants ---------------------------- #

def dense_adj(edge_index, num_nodes):
    src, dst = edge_index[0], edge_index[1]
    adj = jnp.zeros((num_nodes, num_nodes), jnp.float32)
    return adj.at[dst, src].set(1.0)                  # adj[i, j] = 1 iff edge j -> i


def gat_adjacency(edge_index, num_nodes):
    # remove + re-add self loops == force diagonal to 1 (shared by GAT and GCN)
    return jnp.maximum(dense_adj(edge_index, num_nodes),
                       jnp.eye(num_nodes, dtype=jnp.float32))


def mean_pool_matrix(batch, num_graphs):
    onehot = (batch[None, :] == jnp.arange(num_graphs, dtype=batch.dtype)[:, None])
    onehot = onehot.astype(jnp.float32)
    counts = jnp.sum(onehot, axis=1, keepdims=True)
    return onehot / jnp.maximum(counts, 1.0)          # [B, N]


def att_wide(att, n):
    """[H, D] per-head attention vector -> [H*D, H*N] block matrix so that
    xh @ att_wide produces the lane-dense (head-major) logit layout in one pass."""
    h, d = att.shape
    blk = att[:, :, None, None] * jnp.eye(h, dtype=att.dtype)[:, None, :, None]
    blk = jnp.broadcast_to(blk, (h, d, h, n))
    return blk.reshape(h * d, h * n)


def ones_block(h, n):
    return jnp.repeat(jnp.eye(h, dtype=jnp.float32), n, axis=0)      # [H*N, H]


def rep_out(h, d):
    return jnp.repeat(jnp.eye(h, dtype=jnp.float32), d, axis=1)      # [H, H*D]


def block_mask(h, n, d):
    return jnp.kron(jnp.eye(h, dtype=jnp.float32),
                    jnp.ones((n, d), jnp.float32))                   # [H*N, H*D]


# ------------------------------ fused Pallas kernel -------------------------- #

def make_fused_kernel(nlay, vlay, walay, wb1lay, wb2lay, *, n, h1, h2):
    """Builds the fused forward kernel; all layout offsets are static Python ints."""
    f32, bf16 = jnp.float32, jnp.bfloat16

    def kernel(nodes_ref, vecs_ref, wa_ref, wb1_ref, wb2_ref, o_ref):
        def node(name):
            r, c0, c = nlay[name]
            return nodes_ref[0:r, c0:c0 + c]

        def vec(name):
            r0, r, c = vlay[name]
            return vecs_ref[r0:r0 + r, 0:c]

        def wgt(ref, lay, name):                       # bf16 weight slab slice
            r, c0, c = lay[name]
            return ref[0:r, c0:c0 + c]

        mrow = vec('mrow')                             # [1, n] row of 1/n (f32)

        def bn(x, gname, bname, relu_in=False, relu_out=False):
            # training-mode batch stats; reductions done on the MXU via ones-row
            # matmuls (centered variance keeps var >= 0).
            if relu_in:
                x = jnp.maximum(x, 0.0)
            mean = jnp.dot(mrow, x, preferred_element_type=f32)       # [1, F]
            c = x - mean
            var = jnp.dot(mrow, c * c, preferred_element_type=f32)    # [1, F]
            y = c * lax.rsqrt(var + BN_EPS) * vec(gname) + vec(bname)
            if relu_out:
                y = jnp.maximum(y, 0.0)
            return y

        def gat(x, heads, w_bf, dstw_bf, srcw_bf, jmask, nb, oblk_bf,
                rout_f32, blkm_bf, bias):
            # Lane-dense GAT: softmax tensor is [N, H*N]; aggregation is a single
            # block-diagonal matmul (no per-head loops, no lane concats of strips).
            xh = jnp.dot(x.astype(bf16), w_bf, preferred_element_type=f32)   # [n, H*D]
            xh_bf = xh.astype(bf16)
            dst = jnp.dot(xh_bf, dstw_bf, preferred_element_type=f32)        # [n, H*N]
            src_scat = jnp.dot(xh_bf, srcw_bf, preferred_element_type=f32) * jmask
            # column-sum of src_scat (one nonzero per column) -> src logit row
            src_row = jnp.dot(mrow, src_scat, preferred_element_type=f32) * float(n)
            e = dst + src_row                                                 # [n, H*N]
            e = jnp.where(e >= 0.0, e, LEAKY_SLOPE * e) + nb                  # leaky + mask
            m = jnp.max(e, axis=-1, keepdims=True)                            # row max
            p = jnp.exp(e - m)
            p_bf = p.astype(bf16)
            denom = jnp.dot(p_bf, oblk_bf, preferred_element_type=f32)        # [n, H]
            inv = 1.0 / denom
            xbd = jnp.concatenate([xh_bf] * heads, axis=0) * blkm_bf          # [H*N, H*D]
            unnorm = jnp.dot(p_bf, xbd, preferred_element_type=f32)           # [n, H*D]
            scale = jnp.dot(inv, rout_f32, preferred_element_type=f32)        # [n, H*D]
            return unnorm * scale + bias

        x = node('x')                                  # [n, in_pad]
        adj = node('adj')                              # [n, n]
        dinv = node('dinv')                            # [n, 1]

        # ------------------------------ GAT block 1 ------------------------- #
        h = gat(x, h1,
                wgt(wa_ref, walay, 'w1'),
                wgt(wb1_ref, wb1lay, 'dstw1'), wgt(wb1_ref, wb1lay, 'srcw1'),
                node('jmask1'), node('nb1'),
                wgt(wb1_ref, wb1lay, 'oblk1'),
                wgt(wb1_ref, wb1lay, 'rout1').astype(f32),
                wgt(wb1_ref, wb1lay, 'blkm1'),
                vec('g1_bias'))                                            # [n, 192]
        h = bn(h, 'g1_bn1g', 'g1_bn1b', relu_out=True)
        h = jnp.dot(h.astype(bf16), wgt(wb1_ref, wb1lay, 'lin1'),
                    preferred_element_type=f32) + vec('g1_linb')
        h = bn(h, 'g1_bn2g', 'g1_bn2b', relu_out=True)                     # [n, 16]

        # -------------------------------- GCN ------------------------------- #
        xw = jnp.dot(h.astype(bf16), wgt(wa_ref, walay, 'gcn_w'),
                     preferred_element_type=f32)                            # [n, 32]
        agg = jnp.dot(adj.astype(bf16), (xw * dinv).astype(bf16),
                      preferred_element_type=f32) * dinv + vec('gcn_b')
        hbn = bn(agg, 'gcn_bng', 'gcn_bnb', relu_in=True)
        res = jnp.dot(h.astype(bf16), wgt(wa_ref, walay, 'gcn_rw'),
                      preferred_element_type=f32) + vec('gcn_rb')
        h = hbn + res                                                       # [n, 32]

        # ------------------------------ GAT block 2 ------------------------- #
        h = gat(h, h2,
                wgt(wa_ref, walay, 'w2'),
                wgt(wb2_ref, wb2lay, 'dstw2'), wgt(wb2_ref, wb2lay, 'srcw2'),
                node('jmask2'), node('nb2'),
                wgt(wb2_ref, wb2lay, 'oblk2'),
                wgt(wb2_ref, wb2lay, 'rout2').astype(f32),
                wgt(wb2_ref, wb2lay, 'blkm2'),
                vec('g2_bias'))                                             # [n, 192]
        h = bn(h, 'g2_bn1g', 'g2_bn1b', relu_out=True)
        h = jnp.dot(h.astype(bf16), wgt(wb2_ref, wb2lay, 'lin2'),
                    preferred_element_type=f32) + vec('g2_linb')
        h = bn(h, 'g2_bn2g', 'g2_bn2b', relu_out=True)                      # [n, 64]

        # -------------------- pool + dropout(identity) + fc ----------------- #
        hg = jnp.dot(vec('pool'), h, preferred_element_type=f32)            # [B, 64]
        # Dropout(0.3): identity at inference.  # TODO(synk): training-mode dropout RNG
        o_ref[...] = (jnp.dot(hg.astype(bf16), wgt(wb2_ref, wb2lay, 'fc_w'),
                              preferred_element_type=f32) + vec('fc_b'))

    return kernel


# ------------------------------ parameters ----------------------------------- #

def init_params(key, in_feats=14, num_heads=12, num_class=10):
    keys = iter(jax.random.split(key, 32))

    def glorot(shape):
        lim = (6.0 / (shape[0] + shape[1])) ** 0.5
        return jax.random.uniform(next(keys), shape, jnp.float32, -lim, lim)

    def small(shape):
        return 0.1 * jax.random.normal(next(keys), shape, jnp.float32)

    def gat_params(in_f, out_f, heads):
        hd = heads * out_f
        return dict(
            w=glorot((in_f, hd)),
            att_src=small((heads, out_f)),
            att_dst=small((heads, out_f)),
            bias=jnp.zeros((1, hd), jnp.float32),
            bn1_g=jnp.ones((1, hd), jnp.float32) + small((1, hd)),
            bn1_b=small((1, hd)),
            lin_w=glorot((hd, out_f)),
            lin_b=small((1, out_f)),
            bn2_g=jnp.ones((1, out_f), jnp.float32) + small((1, out_f)),
            bn2_b=small((1, out_f)),
        )

    def gcn_params(in_f, out_f):
        return dict(
            w=glorot((in_f, out_f)),
            b=small((1, out_f)),
            bn_g=jnp.ones((1, out_f), jnp.float32) + small((1, out_f)),
            bn_b=small((1, out_f)),
            res_w=glorot((in_f, out_f)),
            res_b=small((1, out_f)),
        )

    return dict(
        gat1=gat_params(in_feats, 16, num_heads),        # GATConv(14, 16, heads=12)
        gcn1=gcn_params(16, 32),                          # GCNConv(16, 32)
        gat2=gat_params(32, 64, num_heads // 4),          # GATConv(32, 64, heads=3)
        fc_w=glorot((64, num_class)),
        fc_b=small((1, num_class)),
    )


# ------------------------------ forward --------------------------------------- #

def net_forward(params, x, edge_index, edge_attr, batch, *, num_graphs,
                num_heads, num_class):
    del edge_attr                    # GATConv has edge_dim=None -> edge_attr unused
    n = x.shape[0]
    h1, d1 = num_heads, 16
    h2, d2 = num_heads // 4, 64
    g1, gc, g2 = params['gat1'], params['gcn1'], params['gat2']

    adj = gat_adjacency(edge_index, n)               # shared A + I (self loops)
    pool = mean_pool_matrix(batch, num_graphs)       # [B, N]
    deg = jnp.sum(adj, axis=1, keepdims=True)
    dinv = jnp.where(deg > 0.0, lax.rsqrt(deg), 0.0)

    in_pad = -(-x.shape[1] // 8) * 8                 # sublane-friendly contraction dim

    # ---- node slab: everything shaped [N, *] (one DMA, f32) ---- #
    npk = ColPacker(rows=n, dtype=jnp.float32)
    npk.add('x', jnp.pad(x, ((0, 0), (0, in_pad - x.shape[1]))))
    npk.add('adj', adj)
    npk.add('dinv', dinv)
    npk.add('nb1', jnp.tile((1.0 - adj) * NEG_BIG, (1, h1)))
    npk.add('jmask1', jnp.tile(jnp.eye(n, dtype=jnp.float32), (1, h1)))
    npk.add('nb2', jnp.tile((1.0 - adj) * NEG_BIG, (1, h2)))
    npk.add('jmask2', jnp.tile(jnp.eye(n, dtype=jnp.float32), (1, h2)))
    nodes, nlay = npk.finish()

    # ---- vector slab: every [1, F] bias / BN / pool row (one DMA, f32) ---- #
    vp = RowPacker(cols=max(h1 * d1, h2 * d2), dtype=jnp.float32)
    vp.add('mrow', jnp.full((1, n), 1.0 / n, jnp.float32))
    vp.add('pool', pool)
    vp.add('g1_bias', g1['bias']);  vp.add('g1_bn1g', g1['bn1_g'])
    vp.add('g1_bn1b', g1['bn1_b']); vp.add('g1_linb', g1['lin_b'])
    vp.add('g1_bn2g', g1['bn2_g']); vp.add('g1_bn2b', g1['bn2_b'])
    vp.add('gcn_b', gc['b']);       vp.add('gcn_bng', gc['bn_g'])
    vp.add('gcn_bnb', gc['bn_b']);  vp.add('gcn_rb', gc['res_b'])
    vp.add('g2_bias', g2['bias']);  vp.add('g2_bn1g', g2['bn1_g'])
    vp.add('g2_bn1b', g2['bn1_b']); vp.add('g2_linb', g2['lin_b'])
    vp.add('g2_bn2g', g2['bn2_g']); vp.add('g2_bn2b', g2['bn2_b'])
    vp.add('fc_b', params['fc_b'])
    vecs, vlay = vp.finish()

    # ---- bf16 weight slabs (MXU operands, f32 accumulation in-kernel) ---- #
    wap = ColPacker(rows=max(in_pad, g2['w'].shape[0]), dtype=jnp.bfloat16)
    wap.add('w1', jnp.pad(g1['w'], ((0, in_pad - g1['w'].shape[0]), (0, 0))))
    wap.add('gcn_w', gc['w'])
    wap.add('gcn_rw', gc['res_w'])
    wap.add('w2', g2['w'])
    wa, walay = wap.finish()

    wb1p = ColPacker(rows=h1 * max(d1, n), dtype=jnp.bfloat16)
    wb1p.add('dstw1', att_wide(g1['att_dst'], n))
    wb1p.add('srcw1', att_wide(g1['att_src'], n))
    wb1p.add('lin1', g1['lin_w'])
    wb1p.add('oblk1', ones_block(h1, n))
    wb1p.add('blkm1', block_mask(h1, n, d1))
    wb1p.add('rout1', rep_out(h1, d1))
    wb1, wb1lay = wb1p.finish()

    wb2p = ColPacker(rows=h2 * d2, dtype=jnp.bfloat16)
    wb2p.add('dstw2', att_wide(g2['att_dst'], n))
    wb2p.add('srcw2', att_wide(g2['att_src'], n))
    wb2p.add('lin2', g2['lin_w'])
    wb2p.add('oblk2', ones_block(h2, n))
    wb2p.add('blkm2', block_mask(h2, n, d2))
    wb2p.add('rout2', rep_out(h2, d2))
    wb2p.add('fc_w', params['fc_w'])
    wb2, wb2lay = wb2p.finish()

    kernel = make_fused_kernel(nlay, vlay, walay, wb1lay, wb2lay,
                               n=n, h1=h1, h2=h2)
    # TODO(synk): for large multi-graph batches add a leading "parallel" grid axis
    # so v7x's two TensorCores split the batch; one tiny graph batch fits one call.
    return pl.pallas_call(
        kernel,
        out_shape=jax.ShapeDtypeStruct((num_graphs, num_class), jnp.float32),
        in_specs=[VMEM_SPEC] * 5,
        out_specs=VMEM_SPEC,
    )(nodes, vecs, wa, wb1, wb2)


# ------------------------------ main ------------------------------------------ #

if __name__ == "__main__":
    key = jax.random.PRNGKey(0)
    N, E, B = 16, 48, 2
    in_feats, num_heads, num_class = 14, 12, 10

    kx, ks, kd, ka, kp = jax.random.split(key, 5)
    x = jax.random.normal(kx, (N, in_feats), jnp.float32)
    src = jax.random.randint(ks, (E,), 0, N)
    dst = (src + 1 + jax.random.randint(kd, (E,), 0, N - 1)) % N   # no self loops
    edge_index = jnp.stack([src, dst]).astype(jnp.int32)
    edge_attr = jax.random.normal(ka, (E, 4), jnp.float32)         # unused by GATConv
    batch = jnp.concatenate([jnp.zeros(N // 2, jnp.int32),
                             jnp.ones(N - N // 2, jnp.int32)])

    params = init_params(kp, in_feats=in_feats, num_heads=num_heads,
                         num_class=num_class)

    fwd = jax.jit(functools.partial(net_forward, num_graphs=B,
                                    num_heads=num_heads, num_class=num_class))
    y = fwd(params, x, edge_index, edge_attr, batch)
    jax.block_until_ready(y)
    assert y.shape == (B, num_class) and y.dtype == jnp.float32
    assert bool(jnp.all(jnp.isfinite(y)))
    print("KERNEL_OK")
</pallas_src>

<mosaic_0001>
module attributes {stable_mosaic.version = 11 : i64} {
  func.func @kernel(%arg0: memref<16x513xf32, #tpu.memory_space<vmem>>, %arg1: memref<20x192xf32, #tpu.memory_space<vmem>>, %arg2: memref<32x448xbf16, #tpu.memory_space<vmem>>, %arg3: memref<192x796xbf16, #tpu.memory_space<vmem>>, %arg4: memref<192x557xbf16, #tpu.memory_space<vmem>>, %arg5: memref<2x10xf32, #tpu.memory_space<vmem>>) attributes {dimension_semantics = [], scalar_prefetch = 0 : i64, scratch_operands = 0 : i64, tpu.core_type = #tpu.core_type<tc>} {
    %c0 = arith.constant 0 : index
    %c0_0 = arith.constant 0 : index
    %0 = vector.load %arg1[%c0, %c0_0] : memref<20x192xf32, #tpu.memory_space<vmem>>, vector<1x16xf32>
    %c0_1 = arith.constant 0 : index
    %c0_2 = arith.constant 0 : index
    %1 = vector.load %arg0[%c0_1, %c0_2] : memref<16x513xf32, #tpu.memory_space<vmem>>, vector<16x16xf32>
    %c0_3 = arith.constant 0 : index
    %c16 = arith.constant 16 : index
    %2 = vector.load %arg0[%c0_3, %c16] : memref<16x513xf32, #tpu.memory_space<vmem>>, vector<16x16xf32>
    %c0_4 = arith.constant 0 : index
    %c32 = arith.constant 32 : index
    %3 = vector.load %arg0[%c0_4, %c32] : memref<16x513xf32, #tpu.memory_space<vmem>>, vector<16x1xf32>
    %c0_5 = arith.constant 0 : index
    %c0_6 = arith.constant 0 : index
    %4 = vector.load %arg2[%c0_5, %c0_6] : memref<32x448xbf16, #tpu.memory_space<vmem>>, vector<16x192xbf16>
    %c0_7 = arith.constant 0 : index
    %c0_8 = arith.constant 0 : index
    %5 = vector.load %arg3[%c0_7, %c0_8] : memref<192x796xbf16, #tpu.memory_space<vmem>>, vector<192x192xbf16>
    %c0_9 = arith.constant 0 : index
    %c192 = arith.constant 192 : index
    %6 = vector.load %arg3[%c0_9, %c192] : memref<192x796xbf16, #tpu.memory_space<vmem>>, vector<192x192xbf16>
    %c0_10 = arith.constant 0 : index
    %c225 = arith.constant 225 : index
    %7 = vector.load %arg0[%c0_10, %c225] : memref<16x513xf32, #tpu.memory_space<vmem>>, vector<16x192xf32>
    %c0_11 = arith.constant 0 : index
    %c33 = arith.constant 33 : index
    %8 = vector.load %arg0[%c0_11, %c33] : memref<16x513xf32, #tpu.memory_space<vmem>>, vector<16x192xf32>
    %c0_12 = arith.constant 0 : index
    %c400 = arith.constant 400 : index
    %9 = vector.load %arg3[%c0_12, %c400] : memref<192x796xbf16, #tpu.memory_space<vmem>>, vector<192x12xbf16>
    %c0_13 = arith.constant 0 : index
    %c604 = arith.constant 604 : index
    %10 = vector.load %arg3[%c0_13, %c604] : memref<192x796xbf16, #tpu.memory_space<vmem>>, vector<12x192xbf16>
    %11 = arith.extf %10 : vector<12x192xbf16> to vector<12x192xf32>
    %c0_14 = arith.constant 0 : index
    %c412 = arith.constant 412 : index
    %12 = vector.load %arg3[%c0_14, %c412] : memref<192x796xbf16, #tpu.memory_space<vmem>>, vector<192x192xbf16>
    %c3 = arith.constant 3 : index
    %c0_15 = arith.constant 0 : index
    %13 = vector.load %arg1[%c3, %c0_15] : memref<20x192xf32, #tpu.memory_space<vmem>>, vector<1x192xf32>
    %14 = arith.truncf %1 : vector<16x16xf32> to vector<16x16xbf16>
    %cst = arith.constant dense<0.000000e+00> : vector<16x192xf32>
    %15 = tpu.matmul %14, %4, %cst {dimension_numbers = #tpu.dot_dimension_numbers<[1], [0], [0], [1], [0, 0, 1, 1], [], []>} : vector<16x16xbf16>, vector<16x192xbf16>, vector<16x192xf32> -> vector<16x192xf32>
    %16 = arith.truncf %15 : vector<16x192xf32> to vector<16x192xbf16>
    %cst_16 = arith.constant dense<0.000000e+00> : vector<16x192xf32>
    %17 = tpu.matmul %16, %5, %cst_16 {dimension_numbers = #tpu.dot_dimension_numbers<[1], [0], [0], [1], [0, 0, 1, 1], [], []>} : vector<16x192xbf16>, vector<192x192xbf16>, vector<16x192xf32> -> vector<16x192xf32>
    %cst_17 = arith.constant dense<0.000000e+00> : vector<16x192xf32>
    %18 = tpu.matmul %16, %6, %cst_17 {dimension_numbers = #tpu.dot_dimension_numbers<[1], [0], [0], [1], [0, 0, 1, 1], [], []>} : vector<16x192xbf16>, vector<192x192xbf16>, vector<16x192xf32> -> vector<16x192xf32>
    %19 = arith.mulf %18, %7 : vector<16x192xf32>
    %cst_18 = arith.constant dense<0.000000e+00> : vector<1x192xf32>
    %20 = tpu.matmul %0, %19, %cst_18 {dimension_numbers = #tpu.dot_dimension_numbers<[1], [0], [0], [1], [0, 0, 1, 1], [], []>} : vector<1x16xf32>, vector<16x192xf32>, vector<1x192xf32> -> vector<1x192xf32>
    %cst_19 = arith.constant 1.600000e+01 : f32
    %21 = vector.broadcast %cst_19 : f32 to vector<1x192xf32>
    %22 = arith.mulf %20, %21 : vector<1x192xf32>
    %23 = vector.broadcast %22 : vector<1x192xf32> to vector<16x192xf32>
    %24 = arith.addf %17, %23 : vector<16x192xf32>
    %cst_20 = arith.constant 0.000000e+00 : f32
    %25 = vector.broadcast %cst_20 : f32 to vector<16x192xf32>
    %26 = arith.cmpf oge, %24, %25 : vector<16x192xf32>
    %cst_21 = arith.constant 2.000000e-01 : f32
    %27 = vector.broadcast %cst_21 : f32 to vector<16x192xf32>
    %28 = arith.mulf %27, %24 : vector<16x192xf32>
    %29 = arith.select %26, %24, %28 : vector<16x192xi1>, vector<16x192xf32>
    %30 = arith.addf %29, %8 : vector<16x192xf32>
    %cst_22 = arith.constant dense<0xFF800000> : vector<16xf32>
    %31 = vector.multi_reduction <maximumf>, %30, %cst_22 [1] : vector<16x192xf32> to vector<16xf32>
    %32 = vector.shape_cast %31 : vector<16xf32> to vector<16x1xf32>
    %33 = vector.broadcast %32 : vector<16x1xf32> to vector<16x192xf32>
    %34 = arith.subf %30, %33 : vector<16x192xf32>
    %35 = math.exp %34 : vector<16x192xf32>
    %36 = arith.truncf %35 : vector<16x192xf32> to vector<16x192xbf16>
    %cst_23 = arith.constant dense<0.000000e+00> : vector<16x12xf32>
    %37 = tpu.matmul %36, %9, %cst_23 {dimension_numbers = #tpu.dot_dimension_numbers<[1], [0], [0], [1], [0, 0, 1, 1], [], []>} : vector<16x192xbf16>, vector<192x12xbf16>, vector<16x12xf32> -> vector<16x12xf32>
    %cst_24 = arith.constant 1.000000e+00 : f32
    %38 = vector.broadcast %cst_24 : f32 to vector<16x12xf32>
    %39 = arith.divf %38, %37 : vector<16x12xf32>
    %40 = tpu.concatenate %16, %16, %16, %16, %16, %16, %16, %16, %16, %16, %16, %16 in 0 : vector<16x192xbf16>, vector<16x192xbf16>, vector<16x192xbf16>, vector<16x192xbf16>, vector<16x192xbf16>, vector<16x192xbf16>, vector<16x192xbf16>, vector<16x192xbf16>, vector<16x192xbf16>, vector<16x192xbf16>, vector<16x192xbf16>, vector<16x192xbf16> -> vector<192x192xbf16>
    %41 = arith.mulf %40, %12 : vector<192x192xbf16>
    %cst_25 = arith.constant dense<0.000000e+00> : vector<16x192xf32>
    %42 = tpu.matmul %36, %41, %cst_25 {dimension_numbers = #tpu.dot_dimension_numbers<[1], [0], [0], [1], [0, 0, 1, 1], [], []>} : vector<16x192xbf16>, vector<192x192xbf16>, vector<16x192xf32> -> vector<16x192xf32>
    %cst_26 = arith.constant dense<0.000000e+00> : vector<16x192xf32>
    %43 = tpu.matmul %39, %11, %cst_26 {dimension_numbers = #tpu.dot_dimension_numbers<[1], [0], [0], [1], [0, 0, 1, 1], [], []>} : vector<16x12xf32>, vector<12x192xf32>, vector<16x192xf32> -> vector<16x192xf32>
    %44 = arith.mulf %42, %43 : vector<16x192xf32>
    %45 = vector.broadcast %13 : vector<1x192xf32> to vector<16x192xf32>
    %46 = arith.addf %44, %45 : vector<16x192xf32>
    %cst_27 = arith.constant dense<0.000000e+00> : vector<1x192xf32>
    %47 = tpu.matmul %0, %46, %cst_27 {dimension_numbers = #tpu.dot_dimension_numbers<[1], [0], [0], [1], [0, 0, 1, 1], [], []>} : vector<1x16xf32>, vector<16x192xf32>, vector<1x192xf32> -> vector<1x192xf32>
    %48 = vector.broadcast %47 : vector<1x192xf32> to vector<16x192xf32>
    %49 = arith.subf %46, %48 : vector<16x192xf32>
    %50 = arith.mulf %49, %49 : vector<16x192xf32>
    %cst_28 = arith.constant dense<0.000000e+00> : vector<1x192xf32>
    %51 = tpu.matmul %0, %50, %cst_28 {dimension_numbers = #tpu.dot_dimension_numbers<[1], [0], [0], [1], [0, 0, 1, 1], [], []>} : vector<1x16xf32>, vector<16x192xf32>, vector<1x192xf32> -> vector<1x192xf32>
    %cst_29 = arith.constant 9.99999974E-6 : f32
    %52 = vector.broadcast %cst_29 : f32 to vector<1x192xf32>
    %53 = arith.addf %51, %52 : vector<1x192xf32>
    %54 = math.rsqrt %53 : vector<1x192xf32>
    %55 = vector.broadcast %54 : vector<1x192xf32> to vector<16x192xf32>
    %56 = arith.mulf %49, %55 : vector<16x192xf32>
    %c4 = arith.constant 4 : index
    %c0_30 = arith.constant 0 : index
    %57 = vector.load %arg1[%c4, %c0_30] : memref<20x192xf32, #tpu.memory_space<vmem>>, vector<1x192xf32>
    %58 = vector.broadcast %57 : vector<1x192xf32> to vector<16x192xf32>
    %59 = arith.mulf %56, %58 : vector<16x192xf32>
    %c5 = arith.constant 5 : index
    %c0_31 = arith.constant 0 : index
    %60 = vector.load %arg1[%c5, %c0_31] : memref<20x192xf32, #tpu.memory_space<vmem>>, vector<1x192xf32>
    %61 = vector.broadcast %60 : vector<1x192xf32> to vector<16x192xf32>
    %62 = arith.addf %59, %61 : vector<16x192xf32>
    %cst_32 = arith.constant 0.000000e+00 : f32
    %63 = vector.broadcast %cst_32 : f32 to vector<16x192xf32>
    %64 = arith.maximumf %62, %63 : vector<16x192xf32>
    %65 = arith.truncf %64 : vector<16x192xf32> to vector<16x192xbf16>
    %c0_33 = arith.constant 0 : index
    %c384 = arith.constant 384 : index
    %66 = vector.load %arg3[%c0_33, %c384] : memref<192x796xbf16, #tpu.memory_space<vmem>>, vector<192x16xbf16>
    %cst_34 = arith.constant dense<0.000000e+00> : vector<16x16xf32>
    %67 = tpu.matmul %65, %66, %cst_34 {dimension_numbers = #tpu.dot_dimension_numbers<[1], [0], [0], [1], [0, 0, 1, 1], [], []>} : vector<16x192xbf16>, vector<192x16xbf16>, vector<16x16xf32> -> vector<16x16xf32>
    %c6 = arith.constant 6 : index
    %c0_35 = arith.constant 0 : index
    %68 = vector.load %arg1[%c6, %c0_35] : memref<20x192xf32, #tpu.memory_space<vmem>>, vector<1x16xf32>
    %69 = vector.broadcast %68 : vector<1x16xf32> to vector<16x16xf32>
    %70 = arith.addf %67, %69 : vector<16x16xf32>
    %cst_36 = arith.constant dense<0.000000e+00> : vector<1x16xf32>
    %71 = tpu.matmul %0, %70, %cst_36 {dimension_numbers = #tpu.dot_dimension_numbers<[1], [0], [0], [1], [0, 0, 1, 1], [], []>} : vector<1x16xf32>, vector<16x16xf32>, vector<1x16xf32> -> vector<1x16xf32>
    %72 = vector.broadcast %71 : vector<1x16xf32> to vector<16x16xf32>
    %73 = arith.subf %70, %72 : vector<16x16xf32>
    %74 = arith.mulf %73, %73 : vector<16x16xf32>
    %cst_37 = arith.constant dense<0.000000e+00> : vector<1x16xf32>
    %75 = tpu.matmul %0, %74, %cst_37 {dimension_numbers = #tpu.dot_dimension_numbers<[1], [0], [0], [1], [0, 0, 1, 1], [], []>} : vector<1x16xf32>, vector<16x16xf32>, vector<1x16xf32> -> vector<1x16xf32>
    %cst_38 = arith.constant 9.99999974E-6 : f32
    %76 = vector.broadcast %cst_38 : f32 to vector<1x16xf32>
    %77 = arith.addf %75, %76 : vector<1x16xf32>
    %78 = math.rsqrt %77 : vector<1x16xf32>
    %79 = vector.broadcast %78 : vector<1x16xf32> to vector<16x16xf32>
    %80 = arith.mulf %73, %79 : vector<16x16xf32>
    %c7 = arith.constant 7 : index
    %c0_39 = arith.constant 0 : index
    %81 = vector.load %arg1[%c7, %c0_39] : memref<20x192xf32, #tpu.memory_space<vmem>>, vector<1x16xf32>
    %82 = vector.broadcast %81 : vector<1x16xf32> to vector<16x16xf32>
    %83 = arith.mulf %80, %82 : vector<16x16xf32>
    %c8 = arith.constant 8 : index
    %c0_40 = arith.constant 0 : index
    %84 = vector.load %arg1[%c8, %c0_40] : memref<20x192xf32, #tpu.memory_space<vmem>>, vector<1x16xf32>
    %85 = vector.broadcast %84 : vector<1x16xf32> to vector<16x16xf32>
    %86 = arith.addf %83, %85 : vector<16x16xf32>
    %cst_41 = arith.constant 0.000000e+00 : f32
    %87 = vector.broadcast %cst_41 : f32 to vector<16x16xf32>
    %88 = arith.maximumf %86, %87 : vector<16x16xf32>
    %89 = arith.truncf %88 : vector<16x16xf32> to vector<16x16xbf16>
    %c0_42 = arith.constant 0 : index
    %c192_43 = arith.constant 192 : index
    %90 = vector.load %arg2[%c0_42, %c192_43] : memref<32x448xbf16, #tpu.memory_space<vmem>>, vector<16x32xbf16>
    %cst_44 = arith.constant dense<0.000000e+00> : vector<16x32xf32>
    %91 = tpu.matmul %89, %90, %cst_44 {dimension_numbers = #tpu.dot_dimension_numbers<[1], [0], [0], [1], [0, 0, 1, 1], [], []>} : vector<16x16xbf16>, vector<16x32xbf16>, vector<16x32xf32> -> vector<16x32xf32>
    %92 = arith.truncf %2 : vector<16x16xf32> to vector<16x16xbf16>
    %93 = vector.broadcast %3 : vector<16x1xf32> to vector<16x32xf32>
    %94 = arith.mulf %91, %93 : vector<16x32xf32>
    %95 = arith.truncf %94 : vector<16x32xf32> to vector<16x32xbf16>
    %cst_45 = arith.constant dense<0.000000e+00> : vector<16x32xf32>
    %96 = tpu.matmul %92, %95, %cst_45 {dimension_numbers = #tpu.dot_dimension_numbers<[1], [0], [0], [1], [0, 0, 1, 1], [], []>} : vector<16x16xbf16>, vector<16x32xbf16>, vector<16x32xf32> -> vector<16x32xf32>
    %97 = vector.broadcast %3 : vector<16x1xf32> to vector<16x32xf32>
    %98 = arith.mulf %96, %97 : vector<16x32xf32>
    %c9 = arith.constant 9 : index
    %c0_46 = arith.constant 0 : index
    %99 = vector.load %arg1[%c9, %c0_46] : memref<20x192xf32, #tpu.memory_space<vmem>>, vector<1x32xf32>
    %100 = vector.broadcast %99 : vector<1x32xf32> to vector<16x32xf32>
    %101 = arith.addf %98, %100 : vector<16x32xf32>
    %cst_47 = arith.constant 0.000000e+00 : f32
    %102 = vector.broadcast %cst_47 : f32 to vector<16x32xf32>
    %103 = arith.maximumf %101, %102 : vector<16x32xf32>
    %cst_48 = arith.constant dense<0.000000e+00> : vector<1x32xf32>
    %104 = tpu.matmul %0, %103, %cst_48 {dimension_numbers = #tpu.dot_dimension_numbers<[1], [0], [0], [1], [0, 0, 1, 1], [], []>} : vector<1x16xf32>, vector<16x32xf32>, vector<1x32xf32> -> vector<1x32xf32>
    %105 = vector.broadcast %104 : vector<1x32xf32> to vector<16x32xf32>
    %106 = arith.subf %103, %105 : vector<16x32xf32>
    %107 = arith.mulf %106, %106 : vector<16x32xf32>
    %cst_49 = arith.constant dense<0.000000e+00> : vector<1x32xf32>
    %108 = tpu.matmul %0, %107, %cst_49 {dimension_numbers = #tpu.dot_dimension_numbers<[1], [0], [0], [1], [0, 0, 1, 1], [], []>} : vector<1x16xf32>, vector<16x32xf32>, vector<1x32xf32> -> vector<1x32xf32>
    %cst_50 = arith.constant 9.99999974E-6 : f32
    %109 = vector.broadcast %cst_50 : f32 to vector<1x32xf32>
    %110 = arith.addf %108, %109 : vector<1x32xf32>
    %111 = math.rsqrt %110 : vector<1x32xf32>
    %112 = vector.broadcast %111 : vector<1x32xf32> to vector<16x32xf32>
    %113 = arith.mulf %106, %112 : vector<16x32xf32>
    %c10 = arith.constant 10 : index
    %c0_51 = arith.constant 0 : index
    %114 = vector.load %arg1[%c10, %c0_51] : memref<20x192xf32, #tpu.memory_space<vmem>>, vector<1x32xf32>
    %115 = vector.broadcast %114 : vector<1x32xf32> to vector<16x32xf32>
    %116 = arith.mulf %113, %115 : vector<16x32xf32>
    %c11 = arith.constant 11 : index
    %c0_52 = arith.constant 0 : index
    %117 = vector.load %arg1[%c11, %c0_52] : memref<20x192xf32, #tpu.memory_space<vmem>>, vector<1x32xf32>
    %118 = vector.broadcast %117 : vector<1x32xf32> to vector<16x32xf32>
    %119 = arith.addf %116, %118 : vector<16x32xf32>
    %120 = arith.truncf %88 : vector<16x16xf32> to vector<16x16xbf16>
    %c0_53 = arith.constant 0 : index
    %c224 = arith.constant 224 : index
    %121 = vector.load %arg2[%c0_53, %c224] : memref<32x448xbf16, #tpu.memory_space<vmem>>, vector<16x32xbf16>
    %cst_54 = arith.constant dense<0.000000e+00> : vector<16x32xf32>
    %122 = tpu.matmul %120, %121, %cst_54 {dimension_numbers = #tpu.dot_dimension_numbers<[1], [0], [0], [1], [0, 0, 1, 1], [], []>} : vector<16x16xbf16>, vector<16x32xbf16>, vector<16x32xf32> -> vector<16x32xf32>
    %c12 = arith.constant 12 : index
    %c0_55 = arith.constant 0 : index
    %123 = vector.load %arg1[%c12, %c0_55] : memref<20x192xf32, #tpu.memory_space<vmem>>, vector<1x32xf32>
    %124 = vector.broadcast %123 : vector<1x32xf32> to vector<16x32xf32>
    %125 = arith.addf %122, %124 : vector<16x32xf32>
    %126 = arith.addf %119, %125 : vector<16x32xf32>
    %c0_56 = arith.constant 0 : index
    %c256 = arith.constant 256 : index
    %127 = vector.load %arg2[%c0_56, %c256] : memref<32x448xbf16, #tpu.memory_space<vmem>>, vector<32x192xbf16>
    %c0_57 = arith.constant 0 : index
    %c0_58 = arith.constant 0 : index
    %128 = vector.load %arg4[%c0_57, %c0_58] : memref<192x557xbf16, #tpu.memory_space<vmem>>, vector<192x48xbf16>
    %c0_59 = arith.constant 0 : index
    %c48 = arith.constant 48 : index
    %129 = vector.load %arg4[%c0_59, %c48] : memref<192x557xbf16, #tpu.memory_space<vmem>>, vector<192x48xbf16>
    %c0_60 = arith.constant 0 : index
    %c465 = arith.constant 465 : index
    %130 = vector.load %arg0[%c0_60, %c465] : memref<16x513xf32, #tpu.memory_space<vmem>>, vector<16x48xf32>
    %c0_61 = arith.constant 0 : index
    %c417 = arith.constant 417 : index
    %131 = vector.load %arg0[%c0_61, %c417] : memref<16x513xf32, #tpu.memory_space<vmem>>, vector<16x48xf32>
    %c0_62 = arith.constant 0 : index
    %c160 = arith.constant 160 : index
    %132 = vector.load %arg4[%c0_62, %c160] : memref<192x557xbf16, #tpu.memory_space<vmem>>, vector<48x3xbf16>
    %c0_63 = arith.constant 0 : index
    %c355 = arith.constant 355 : index
    %133 = vector.load %arg4[%c0_63, %c355] : memref<192x557xbf16, #tpu.memory_space<vmem>>, vector<3x192xbf16>
    %134 = arith.extf %133 : vector<3x192xbf16> to vector<3x192xf32>
    %c0_64 = arith.constant 0 : index
    %c163 = arith.constant 163 : index
    %135 = vector.load %arg4[%c0_64, %c163] : memref<192x557xbf16, #tpu.memory_space<vmem>>, vector<48x192xbf16>
    %c13 = arith.constant 13 : index
    %c0_65 = arith.constant 0 : index
    %136 = vector.load %arg1[%c13, %c0_65] : memref<20x192xf32, #tpu.memory_space<vmem>>, vector<1x192xf32>
    %137 = arith.truncf %126 : vector<16x32xf32> to vector<16x32xbf16>
    %cst_66 = arith.constant dense<0.000000e+00> : vector<16x192xf32>
    %138 = tpu.matmul %137, %127, %cst_66 {dimension_numbers = #tpu.dot_dimension_numbers<[1], [0], [0], [1], [0, 0, 1, 1], [], []>} : vector<16x32xbf16>, vector<32x192xbf16>, vector<16x192xf32> -> vector<16x192xf32>
    %139 = arith.truncf %138 : vector<16x192xf32> to vector<16x192xbf16>
    %cst_67 = arith.constant dense<0.000000e+00> : vector<16x48xf32>
    %140 = tpu.matmul %139, %128, %cst_67 {dimension_numbers = #tpu.dot_dimension_numbers<[1], [0], [0], [1], [0, 0, 1, 1], [], []>} : vector<16x192xbf16>, vector<192x48xbf16>, vector<16x48xf32> -> vector<16x48xf32>
    %cst_68 = arith.constant dense<0.000000e+00> : vector<16x48xf32>
    %141 = tpu.matmul %139, %129, %cst_68 {dimension_numbers = #tpu.dot_dimension_numbers<[1], [0], [0], [1], [0, 0, 1, 1], [], []>} : vector<16x192xbf16>, vector<192x48xbf16>, vector<16x48xf32> -> vector<16x48xf32>
    %142 = arith.mulf %141, %130 : vector<16x48xf32>
    %cst_69 = arith.constant dense<0.000000e+00> : vector<1x48xf32>
    %143 = tpu.matmul %0, %142, %cst_69 {dimension_numbers = #tpu.dot_dimension_numbers<[1], [0], [0], [1], [0, 0, 1, 1], [], []>} : vector<1x16xf32>, vector<16x48xf32>, vector<1x48xf32> -> vector<1x48xf32>
    %cst_70 = arith.constant 1.600000e+01 : f32
    %144 = vector.broadcast %cst_70 : f32 to vector<1x48xf32>
    %145 = arith.mulf %143, %144 : vector<1x48xf32>
    %146 = vector.broadcast %145 : vector<1x48xf32> to vector<16x48xf32>
    %147 = arith.addf %140, %146 : vector<16x48xf32>
    %cst_71 = arith.constant 0.000000e+00 : f32
    %148 = vector.broadcast %cst_71 : f32 to vector<16x48xf32>
    %149 = arith.cmpf oge, %147, %148 : vector<16x48xf32>
    %cst_72 = arith.constant 2.000000e-01 : f32
    %150 = vector.broadcast %cst_72 : f32 to vector<16x48xf32>
    %151 = arith.mulf %150, %147 : vector<16x48xf32>
    %152 = arith.select %149, %147, %151 : vector<16x48xi1>, vector<16x48xf32>
    %153 = arith.addf %152, %131 : vector<16x48xf32>
    %cst_73 = arith.constant dense<0xFF800000> : vector<16xf32>
    %154 = vector.multi_reduction <maximumf>, %153, %cst_73 [1] : vector<16x48xf32> to vector<16xf32>
    %155 = vector.shape_cast %154 : vector<16xf32> to vector<16x1xf32>
    %156 = vector.broadcast %155 : vector<16x1xf32> to vector<16x48xf32>
    %157 = arith.subf %153, %156 : vector<16x48xf32>
    %158 = math.exp %157 : vector<16x48xf32>
    %159 = arith.truncf %158 : vector<16x48xf32> to vector<16x48xbf16>
    %cst_74 = arith.constant dense<0.000000e+00> : vector<16x3xf32>
    %160 = tpu.matmul %159, %132, %cst_74 {dimension_numbers = #tpu.dot_dimension_numbers<[1], [0], [0], [1], [0, 0, 1, 1], [], []>} : vector<16x48xbf16>, vector<48x3xbf16>, vector<16x3xf32> -> vector<16x3xf32>
    %cst_75 = arith.constant 1.000000e+00 : f32
    %161 = vector.broadcast %cst_75 : f32 to vector<16x3xf32>
    %162 = arith.divf %161, %160 : vector<16x3xf32>
    %163 = tpu.concatenate %139, %139, %139 in 0 : vector<16x192xbf16>, vector<16x192xbf16>, vector<16x192xbf16> -> vector<48x192xbf16>
    %164 = arith.mulf %163, %135 : vector<48x192xbf16>
    %cst_76 = arith.constant dense<0.000000e+00> : vector<16x192xf32>
    %165 = tpu.matmul %159, %164, %cst_76 {dimension_numbers = #tpu.dot_dimension_numbers<[1], [0], [0], [1], [0, 0, 1, 1], [], []>} : vector<16x48xbf16>, vector<48x192xbf16>, vector<16x192xf32> -> vector<16x192xf32>
    %cst_77 = arith.constant dense<0.000000e+00> : vector<16x192xf32>
    %166 = tpu.matmul %162, %134, %cst_77 {dimension_numbers = #tpu.dot_dimension_numbers<[1], [0], [0], [1], [0, 0, 1, 1], [], []>} : vector<16x3xf32>, vector<3x192xf32>, vector<16x192xf32> -> vector<16x192xf32>
    %167 = arith.mulf %165, %166 : vector<16x192xf32>
    %168 = vector.broadcast %136 : vector<1x192xf32> to vector<16x192xf32>
    %169 = arith.addf %167, %168 : vector<16x192xf32>
    %cst_78 = arith.constant dense<0.000000e+00> : vector<1x192xf32>
    %170 = tpu.matmul %0, %169, %cst_78 {dimension_numbers = #tpu.dot_dimension_numbers<[1], [0], [0], [1], [0, 0, 1, 1], [], []>} : vector<1x16xf32>, vector<16x192xf32>, vector<1x192xf32> -> vector<1x192xf32>
    %171 = vector.broadcast %170 : vector<1x192xf32> to vector<16x192xf32>
    %172 = arith.subf %169, %171 : vector<16x192xf32>
    %173 = arith.mulf %172, %172 : vector<16x192xf32>
    %cst_79 = arith.constant dense<0.000000e+00> : vector<1x192xf32>
    %174 = tpu.matmul %0, %173, %cst_79 {dimension_numbers = #tpu.dot_dimension_numbers<[1], [0], [0], [1], [0, 0, 1, 1], [], []>} : vector<1x16xf32>, vector<16x192xf32>, vector<1x192xf32> -> vector<1x192xf32>
    %cst_80 = arith.constant 9.99999974E-6 : f32
    %175 = vector.broadcast %cst_80 : f32 to vector<1x192xf32>
    %176 = arith.addf %174, %175 : vector<1x192xf32>
    %177 = math.rsqrt %176 : vector<1x192xf32>
    %178 = vector.broadcast %177 : vector<1x192xf32> to vector<16x192xf32>
    %179 = arith.mulf %172, %178 : vector<16x192xf32>
    %c14 = arith.constant 14 : index
    %c0_81 = arith.constant 0 : index
    %180 = vector.load %arg1[%c14, %c0_81] : memref<20x192xf32, #tpu.memory_space<vmem>>, vector<1x192xf32>
    %181 = vector.broadcast %180 : vector<1x192xf32> to vector<16x192xf32>
    %182 = arith.mulf %179, %181 : vector<16x192xf32>
    %c15 = arith.constant 15 : index
    %c0_82 = arith.constant 0 : index
    %183 = vector.load %arg1[%c15, %c0_82] : memref<20x192xf32, #tpu.memory_space<vmem>>, vector<1x192xf32>
    %184 = vector.broadcast %183 : vector<1x192xf32> to vector<16x192xf32>
    %185 = arith.addf %182, %184 : vector<16x192xf32>
    %cst_83 = arith.constant 0.000000e+00 : f32
    %186 = vector.broadcast %cst_83 : f32 to vector<16x192xf32>
    %187 = arith.maximumf %185, %186 : vector<16x192xf32>
    %188 = arith.truncf %187 : vector<16x192xf32> to vector<16x192xbf16>
    %c0_84 = arith.constant 0 : index
    %c96 = arith.constant 96 : index
    %189 = vector.load %arg4[%c0_84, %c96] : memref<192x557xbf16, #tpu.memory_space<vmem>>, vector<192x64xbf16>
    %cst_85 = arith.constant dense<0.000000e+00> : vector<16x64xf32>
    %190 = tpu.matmul %188, %189, %cst_85 {dimension_numbers = #tpu.dot_dimension_numbers<[1], [0], [0], [1], [0, 0, 1, 1], [], []>} : vector<16x192xbf16>, vector<192x64xbf16>, vector<16x64xf32> -> vector<16x64xf32>
    %c16_86 = arith.constant 16 : index
    %c0_87 = arith.constant 0 : index
    %191 = vector.load %arg1[%c16_86, %c0_87] : memref<20x192xf32, #tpu.memory_space<vmem>>, vector<1x64xf32>
    %192 = vector.broadcast %191 : vector<1x64xf32> to vector<16x64xf32>
    %193 = arith.addf %190, %192 : vector<16x64xf32>
    %cst_88 = arith.constant dense<0.000000e+00> : vector<1x64xf32>
    %194 = tpu.matmul %0, %193, %cst_88 {dimension_numbers = #tpu.dot_dimension_numbers<[1], [0], [0], [1], [0, 0, 1, 1], [], []>} : vector<1x16xf32>, vector<16x64xf32>, vector<1x64xf32> -> vector<1x64xf32>
    %195 = vector.broadcast %194 : vector<1x64xf32> to vector<16x64xf32>
    %196 = arith.subf %193, %195 : vector<16x64xf32>
    %197 = arith.mulf %196, %196 : vector<16x64xf32>
    %cst_89 = arith.constant dense<0.000000e+00> : vector<1x64xf32>
    %198 = tpu.matmul %0, %197, %cst_89 {dimension_numbers = #tpu.dot_dimension_numbers<[1], [0], [0], [1], [0, 0, 1, 1], [], []>} : vector<1x16xf32>, vector<16x64xf32>, vector<1x64xf32> -> vector<1x64xf32>
    %cst_90 = arith.constant 9.99999974E-6 : f32
    %199 = vector.broadcast %cst_90 : f32 to vector<1x64xf32>
    %200 = arith.addf %198, %199 : vector<1x64xf32>
    %201 = math.rsqrt %200 : vector<1x64xf32>
    %202 = vector.broadcast %201 : vector<1x64xf32> to vector<16x64xf32>
    %203 = arith.mulf %196, %202 : vector<16x64xf32>
    %c17 = arith.constant 17 : index
    %c0_91 = arith.constant 0 : index
    %204 = vector.load %arg1[%c17, %c0_91] : memref<20x192xf32, #tpu.memory_space<vmem>>, vector<1x64xf32>
    %205 = vector.broadcast %204 : vector<1x64xf32> to vector<16x64xf32>
    %206 = arith.mulf %203, %205 : vector<16x64xf32>
    %c18 = arith.constant 18 : index
    %c0_92 = arith.constant 0 : index
    %207 = vector.load %arg1[%c18, %c0_92] : memref<20x192xf32, #tpu.memory_space<vmem>>, vector<1x64xf32>
    %208 = vector.broadcast %207 : vector<1x64xf32> to vector<16x64xf32>
    %209 = arith.addf %206, %208 : vector<16x64xf32>
    %cst_93 = arith.constant 0.000000e+00 : f32
    %210 = vector.broadcast %cst_93 : f32 to vector<16x64xf32>
    %211 = arith.maximumf %209, %210 : vector<16x64xf32>
    %c1 = arith.constant 1 : index
    %c0_94 = arith.constant 0 : index
    %212 = vector.load %arg1[%c1, %c0_94] : memref<20x192xf32, #tpu.memory_space<vmem>>, vector<2x16xf32>
    %cst_95 = arith.constant dense<0.000000e+00> : vector<2x64xf32>
    %213 = tpu.matmul %212, %211, %cst_95 {dimension_numbers = #tpu.dot_dimension_numbers<[1], [0], [0], [1], [0, 0, 1, 1], [], []>} : vector<2x16xf32>, vector<16x64xf32>, vector<2x64xf32> -> vector<2x64xf32>
    %214 = arith.truncf %213 : vector<2x64xf32> to vector<2x64xbf16>
    %c0_96 = arith.constant 0 : index
    %c547 = arith.constant 547 : index
    %215 = vector.load %arg4[%c0_96, %c547] : memref<192x557xbf16, #tpu.memory_space<vmem>>, vector<64x10xbf16>
    %cst_97 = arith.constant dense<0.000000e+00> : vector<2x10xf32>
    %216 = tpu.matmul %214, %215, %cst_97 {dimension_numbers = #tpu.dot_dimension_numbers<[1], [0], [0], [1], [0, 0, 1, 1], [], []>} : vector<2x64xbf16>, vector<64x10xbf16>, vector<2x10xf32> -> vector<2x10xf32>
    %c19 = arith.constant 19 : index
    %c0_98 = arith.constant 0 : index
    %217 = vector.load %arg1[%c19, %c0_98] : memref<20x192xf32, #tpu.memory_space<vmem>>, vector<1x10xf32>
    %218 = vector.broadcast %217 : vector<1x10xf32> to vector<2x10xf32>
    %219 = arith.addf %216, %218 : vector<2x10xf32>
    %c0_99 = arith.constant 0 : index
    %c0_100 = arith.constant 0 : index
    %220 = vector.load %arg5[%c0_99, %c0_100] : memref<2x10xf32, #tpu.memory_space<vmem>>, vector<2x10xf32>
    tpu.vector_store %arg5[%c0_99, %c0_100], %219 {strides = array<i32>} : memref<2x10xf32, #tpu.memory_space<vmem>>, vector<2x10xf32>,
    return
  }
}

</mosaic_0001>

<bundles_post_ra>
// kernel: tile.34
= control target key start
LH: loop header
LB: loop body
LE: loop exit
PB: predicated region body
PF: predicated region fallthrough
CT: control target
= control target key end

     0   :  { %vm82_vm0 = vcmask 1047556   ;;  %vm84_vm1 = vcmask 130048   ;;  %s172_s9 = smov 16   ;;  %vm103_vm2 = vcmask 392448   ;;  %vm124_vm3 = vcmask 261248   ;;  %s257_s0 = inlined_call_operand.vmem [shape: f32[16,3,16], index: 0, kind: input, shape index: {}]   ;;  %s258_s1 = inlined_call_operand.vmem [shape: f32[16,48], index: 1, kind: output, shape index: {}]  }
   0x1   :  { %v159_v0 = vld [vmem:[%s257_s0 + $0x1c] sm:$0xf]  ;;  %v160_v1 = vld [vmem:[%s257_s0 + $0x18] sm:$0xf]  ;;  %v161_v2 = vld [vmem:[%s257_s0 + $0x14] sm:$0xf] }
   0x2   :  { %48 = vst [vmem:[#allocation0 + $0x38] sm:$0xf] %v159_v0  ;;  %53 = vst [vmem:[#allocation0 + $0x30] sm:$0xf] %v160_v1  ;;  %v162_v3 = vld [vmem:[%s257_s0 + $0x10] sm:$0xf] }
   0x3   :  { %58 = vst [vmem:[#allocation0 + $0x28] sm:$0xf] %v161_v2  ;;  %v163_v4 = vld [vmem:[%s257_s0 + $0xc] sm:$0xf]  ;;  %v164_v5 = vld [vmem:[%s257_s0 + $0x8] sm:$0xf] }
   0x4   :  { %63 = vst [vmem:[#allocation0 + $0x20] sm:$0xf] %v162_v3  ;;  %68 = vst [vmem:[#allocation0 + $0x18] sm:$0xf] %v163_v4  ;;  %v165_v6 = vld [vmem:[%s257_s0 + $0x4] sm:$0xf] }
   0x5   :  { %73 = vst [vmem:[#allocation0 + $0x10] sm:$0xf] %v164_v5  ;;  %v78_v7 = vld [vmem:[%s257_s0] sm:$0xf]  ;;  %77 = vst [vmem:[#allocation0 + $0x8] sm:$0xf] %v165_v6 }
   0x6   :  { %79 = vst [vmem:[#allocation0] sm:$0xf] %v78_v7  ;;  %v151_v8 = vld [vmem:[%s257_s0 + $0x3c] sm:$0xf]  ;;  %v152_v9 = vld [vmem:[%s257_s0 + $0x38] sm:$0xf] }
   0x7   :  { %8 = vst [vmem:[#allocation0 + $0x78] sm:$0xf] %v151_v8  ;;  %13 = vst [vmem:[#allocation0 + $0x70] sm:$0xf] %v152_v9  ;;  %v153_v10 = vld [vmem:[%s257_s0 + $0x34] sm:$0xf] }
   0x8   :  { %v154_v11 = vld [vmem:[%s257_s0 + $0x30] sm:$0xf]  ;;  %v155_v12 = vld [vmem:[%s257_s0 + $0x2c] sm:$0xf]  ;;  %18 = vst [vmem:[#allocation0 + $0x68] sm:$0xf] %v153_v10 }
   0x9   :  { %23 = vst [vmem:[#allocation0 + $0x60] sm:$0xf] %v154_v11  ;;  %28 = vst [vmem:[#allocation0 + $0x58] sm:$0xf] %v155_v12  ;;  %v156_v13 = vld [vmem:[%s257_s0 + $0x28] sm:$0xf] }
   0xa   :  { %v157_v14 = vld [vmem:[%s257_s0 + $0x24] sm:$0xf]  ;;  %v158_v15 = vld [vmem:[%s257_s0 + $0x20] sm:$0xf]  ;;  %33 = vst [vmem:[#allocation0 + $0x50] sm:$0xf] %v156_v13 }
   0xb   :  { %38 = vst [vmem:[#allocation0 + $0x48] sm:$0xf] %v157_v14  ;;  %43 = vst [vmem:[#allocation0 + $0x40] sm:$0xf] %v158_v15  ;;  %s171_s0 = smov 32  }
   0xc   :  { %v98_v16 = vld [vmem:[#allocation0 + $0x2] ss:$8 sm:$0xf0]   ;;  %v119_v17 = vld [vmem:[#allocation0 + $0x1] ss:$8 sm:$0xf0]  }
   0xd   :  { %v96_v18 = vld [vmem:[#allocation0 + $0x2] ss:$8 sm:$0xf]   ;;  %v117_v19 = vld [vmem:[#allocation0 + $0x1] ss:$8 sm:$0xf]  }
   0xe   :  { %v100_v20 = vsel %vm82_vm0, %v98_v16, %v96_v18  ;;  %v121_v21 = vsel %vm82_vm0, %v119_v17, %v117_v19  ;;  %v80_v22 = vld [vmem:[#allocation0] ss:$8 sm:$0xf]  }
   0xf   :  { %v81_v23 = vld [vmem:[#allocation0] ss:$8 sm:$0xf0]   ;;  %101 = vrot.lane.b32.xlu0 %v100_v20, %s171_s0  ;;  %122 = vrot.lane.b32.xlu1 %v121_v21, %s172_s9 }
  0x10   :  { %v108_v24 = vld [vmem:[#allocation0 + $0x42] ss:$8 sm:$0xf0]   ;;  %v129_v25 = vld [vmem:[#allocation0 + $0x41] ss:$8 sm:$0xf0]   ;;  %v83_v26 = vsel %vm82_vm0, %v81_v23, %v80_v22 }
  0x11   :  { %85 = vst.msk [vmem:[%s258_s1] sm:$0xff] %vm84_vm1, %v83_v26   ;;  %v89_v32 = vld [vmem:[#allocation0 + $0x40] ss:$8 sm:$0xf0]  }
  0x12   :  { %v106_v27 = vld [vmem:[#allocation0 + $0x42] ss:$8 sm:$0xf]   ;;  %v127_v28 = vld [vmem:[#allocation0 + $0x41] ss:$8 sm:$0xf]  }
  0x13   :  { %v110_v29 = vsel %vm82_vm0, %v108_v24, %v106_v27  ;;  %v131_v30 = vsel %vm82_vm0, %v129_v25, %v127_v28  ;;  %v87_v31 = vld [vmem:[#allocation0 + $0x40] ss:$8 sm:$0xf]  }
  0x14   :  { %v91_v33 = vsel %vm82_vm0, %v89_v32, %v87_v31  ;;  %111 = vrot.lane.b32.xlu0 %v110_v29, %s171_s0  ;;  %132 = vrot.lane.b32.xlu1 %v131_v30, %s172_s9 }
  0x15   :  { %166 = vst.msk [vmem:[%s258_s1 + $0x8] sm:$0xff] %vm84_vm1, %v91_v33  }
  0x81   :  { %v102_v34 = vpop.permute.xlu0 %101   ;;  %v123_v35 = vpop.permute.xlu1 %122  }
  0x82   :  { %104 = vst.msk [vmem:[%s258_s1] sm:$0xff] %vm103_vm2, %v102_v34  }
  0x83   :  { %125 = vst.msk [vmem:[%s258_s1] sm:$0xff] %vm124_vm3, %v123_v35  }
  0x86   :  { %v112_v36 = vpop.permute.xlu0 %111   ;;  %v133_v37 = vpop.permute.xlu1 %132  }
  0x87   :  { %167 = vst.msk [vmem:[%s258_s1 + $0x8] sm:$0xff] %vm103_vm2, %v112_v36  }
  0x88   :  { %168 = vst.msk [vmem:[%s258_s1 + $0x8] sm:$0xff] %vm124_vm3, %v133_v37  }

// kernel: tile.24
= control target key start
LH: loop header
LB: loop body
LE: loop exit
PB: predicated region body
PF: predicated region fallthrough
CT: control target
= control target key end

     0   :  { %vm65_vm0 = vcmask 1043458   ;;  %vm70_vm1 = vcmask 1045508   ;;  %vm75_vm2 = vcmask 1047558   ;;  %s105_s6 = smov 3  ;;  %s108_s7 = smov 12  ;;  %vm4_vm3 = vcmask 1047556   ;;  %s1114_s0 = inlined_call_operand.vmem [shape: f32[16,12,16], index: 0, kind: input, shape index: {}]   ;;  %s1115_s1 = inlined_call_operand.vmem [shape: f32[16,192], index: 1, kind: output, shape index: {}]  }
   0x1   :  { %v542_v0 = vld [vmem:[%s1114_s0 + $0x6] ss:$16 sm:%s105_s6]   ;;  %s113_s12 = smov 48  ;;  %s118_s13 = smov 192  ;;  %vm6_vm4 = vcmask 130048   ;;  %vm79_vm5 = vcmask 1048448  }
   0x2   :  { %v543_v1 = vld [vmem:[%s1114_s0 + $0x6] ss:$16 sm:%s108_s7]   ;;  %s60_s18 = smov 3  ;;  %s63_s21 = smov 12  ;;  %vm124_vm6 = vcmask 917248   ;;  %vm169_vm7 = vcmask 786048  }
   0x3   :  { %v111_v2 = vsel %vm65_vm0, %v543_v1, %v542_v0  ;;  %v544_v3 = vld [vmem:[%s1114_s0 + $0x6] ss:$16 sm:%s113_s12]   ;;  %v533_v6 = vld [vmem:[%s1114_s0 + $0x7] ss:$16 sm:%s60_s18]   ;;  %s68_s22 = smov 48  ;;  %s73_s27 = smov 192 }
   0x4   :  { %v545_v4 = vld [vmem:[%s1114_s0 + $0x6] ss:$16 sm:%s118_s13]   ;;  %v116_v5 = vsel %vm70_vm1, %v544_v3, %v111_v2  ;;  %v534_v8 = vld [vmem:[%s1114_s0 + $0x7] ss:$16 sm:%s63_s21]   ;;  %s633_s28 = smov 96   ;;  %s127_s2 = smov 3 }
   0x5   :  { %v121_v7 = vsel %vm75_vm2, %v545_v4, %v116_v5  ;;  %v535_v9 = vld [vmem:[%s1114_s0 + $0x7] ss:$16 sm:%s68_s22]   ;;  %v66_v10 = vsel %vm65_vm0, %v534_v8, %v533_v6  ;;  %s130_s3 = smov 12  ;;  %v546_v13 = vld [vmem:[%s1114_s0 + $0x86] ss:$16 sm:%s127_s2]   ;;  %s135_s8 = smov 48 }
   0x6   :  { %122 = vrot.lane.b32.xlu1 %v121_v7, %s633_s28  ;;  %v536_v11 = vld [vmem:[%s1114_s0 + $0x7] ss:$16 sm:%s73_s27]   ;;  %v71_v12 = vsel %vm70_vm1, %v535_v9, %v66_v10  ;;  %s140_s9 = smov 192  ;;  %s82_s14 = smov 3  ;;  %vm214_vm8 = vcmask 654848   ;;  %vm259_vm9 = vcmask 523648  }
   0x7   :  { %v547_v14 = vld [vmem:[%s1114_s0 + $0x86] ss:$16 sm:%s130_s3]   ;;  %v76_v15 = vsel %vm75_vm2, %v536_v11, %v71_v12  ;;  %s85_s15 = smov 12  ;;  %s634_s16 = smov 112   ;;  %v537_v20 = vld [vmem:[%s1114_s0 + $0x87] ss:$16 sm:%s82_s14]  }
   0x8   :  { %v133_v16 = vsel %vm65_vm0, %v547_v14, %v546_v13  ;;  %v548_v17 = vld [vmem:[%s1114_s0 + $0x86] ss:$16 sm:%s135_s8]   ;;  %77 = vrot.lane.b32.xlu0 %v76_v15, %s634_s16  ;;  %s90_s19 = smov 48  ;;  %s95_s20 = smov 192  ;;  %vm350_vm10 = vcmask 392448   ;;  %vm441_vm11 = vcmask 261248  }
   0x9   :  { %v549_v18 = vld [vmem:[%s1114_s0 + $0x86] ss:$16 sm:%s140_s9]   ;;  %v138_v19 = vsel %vm70_vm1, %v548_v17, %v133_v16  ;;  %v538_v22 = vld [vmem:[%s1114_s0 + $0x87] ss:$16 sm:%s85_s15]   ;;  %s172_s25 = smov 3  ;;  %s180_s29 = smov 48 }
   0xa   :  { %v143_v21 = vsel %vm75_vm2, %v549_v18, %v138_v19  ;;  %v539_v23 = vld [vmem:[%s1114_s0 + $0x87] ss:$16 sm:%s90_s19]   ;;  %v88_v24 = vsel %vm65_vm0, %v538_v22, %v537_v20  ;;  %v555_v27 = vld [vmem:[%s1114_s0 + $0x85] ss:$16 sm:%s172_s25]   ;;  %s185_s5 = smov 192  ;;  %s150_s6 = smov 3 }
   0xb   :  { %144 = vrot.lane.b32.xlu1 %v143_v21, %s633_s28  ;;  %v540_v25 = vld [vmem:[%s1114_s0 + $0x87] ss:$16 sm:%s95_s20]   ;;  %s175_s28 = smov 12  ;;  %v93_v26 = vsel %vm70_vm1, %v539_v23, %v88_v24  ;;  %s153_s11 = smov 12 }
   0xc   :  { %v556_v28 = vld [vmem:[%s1114_s0 + $0x85] ss:$16 sm:%s175_s28]   ;;  %v98_v29 = vsel %vm75_vm2, %v540_v25, %v93_v26  ;;  %s158_s12 = smov 48  ;;  %s163_s15 = smov 192 }
   0xd   :  { %v178_v30 = vsel %vm65_vm0, %v556_v28, %v555_v27  ;;  %v557_v31 = vld [vmem:[%s1114_s0 + $0x85] ss:$16 sm:%s180_s29]   ;;  %99 = vrot.lane.b32.xlu0 %v98_v29, %s634_s16  ;;  %s217_s20 = smov 3  ;;  %s220_s21 = smov 12 }
   0xe   :  { %v558_v32 = vld [vmem:[%s1114_s0 + $0x85] ss:$16 sm:%s185_s5]   ;;  %v183_v33 = vsel %vm70_vm1, %v557_v31, %v178_v30  ;;  %s635_s22 = smov 80   ;;  %s225_s25 = smov 48  ;;  %v564_v41 = vld [vmem:[%s1114_s0 + $0x84] ss:$16 sm:%s217_s20]  }
   0xf   :  { %v551_v34 = vld [vmem:[%s1114_s0 + $0x5] ss:$16 sm:%s150_s6]   ;;  %v188_v35 = vsel %vm75_vm2, %v558_v32, %v183_v33  ;;  %s230_s26 = smov 192  ;;  %v565_v42 = vld [vmem:[%s1114_s0 + $0x84] ss:$16 sm:%s220_s21]   ;;  %s195_s2 = smov 3 }
  0x10   :  { %v552_v36 = vld [vmem:[%s1114_s0 + $0x5] ss:$16 sm:%s153_s11]   ;;  %189 = vrot.lane.b32.xlu1 %v188_v35, %s635_s22  ;;  %s198_s3 = smov 12  ;;  %v223_v44 = vsel %vm65_vm0, %v565_v42, %v564_v41  ;;  %s203_s8 = smov 48 }
  0x11   :  { %v553_v37 = vld [vmem:[%s1114_s0 + $0x5] ss:$16 sm:%s158_s12]   ;;  %v156_v38 = vsel %vm65_vm0, %v552_v36, %v551_v34  ;;  %v566_v45 = vld [vmem:[%s1114_s0 + $0x84] ss:$16 sm:%s225_s25]   ;;  %s208_s9 = smov 192  ;;  %s262_s12 = smov 3 }
  0x12   :  { %v554_v39 = vld [vmem:[%s1114_s0 + $0x5] ss:$16 sm:%s163_s15]   ;;  %v161_v40 = vsel %vm70_vm1, %v553_v37, %v156_v38  ;;  %v567_v46 = vld [vmem:[%s1114_s0 + $0x84] ss:$16 sm:%s230_s26]   ;;  %v228_v47 = vsel %vm70_vm1, %v566_v45, %v223_v44  ;;  %s265_s17 = smov 12  ;;  %s270_s18 = smov 48 }
  0x13   :  { %v166_v43 = vsel %vm75_vm2, %v554_v39, %v161_v40  ;;  %v560_v48 = vld [vmem:[%s1114_s0 + $0x4] ss:$16 sm:%s195_s2]   ;;  %v233_v49 = vsel %vm75_vm2, %v567_v46, %v228_v47  ;;  %s636_s19 = smov 64   ;;  %s240_s23 = smov 3  ;;  %v573_v55 = vld [vmem:[%s1114_s0 + $0xb] ss:$16 sm:%s262_s12]  }
  0x14   :  { %167 = vrot.lane.b32.xlu0 %v166_v43, %s635_s22  ;;  %v561_v50 = vld [vmem:[%s1114_s0 + $0x4] ss:$16 sm:%s198_s3]   ;;  %234 = vrot.lane.b32.xlu1 %v233_v49, %s636_s19  ;;  %s275_s22 = smov 192  ;;  %s243_s28 = smov 12 }
  0x15   :  { %v562_v51 = vld [vmem:[%s1114_s0 + $0x4] ss:$16 sm:%s203_s8]   ;;  %v201_v52 = vsel %vm65_vm0, %v561_v50, %v560_v48  ;;  %v574_v56 = vld [vmem:[%s1114_s0 + $0xb] ss:$16 sm:%s265_s17]   ;;  %s248_s29 = smov 48  ;;  %s253_s5 = smov 192 }
  0x16   :  { %v563_v53 = vld [vmem:[%s1114_s0 + $0x4] ss:$16 sm:%s208_s9]   ;;  %v206_v54 = vsel %vm70_vm1, %v562_v51, %v201_v52  ;;  %v268_v58 = vsel %vm65_vm0, %v574_v56, %v573_v55  ;;  %v575_v59 = vld [vmem:[%s1114_s0 + $0xb] ss:$16 sm:%s270_s18]   ;;  %s308_s8 = smov 3  ;;  %s311_s9 = smov 12 }
  0x17   :  { %v211_v57 = vsel %vm75_vm2, %v563_v53, %v206_v54  ;;  %v576_v60 = vld [vmem:[%s1114_s0 + $0xb] ss:$16 sm:%s275_s22]   ;;  %v273_v61 = vsel %vm70_vm1, %v575_v59, %v268_v58  ;;  %v569_v62 = vld [vmem:[%s1114_s0 + $0x3] ss:$16 sm:%s240_s23]   ;;  %s316_s14 = smov 48  ;;  %s321_s15 = smov 192 }
  0x18   :  { %212 = vrot.lane.b32.xlu0 %v211_v57, %s636_s19  ;;  %v278_v63 = vsel %vm75_vm2, %v576_v60, %v273_v61  ;;  %v570_v0 = vld [vmem:[%s1114_s0 + $0x3] ss:$16 sm:%s243_s28]   ;;  %s637_s16 = smov 48   ;;  %s285_s19 = smov 3 }
  0x19   :  { %v571_v1 = vld [vmem:[%s1114_s0 + $0x3] ss:$16 sm:%s248_s29]   ;;  %279 = vrot.lane.b32.xlu1 %v278_v63, %s637_s16  ;;  %v246_v2 = vsel %vm65_vm0, %v570_v0, %v569_v62  ;;  %s288_s24 = smov 12  ;;  %s293_s25 = smov 48 }
  0x1a   :  { %v572_v3 = vld [vmem:[%s1114_s0 + $0x3] ss:$16 sm:%s253_s5]   ;;  %v251_v4 = vsel %vm70_vm1, %v571_v1, %v246_v2  ;;  %v583_v5 = vld [vmem:[%s1114_s0 + $0x8b] ss:$16 sm:%s308_s8]   ;;  %s298_s30 = smov 192  ;;  %s353_s4 = smov 3 }
  0x1b   :  { %v584_v6 = vld [vmem:[%s1114_s0 + $0x8b] ss:$16 sm:%s311_s9]   ;;  %v256_v7 = vsel %vm75_vm2, %v572_v3, %v251_v4  ;;  %v578_v12 = vld [vmem:[%s1114_s0 + $0x83] ss:$16 sm:%s285_s19]   ;;  %s356_s5 = smov 12  ;;  %s361_s10 = smov 48 }
  0x1c   :  { %v314_v8 = vsel %vm65_vm0, %v584_v6, %v583_v5  ;;  %v585_v9 = vld [vmem:[%s1114_s0 + $0x8b] ss:$16 sm:%s316_s14]   ;;  %257 = vrot.lane.b32.xlu0 %v256_v7, %s637_s16  ;;  %s366_s11 = smov 192  ;;  %s331_s14 = smov 3 }
  0x1d   :  { %v586_v10 = vld [vmem:[%s1114_s0 + $0x8b] ss:$16 sm:%s321_s15]   ;;  %v319_v11 = vsel %vm70_vm1, %v585_v9, %v314_v8  ;;  %v579_v14 = vld [vmem:[%s1114_s0 + $0x83] ss:$16 sm:%s288_s24]   ;;  %s334_s20 = smov 12  ;;  %s339_s21 = smov 48 }
  0x1e   :  { %v324_v13 = vsel %vm75_vm2, %v586_v10, %v319_v11  ;;  %v580_v15 = vld [vmem:[%s1114_s0 + $0x83] ss:$16 sm:%s293_s25]   ;;  %v291_v16 = vsel %vm65_vm0, %v579_v14, %v578_v12  ;;  %v592_v19 = vld [vmem:[%s1114_s0 + $0xa] ss:$16 sm:%s353_s4]   ;;  %s344_s26 = smov 192  ;;  %s399_s28 = smov 3 }
  0x1f   :  { %325 = vrot.lane.b32.xlu1 %v324_v13, %s637_s16  ;;  %v581_v17 = vld [vmem:[%s1114_s0 + $0x83] ss:$16 sm:%s298_s30]   ;;  %v296_v18 = vsel %vm70_vm1, %v580_v15, %v291_v16  ;;  %s402_s29 = smov 12  ;;  %s412_s6 = smov 192 }
  0x20   :  { %v593_v20 = vld [vmem:[%s1114_s0 + $0xa] ss:$16 sm:%s356_s5]   ;;  %v301_v21 = vsel %vm75_vm2, %v581_v17, %v296_v18  ;;  %v588_v26 = vld [vmem:[%s1114_s0 + $0x2] ss:$16 sm:%s331_s14]   ;;  %s407_s5 = smov 48  ;;  %s638_s7 = smov 32  }
  0x21   :  { %v359_v22 = vsel %vm65_vm0, %v593_v20, %v592_v19  ;;  %v594_v23 = vld [vmem:[%s1114_s0 + $0xa] ss:$16 sm:%s361_s10]   ;;  %302 = vrot.lane.b32.xlu0 %v301_v21, %s637_s16  ;;  %s376_s10 = smov 3  ;;  %s379_s15 = smov 12 }
  0x22   :  { %v595_v24 = vld [vmem:[%s1114_s0 + $0xa] ss:$16 sm:%s366_s11]   ;;  %v364_v25 = vsel %vm70_vm1, %v594_v23, %v359_v22  ;;  %v589_v28 = vld [vmem:[%s1114_s0 + $0x2] ss:$16 sm:%s334_s20]   ;;  %s384_s17 = smov 48  ;;  %s389_s22 = smov 192 }
  0x23   :  { %v369_v27 = vsel %vm75_vm2, %v595_v24, %v364_v25  ;;  %v590_v29 = vld [vmem:[%s1114_s0 + $0x2] ss:$16 sm:%s339_s21]   ;;  %v337_v30 = vsel %vm65_vm0, %v589_v28, %v588_v26  ;;  %v602_v33 = vld [vmem:[%s1114_s0 + $0x8a] ss:$16 sm:%s399_s28]   ;;  %s444_s25 = smov 3  ;;  %s452_s30 = smov 48 }
  0x24   :  { %370 = vrot.lane.b32.xlu1 %v369_v27, %s638_s7  ;;  %v591_v31 = vld [vmem:[%s1114_s0 + $0x2] ss:$16 sm:%s344_s26]   ;;  %v342_v32 = vsel %vm70_vm1, %v590_v29, %v337_v30  ;;  %s447_s26 = smov 12  ;;  %s457_s2 = smov 192 }
  0x25   :  { %v603_v34 = vld [vmem:[%s1114_s0 + $0x8a] ss:$16 sm:%s402_s29]   ;;  %v347_v35 = vsel %vm75_vm2, %v591_v31, %v342_v32  ;;  %v597_v40 = vld [vmem:[%s1114_s0 + $0x82] ss:$16 sm:%s376_s10]   ;;  %s425_s11 = smov 12  ;;  %s430_s12 = smov 48 }
  0x26   :  { %v405_v36 = vsel %vm65_vm0, %v603_v34, %v602_v33  ;;  %v604_v37 = vld [vmem:[%s1114_s0 + $0x8a] ss:$16 sm:%s407_s5]   ;;  %348 = vrot.lane.b32.xlu0 %v347_v35, %s638_s7  ;;  %s422_s5 = smov 3  ;;  %s435_s18 = smov 192 }
  0x27   :  { %v605_v38 = vld [vmem:[%s1114_s0 + $0x8a] ss:$16 sm:%s412_s6]   ;;  %v410_v39 = vsel %vm70_vm1, %v604_v37, %v405_v36  ;;  %v598_v42 = vld [vmem:[%s1114_s0 + $0x82] ss:$16 sm:%s379_s15]   ;;  %s490_s19 = smov 3  ;;  %s493_s21 = smov 12 }
  0x28   :  { %v415_v41 = vsel %vm75_vm2, %v605_v38, %v410_v39  ;;  %v599_v43 = vld [vmem:[%s1114_s0 + $0x82] ss:$16 sm:%s384_s17]   ;;  %v382_v44 = vsel %vm65_vm0, %v598_v42, %v597_v40  ;;  %v611_v47 = vld [vmem:[%s1114_s0 + $0x9] ss:$16 sm:%s444_s25]   ;;  %s498_s27 = smov 48  ;;  %s503_s28 = smov 192 }
  0x29   :  { %416 = vrot.lane.b32.xlu1 %v415_v41, %s638_s7  ;;  %v600_v45 = vld [vmem:[%s1114_s0 + $0x82] ss:$16 sm:%s389_s22]   ;;  %v387_v46 = vsel %vm70_vm1, %v599_v43, %v382_v44  ;;  %v521_v55 = vld [vmem:[%s1114_s0 + $0x80] ss:$8 sm:$0xf]   ;;  %s639_s29 = smov 16  }
  0x2a   :  { %v612_v48 = vld [vmem:[%s1114_s0 + $0x9] ss:$16 sm:%s447_s26]   ;;  %v392_v49 = vsel %vm75_vm2, %v600_v45, %v387_v46  ;;  %v607_v54 = vld [vmem:[%s1114_s0 + $0x1] ss:$16 sm:%s422_s5]   ;;  %s467_s3 = smov 3 }
  0x2b   :  { %v450_v50 = vsel %vm65_vm0, %v612_v48, %v611_v47  ;;  %v613_v51 = vld [vmem:[%s1114_s0 + $0x9] ss:$16 sm:%s452_s30]   ;;  %393 = vrot.lane.b32.xlu0 %v392_v49, %s638_s7  ;;  %v522_v61 = vld [vmem:[%s1114_s0 + $0x80] ss:$8 sm:$0xf0]  }
  0x2c   :  { %v614_v52 = vld [vmem:[%s1114_s0 + $0x9] ss:$16 sm:%s457_s2]   ;;  %v455_v53 = vsel %vm70_vm1, %v613_v51, %v450_v50  ;;  %v608_v57 = vld [vmem:[%s1114_s0 + $0x1] ss:$16 sm:%s425_s11]   ;;  %s470_s11 = smov 12  ;;  %v34_v1 = vsel %vm4_vm3, %v522_v61, %v521_v55 }
  0x2d   :  { %v460_v56 = vsel %vm75_vm2, %v614_v52, %v455_v53  ;;  %v609_v58 = vld [vmem:[%s1114_s0 + $0x1] ss:$16 sm:%s430_s12]   ;;  %v428_v59 = vsel %vm65_vm0, %v608_v57, %v607_v54  ;;  %v621_v63 = vld [vmem:[%s1114_s0 + $0x89] ss:$16 sm:%s490_s19]   ;;  %s475_s12 = smov 48 }
  0x2e   :  { %461 = vrot.lane.b32.xlu1 %v460_v56, %s639_s29  ;;  %v610_v60 = vld [vmem:[%s1114_s0 + $0x1] ss:$16 sm:%s435_s18]   ;;  %v433_v62 = vsel %vm70_vm1, %v609_v58, %v428_v59  ;;  %s480_s18 = smov 192  ;;  %523 = vst.msk [vmem:[%s1115_s1 + $0x10] ss:$8 sm:$0x3] %vm6_vm4, %v34_v1  }
  0x2f   :  { %v622_v0 = vld [vmem:[%s1114_s0 + $0x89] ss:$16 sm:%s493_s21]   ;;  %v438_v2 = vsel %vm75_vm2, %v610_v60, %v433_v62  ;;  %524 = vst.msk [vmem:[%s1115_s1 + $0x1] ss:$8 sm:$0xc] %vm6_vm4, %v34_v1  }
  0x30   :  { %v496_v3 = vsel %vm65_vm0, %v622_v0, %v621_v63  ;;  %v623_v4 = vld [vmem:[%s1114_s0 + $0x89] ss:$16 sm:%s498_s27]   ;;  %525 = vst.msk [vmem:[%s1115_s1 - $0xe] ss:$8 sm:$0x30] %vm6_vm4, %v34_v1   ;;  %439 = vrot.lane.b32.xlu0 %v438_v2, %s639_s29 }
  0x31   :  { %v624_v5 = vld [vmem:[%s1114_s0 + $0x89] ss:$16 sm:%s503_s28]   ;;  %526 = vst.msk [vmem:[%s1115_s1 - $0x1d] ss:$8 sm:$0xc0] %vm6_vm4, %v34_v1   ;;  %v501_v6 = vsel %vm70_vm1, %v623_v4, %v496_v3 }
  0x32   :  { %v616_v7 = vld [vmem:[%s1114_s0 + $0x81] ss:$16 sm:%s467_s3]   ;;  %v527_v8 = vld [vmem:[%s1114_s0 + $0xc0] ss:$8 sm:$0xf]   ;;  %v506_v9 = vsel %vm75_vm2, %v624_v5, %v501_v6 }
  0x33   :  { %v617_v10 = vld [vmem:[%s1114_s0 + $0x81] ss:$16 sm:%s470_s11]   ;;  %507 = vrot.lane.b32.xlu1 %v506_v9, %s639_s29  ;;  %v528_v14 = vld [vmem:[%s1114_s0 + $0xc0] ss:$8 sm:$0xf0]  }
  0x34   :  { %v618_v11 = vld [vmem:[%s1114_s0 + $0x81] ss:$16 sm:%s475_s12]   ;;  %v473_v12 = vsel %vm65_vm0, %v617_v10, %v616_v7  ;;  %v49_v16 = vsel %vm4_vm3, %v528_v14, %v527_v8  ;;  %v2_v17 = vld [vmem:[%s1114_s0] ss:$8 sm:$0xf]  }
  0x35   :  { %v619_v13 = vld [vmem:[%s1114_s0 + $0x81] ss:$16 sm:%s480_s18]   ;;  %v478_v15 = vsel %vm70_vm1, %v618_v11, %v473_v12  ;;  %v3_v18 = vld [vmem:[%s1114_s0] ss:$8 sm:$0xf0]  }
  0x36   :  { %v483_v19 = vsel %vm75_vm2, %v619_v13, %v478_v15  ;;  %529 = vst.msk [vmem:[%s1115_s1 + $0x14] ss:$8 sm:$0x3] %vm6_vm4, %v49_v16   ;;  %530 = vst.msk [vmem:[%s1115_s1 + $0x5] ss:$8 sm:$0xc] %vm6_vm4, %v49_v16   ;;  %v5_v20 = vsel %vm4_vm3, %v3_v18, %v2_v17 }
  0x37   :  { %531 = vst.msk [vmem:[%s1115_s1 - $0xa] ss:$8 sm:$0x30] %vm6_vm4, %v49_v16   ;;  %532 = vst.msk [vmem:[%s1115_s1 - $0x19] ss:$8 sm:$0xc0] %vm6_vm4, %v49_v16   ;;  %484 = vrot.lane.b32.xlu0 %v483_v19, %s639_s29 }
  0x38   :  { %v515_v21 = vld [vmem:[%s1114_s0 + $0x40] ss:$8 sm:$0xf]   ;;  %7 = vst.msk [vmem:[%s1115_s1] ss:$8 sm:$0x3] %vm6_vm4, %v5_v20  }
  0x39   :  { %v516_v22 = vld [vmem:[%s1114_s0 + $0x40] ss:$8 sm:$0xf0]   ;;  %512 = vst.msk [vmem:[%s1115_s1 - $0xf] ss:$8 sm:$0xc] %vm6_vm4, %v5_v20  }
  0x3a   :  { %513 = vst.msk [vmem:[%s1115_s1 - $0x1e] ss:$8 sm:$0x30] %vm6_vm4, %v5_v20   ;;  %514 = vst.msk [vmem:[%s1115_s1 - $0x2d] ss:$8 sm:$0xc0] %vm6_vm4, %v5_v20   ;;  %v19_v23 = vsel %vm4_vm3, %v516_v22, %v515_v21 }
  0x3b   :  { %517 = vst.msk [vmem:[%s1115_s1 + $0x4] ss:$8 sm:$0x3] %vm6_vm4, %v19_v23   ;;  %518 = vst.msk [vmem:[%s1115_s1 - $0xb] ss:$8 sm:$0xc] %vm6_vm4, %v19_v23  }
  0x3c   :  { %519 = vst.msk [vmem:[%s1115_s1 - $0x1a] ss:$8 sm:$0x30] %vm6_vm4, %v19_v23   ;;  %520 = vst.msk [vmem:[%s1115_s1 - $0x29] ss:$8 sm:$0xc0] %vm6_vm4, %v19_v23  }
  0x78   :  { %v123_v24 = vpop.permute.xlu1 %122  }
  0x7a   :  { %v78_v25 = vpop.permute.xlu0 %77  }
  0x7b   :  { %80 = vst.msk [vmem:[%s1115_s1] sm:$0xff] %vm79_vm5, %v78_v25  }
  0x7c   :  { %125 = vst.msk [vmem:[%s1115_s1] sm:$0xff] %vm124_vm6, %v123_v24  }
  0x7d   :  { %v145_v26 = vpop.permute.xlu1 %144  }
  0x7f   :  { %v100_v27 = vpop.permute.xlu0 %99  }
  0x80   :  { %541 = vst.msk [vmem:[%s1115_s1 + $0x10] sm:$0xff] %vm79_vm5, %v100_v27  }
  0x81   :  { %550 = vst.msk [vmem:[%s1115_s1 + $0x10] sm:$0xff] %vm124_vm6, %v145_v26  }
  0x82   :  { %v190_v28 = vpop.permute.xlu1 %189  }
  0x83   :  { %559 = vst.msk [vmem:[%s1115_s1 + $0x10] sm:$0xff] %vm169_vm7, %v190_v28  }
  0x86   :  { %v168_v29 = vpop.permute.xlu0 %167   ;;  %v235_v30 = vpop.permute.xlu1 %234  }
  0x87   :  { %170 = vst.msk [vmem:[%s1115_s1] sm:$0xff] %vm169_vm7, %v168_v29  }
  0x88   :  { %568 = vst.msk [vmem:[%s1115_s1 + $0x10] sm:$0xff] %vm214_vm8, %v235_v30  }
  0x8a   :  { %v213_v31 = vpop.permute.xlu0 %212  }
  0x8b   :  { %215 = vst.msk [vmem:[%s1115_s1] sm:$0xff] %vm214_vm8, %v213_v31   ;;  %v280_v32 = vpop.permute.xlu1 %279  }
  0x8c   :  { %577 = vst.msk [vmem:[%s1115_s1 + $0x8] sm:$0xff] %vm259_vm9, %v280_v32  }
  0x8e   :  { %v258_v33 = vpop.permute.xlu0 %257  }
  0x8f   :  { %260 = vst.msk [vmem:[%s1115_s1] sm:$0xff] %vm259_vm9, %v258_v33  }
  0x91   :  { %v326_v34 = vpop.permute.xlu1 %325  }
  0x92   :  { %587 = vst.msk [vmem:[%s1115_s1 + $0x18] sm:$0xff] %vm259_vm9, %v326_v34  }
  0x93   :  { %v303_v35 = vpop.permute.xlu0 %302  }
  0x94   :  { %582 = vst.msk [vmem:[%s1115_s1 + $0x10] sm:$0xff] %vm259_vm9, %v303_v35  }
  0x96   :  { %v371_v36 = vpop.permute.xlu1 %370  }
  0x97   :  { %596 = vst.msk [vmem:[%s1115_s1 + $0x8] sm:$0xff] %vm350_vm10, %v371_v36  }
  0x98   :  { %v349_v37 = vpop.permute.xlu0 %348  }
  0x99   :  { %351 = vst.msk [vmem:[%s1115_s1] sm:$0xff] %vm350_vm10, %v349_v37  }
  0x9b   :  { %v417_v38 = vpop.permute.xlu1 %416  }
  0x9c   :  { %606 = vst.msk [vmem:[%s1115_s1 + $0x18] sm:$0xff] %vm350_vm10, %v417_v38  }
  0x9d   :  { %v394_v39 = vpop.permute.xlu0 %393  }
  0x9e   :  { %601 = vst.msk [vmem:[%s1115_s1 + $0x10] sm:$0xff] %vm350_vm10, %v394_v39  }
  0xa0   :  { %v462_v40 = vpop.permute.xlu1 %461  }
  0xa1   :  { %615 = vst.msk [vmem:[%s1115_s1 + $0x8] sm:$0xff] %vm441_vm11, %v462_v40  }
  0xa2   :  { %v440_v41 = vpop.permute.xlu0 %439  }
  0xa3   :  { %442 = vst.msk [vmem:[%s1115_s1] sm:$0xff] %vm441_vm11, %v440_v41  }
  0xa5   :  { %v508_v42 = vpop.permute.xlu1 %507  }
  0xa6   :  { %625 = vst.msk [vmem:[%s1115_s1 + $0x18] sm:$0xff] %vm441_vm11, %v508_v42  }
  0xa9   :  { %v485_v43 = vpop.permute.xlu0 %484  }
  0xaa   :  { %620 = vst.msk [vmem:[%s1115_s1 + $0x10] sm:$0xff] %vm441_vm11, %v485_v43  }

// kernel: net_forward.1
= control target key start
LH: loop header
LB: loop body
LE: loop exit
PB: predicated region body
PF: predicated region fallthrough
CT: control target
= control target key end

     0   :  { %v4225_v2 = vmov 0   ;;  %vm152_vm0 = vcmask 130048   ;;  %s4226_s30 = smov 64   ;;  %s5399_s0 = inlined_call_operand.vmem [shape: f32[16,513], index: 0, kind: input, shape index: {}]   ;;  %s5400_s1 = inlined_call_operand.vmem [shape: f32[20,192], index: 1, kind: input, shape index: {}]   ;;  %s5401_s2 = inlined_call_operand.vmem [shape: bf16[32,448], index: 2, kind: input, shape index: {}]   ;;  %s5402_s3 = inlined_call_operand.vmem [shape: bf16[192,796], index: 3, kind: input, shape index: {}]   ;;  %s5403_s4 = inlined_call_operand.vmem [shape: bf16[192,557], index: 4, kind: input, shape index: {}]   ;;  %s5404_s5 = inlined_call_operand.hbm [shape: f32[2,10], index: 5, kind: output, shape index: {}]  }
   0x1   :  { %v3968_v0 = vld [vmem:[%s5401_s2 + $0x4] ss:$16 sps:$4 sm:$0xff]   ;;  %v3970_v1 = vld [vmem:[%s5401_s2] ss:$16 sps:$4 sm:$0xff]   ;;  %188 = vmatprep.mubr.bf16.mxu1 %v4225_v2  ;;  %v4289_v4 = vld [vmem:[%s5399_s0 + $0x28] sm:$0xff] }
   0x2   :  { %v4284_v3 = vld [vmem:[%s5399_s0] sm:$0xff]  ;;  %156 = vmatprep.subr.bf16.mxu1 %v3968_v0  ;;  %v3974_v8 = vld [vmem:[%s5402_s3 + $0x3c] ss:$28 sps:$4 sm:$0xff]   ;;  %v3979_v10 = vld [vmem:[%s5402_s3 + $0x74] ss:$28 sps:$4 sm:$0xff]  }
   0x3   :  { %v4293_v5 = vpack.c.bf16 %v4289_v4, %v4284_v3  ;;  %v3971_v6 = vld [vmem:[%s5402_s3 + $0x4] ss:$28 sps:$4 sm:$0xff]   ;;  %157 = vmatpush1.bf16.msra.mxu1 %v3970_v1  ;;  %301 = vrot.lane.b32.xlu1 %v3974_v8, %s4226_s30  ;;  %v3977_v11 = vld [vmem:[%s5402_s3 + $0x78] ss:$28 sps:$4 sm:$0xff]   ;;  %v3982_v12 = vld [vmem:[%s5402_s3 + $0xac] ss:$28 sps:$4 sm:$0xff]  }
   0x4   :  { %v3973_v7 = vld [vmem:[%s5402_s3 + $0x8] ss:$28 sps:$4 sm:$0xff]   ;;  %297 = vrot.lane.b32.xlu0 %v3971_v6, %s4226_s30  ;;  %v3976_v9 = vld [vmem:[%s5402_s3 + $0x40] ss:$28 sps:$4 sm:$0xff]   ;;  %v3980_v13 = vld [vmem:[%s5402_s3 + $0xb0] ss:$28 sps:$4 sm:$0xff]  }
   0x5   :  { %v3985_v14 = vld [vmem:[%s5402_s3 + $0xe4] ss:$28 sps:$4 sm:$0xff]   ;;  %v3988_v16 = vld [vmem:[%s5402_s3 + $0x11c] ss:$28 sps:$4 sm:$0xff]   ;;  %v3991_v18 = vld [vmem:[%s5402_s3 + $0x154] ss:$28 sps:$4 sm:$0xff]  }
   0x6   :  { %3562 = vmatmul.mubr.msk.bf16.vlgmr.msra.gmra.mrb[0].mxu1 %vm152_vm0, %v4293_v5  ;;  %v3983_v15 = vld [vmem:[%s5402_s3 + $0xe8] ss:$28 sps:$4 sm:$0xff]   ;;  %v3986_v17 = vld [vmem:[%s5402_s3 + $0x120] ss:$28 sps:$4 sm:$0xff]   ;;  %v3989_v19 = vld [vmem:[%s5402_s3 + $0x158] ss:$28 sps:$4 sm:$0xff]  }
   0x7   :  { %303 = vrot.lane.b32.xlu1 %v3976_v9, %s4226_s30  ;;  %v3994_v20 = vld [vmem:[%s5402_s3 + $0x18c] ss:$28 sps:$4 sm:$0xff]   ;;  %v3997_v22 = vld [vmem:[%s5402_s3 + $0x1c4] ss:$28 sps:$4 sm:$0xff]   ;;  %v4000_v24 = vld [vmem:[%s5402_s3 + $0x1fc] ss:$28 sps:$4 sm:$0xff]  }
   0x8   :  { %299 = vrot.lane.b32.xlu0 %v3973_v7, %s4226_s30  ;;  %v3992_v21 = vld [vmem:[%s5402_s3 + $0x190] ss:$28 sps:$4 sm:$0xff]   ;;  %v3995_v23 = vld [vmem:[%s5402_s3 + $0x1c8] ss:$28 sps:$4 sm:$0xff]   ;;  %v3998_v25 = vld [vmem:[%s5402_s3 + $0x200] ss:$28 sps:$4 sm:$0xff]  }
   0x9   :  { %v4003_v26 = vld [vmem:[%s5402_s3 + $0x234] ss:$28 sps:$4 sm:$0xff]   ;;  %v4006_v28 = vld [vmem:[%s5402_s3 + $0x26c] ss:$28 sps:$4 sm:$0xff]  }
   0xa   :  { %v4001_v27 = vld [vmem:[%s5402_s3 + $0x238] ss:$28 sps:$4 sm:$0xff]   ;;  %v4004_v29 = vld [vmem:[%s5402_s3 + $0x270] ss:$28 sps:$4 sm:$0xff]  }
   0xb   :  { %307 = vrot.lane.b32.xlu1 %v3977_v11, %s4226_s30 }
   0xc   :  { %305 = vrot.lane.b32.xlu0 %v3979_v10, %s4226_s30 }
   0xf   :  { %311 = vrot.lane.b32.xlu1 %v3980_v13, %s4226_s30 }
  0x10   :  { %309 = vrot.lane.b32.xlu0 %v3982_v12, %s4226_s30 }
  0x13   :  { %315 = vrot.lane.b32.xlu1 %v3983_v15, %s4226_s30 }
  0x14   :  { %313 = vrot.lane.b32.xlu0 %v3985_v14, %s4226_s30 }
  0x17   :  { %319 = vrot.lane.b32.xlu1 %v3986_v17, %s4226_s30 }
  0x18   :  { %317 = vrot.lane.b32.xlu0 %v3988_v16, %s4226_s30 }
  0x1b   :  { %323 = vrot.lane.b32.xlu1 %v3989_v19, %s4226_s30 }
  0x1c   :  { %321 = vrot.lane.b32.xlu0 %v3991_v18, %s4226_s30 }
  0x1f   :  { %327 = vrot.lane.b32.xlu1 %v3992_v21, %s4226_s30 }
  0x20   :  { %325 = vrot.lane.b32.xlu0 %v3994_v20, %s4226_s30 }
  0x23   :  { %331 = vrot.lane.b32.xlu1 %v3995_v23, %s4226_s30 }
  0x24   :  { %329 = vrot.lane.b32.xlu0 %v3997_v22, %s4226_s30 }
  0x27   :  { %335 = vrot.lane.b32.xlu1 %v3998_v25, %s4226_s30 }
  0x28   :  { %333 = vrot.lane.b32.xlu0 %v4000_v24, %s4226_s30 }
  0x2b   :  { %339 = vrot.lane.b32.xlu1 %v4001_v27, %s4226_s30 }
  0x2c   :  { %337 = vrot.lane.b32.xlu0 %v4003_v26, %s4226_s30 }
  0x2f   :  { %343 = vrot.lane.b32.xlu1 %v4004_v29, %s4226_s30 }
  0x30   :  { %341 = vrot.lane.b32.xlu0 %v4006_v28, %s4226_s30 }
  0x31   :  { %10 = vsyncpa [#allocation3], 0  ;;  %v76_v30 = vld [vmem:[%s5399_s0 + $0x10] sm:$0xff]  ;;  %v77_v31 = vld [vmem:[%s5399_s0 + $0x18] sm:$0xff]  ;;  %s4227_s6 = smov 31   ;;  %vm345_vm1 = vcmask 523264  }
  0x32   :  { %v79_v32 = vld [vmem:[%s5399_s0 + $0x38] sm:$0xff]  ;;  %v80_v33 = vld [vmem:[%s5399_s0 + $0x40] sm:$0xff]  ;;  %v4408_v34 = vld [vmem:[%s5399_s0 + $0x8] sm:$0xff]  ;;  %v4228_v18 = vmov 0.0   ;;  %s4229_s15 = smov 95   ;;  %s4230_s20 = smov 112  }
  0x33   :  { %439 = vrot.lane.b32.xlu1 %v77_v31, %s4227_s6  ;;  %v4413_v35 = vld [vmem:[%s5399_s0 + $0x30] sm:$0xff]  ;;  %527 = vmatprep.mubr.f32.mxu0 %v4228_v18  ;;  %v4449_v19 = vld [vmem:[%s5402_s3 + $0xc] ss:$28 sps:$4 sm:$0xff]   ;;  %v4454_v20 = vld [vmem:[%s5402_s3 + $0x44] ss:$28 sps:$4 sm:$0xff]   ;;  %vm447_vm2 = vcmask 252928  }
  0x34   :  { %437 = vrot.lane.b32.xlu0 %v76_v30, %s4227_s6  ;;  %vm729_vm3 = vcmask 777216   ;;  %s4231_s29 = smov 100   ;;  %s4232_s12 = smov 36   ;;  %vm1050_vm8 = vcmask 818176   ;;  %vm1172_vm9 = vcmask 293888   ;;  %vm1186_vm10 = vcmask 1043456  }
  0x35   :  { %vm4233_vm11 = vmmov 1   ;;  %vm1179_vm13 = vcmask 97280   ;;  %vm4235_vm14 = vmmov 0   ;;  %vm2119_vm15 = vcmask 261120   ;;  %s4239_s8 = smov 47   ;;  %s4241_s26 = smov 93  }
  0x36   :  { %vm3882_vm12 = vmpackc.low %vm1186_vm10, %vm4233_vm11  ;;  %s4242_s14 = smov 29  }
  0x37   :  { %445 = vrot.lane.b32.xlu1 %v80_v33, %s4227_s6 }
  0x38   :  { %443 = vrot.lane.b32.xlu0 %v79_v32, %s4227_s6 }
  0x3b   :  { %441 = vrot.lane.b32.xlu1 %v4413_v35, %s4227_s6 }
  0x3c   :  { %435 = vrot.lane.b32.xlu0 %v4408_v34, %s4227_s6  ;;  %s4243_s6 = smov [#allocation2]  }
  0x3d   :  { %s3551_s7 = sshll.u32 %s4243_s6, 4  ;;  %s3552_s7 = int_to_ptr.vmem [resolvable:$true] %s3551_s7 }
  0x3e   :  { %p4206_p1 = scmp.lt.s32.totalorder %s3552_s7, %s3552_s7 }
  0x3f   :  { %723 = vrot.lane.b32.xlu1 %v4408_v34, %s4229_s15 }
  0x40   :  { %721 = vrot.lane.b32.xlu0 %v4284_v3, %s4229_s15  ;;  %v4463_v3 = vld [vmem:[%s5402_s3 + $0x7c] ss:$28 sps:$4 sm:$0xff]  }
  0x43   :  { %727 = vrot.lane.b32.xlu1 %v4413_v35, %s4229_s15 }
  0x44   :  { %725 = vrot.lane.b32.xlu0 %v4289_v4, %s4229_s15 }
  0x47   :  { %824 = vrot.lane.b32.xlu1 %v4454_v20, %s4230_s20 }
  0x48   :  { %822 = vrot.lane.b32.xlu0 %v4449_v19, %s4230_s20 }
  0x4c   :  { %826 = vrot.lane.b32.xlu0 %v4463_v3, %s4230_s20 }
  0x75   :  { %v302_v37 = vpop.permute.xlu1 %301 }
  0x76   :  { %v298_v36 = vpop.permute.xlu0 %297 }
  0x79   :  { %v304_v40 = vpop.permute.xlu1 %303 }
  0x7a   :  { %v300_v38 = vpop.permute.xlu0 %299  ;;  %v347_v41 = vsel %vm345_vm1, %v302_v37, %v304_v40 }
  0x7b   :  { %386 = vmatprep.subr.bf16.mxu1 %v300_v38  ;;  %v346_v39 = vsel %vm345_vm1, %v298_v36, %v300_v38 }
  0x7c   :  { %387 = vmatpush1.bf16.msra.mxu1 %v346_v39 }
  0x7d   :  { %388 = vmatprep.subr.bf16.mxu1 %v304_v40  ;;  %v308_v43 = vpop.permute.xlu1 %307  ;;  %v4009_v40 = vld [vmem:[%s5402_s3 + $0x4] ss:$28 sps:$4 sm:$0xff]  }
  0x7e   :  { %v306_v42 = vpop.permute.xlu0 %305 }
  0x7f   :  { %v348_v44 = vsel %vm345_vm1, %v306_v42, %v308_v43  ;;  %v4007_v42 = vld [vmem:[%s5402_s3] ss:$28 sps:$4 sm:$0xff]  }
  0x80   :  { %389 = vmatpush1.bf16.msra.mxu1 %v347_v41  ;;  %v4473_v41 = vld [vmem:[%s5400_s1] ss:$0 sm:$0xff] }
  0x81   :  { %390 = vmatprep.subr.bf16.mxu1 %v308_v43  ;;  %v312_v46 = vpop.permute.xlu1 %311  ;;  %v4012_v43 = vld [vmem:[%s5402_s3 + $0x3c] ss:$28 sps:$4 sm:$0xff]  }
  0x82   :  { %v310_v45 = vpop.permute.xlu0 %309 }
  0x83   :  { %v349_v47 = vsel %vm345_vm1, %v310_v45, %v312_v46  ;;  %v4015_v45 = vld [vmem:[%s5402_s3 + $0x74] ss:$28 sps:$4 sm:$0xff]  }
  0x84   :  { %391 = vmatpush1.bf16.msra.mxu1 %v348_v44  ;;  %v4010_v44 = vld [vmem:[%s5402_s3 + $0x38] ss:$28 sps:$4 sm:$0xff]  }
  0x85   :  { %392 = vmatprep.subr.bf16.mxu1 %v312_v46  ;;  %v316_v49 = vpop.permute.xlu1 %315  ;;  %v4013_v46 = vld [vmem:[%s5402_s3 + $0x70] ss:$28 sps:$4 sm:$0xff]  }
  0x86   :  { %v314_v48 = vpop.permute.xlu0 %313 }
  0x87   :  { %v350_v50 = vsel %vm345_vm1, %v314_v48, %v316_v49  ;;  %v4016_v48 = vld [vmem:[%s5402_s3 + $0xa8] ss:$28 sps:$4 sm:$0xff]  }
  0x88   :  { %393 = vmatpush1.bf16.msra.mxu1 %v349_v47  ;;  %v4018_v47 = vld [vmem:[%s5402_s3 + $0xac] ss:$28 sps:$4 sm:$0xff]  }
  0x89   :  { %394 = vmatprep.subr.bf16.mxu1 %v316_v49  ;;  %v320_v52 = vpop.permute.xlu1 %319  ;;  %v4021_v49 = vld [vmem:[%s5402_s3 + $0xe4] ss:$28 sps:$4 sm:$0xff]  }
  0x8a   :  { %v318_v51 = vpop.permute.xlu0 %317 }
  0x8b   :  { %v351_v53 = vsel %vm345_vm1, %v318_v51, %v320_v52  ;;  %v4024_v51 = vld [vmem:[%s5402_s3 + $0x11c] ss:$28 sps:$4 sm:$0xff]  }
  0x8c   :  { %395 = vmatpush1.bf16.msra.mxu1 %v350_v50  ;;  %v4019_v50 = vld [vmem:[%s5402_s3 + $0xe0] ss:$28 sps:$4 sm:$0xff]  }
  0x8d   :  { %396 = vmatprep.subr.bf16.mxu1 %v320_v52  ;;  %v324_v55 = vpop.permute.xlu1 %323  ;;  %v4022_v52 = vld [vmem:[%s5402_s3 + $0x118] ss:$28 sps:$4 sm:$0xff]  }
  0x8e   :  { %v322_v54 = vpop.permute.xlu0 %321 }
  0x8f   :  { %v352_v56 = vsel %vm345_vm1, %v322_v54, %v324_v55  ;;  %v4025_v54 = vld [vmem:[%s5402_s3 + $0x150] ss:$28 sps:$4 sm:$0xff]  }
  0x90   :  { %397 = vmatpush1.bf16.msra.mxu1 %v351_v53  ;;  %v4027_v53 = vld [vmem:[%s5402_s3 + $0x154] ss:$28 sps:$4 sm:$0xff]  }
  0x91   :  { %398 = vmatprep.subr.bf16.mxu1 %v324_v55  ;;  %v328_v58 = vpop.permute.xlu1 %327  ;;  %v4030_v55 = vld [vmem:[%s5402_s3 + $0x18c] ss:$28 sps:$4 sm:$0xff]  }
  0x92   :  { %v326_v57 = vpop.permute.xlu0 %325 }
  0x93   :  { %v353_v59 = vsel %vm345_vm1, %v326_v57, %v328_v58  ;;  %v4033_v57 = vld [vmem:[%s5402_s3 + $0x1c4] ss:$28 sps:$4 sm:$0xff]  }
  0x94   :  { %399 = vmatpush1.bf16.msra.mxu1 %v352_v56  ;;  %v4028_v56 = vld [vmem:[%s5402_s3 + $0x188] ss:$28 sps:$4 sm:$0xff]  }
  0x95   :  { %400 = vmatprep.subr.bf16.mxu1 %v328_v58  ;;  %v332_v61 = vpop.permute.xlu1 %331  ;;  %v4031_v58 = vld [vmem:[%s5402_s3 + $0x1c0] ss:$28 sps:$4 sm:$0xff]  }
  0x96   :  { %v330_v60 = vpop.permute.xlu0 %329 }
  0x97   :  { %v354_v62 = vsel %vm345_vm1, %v330_v60, %v332_v61  ;;  %v4034_v60 = vld [vmem:[%s5402_s3 + $0x1f8] ss:$28 sps:$4 sm:$0xff]  }
  0x98   :  { %401 = vmatpush1.bf16.msra.mxu1 %v353_v59  ;;  %v4036_v59 = vld [vmem:[%s5402_s3 + $0x1fc] ss:$28 sps:$4 sm:$0xff]  }
  0x99   :  { %402 = vmatprep.subr.bf16.mxu1 %v332_v61  ;;  %v336_v0 = vpop.permute.xlu1 %335  ;;  %v4039_v61 = vld [vmem:[%s5402_s3 + $0x234] ss:$28 sps:$4 sm:$0xff]  }
  0x9a   :  { %v334_v63 = vpop.permute.xlu0 %333 }
  0x9b   :  { %v355_v1 = vsel %vm345_vm1, %v334_v63, %v336_v0  ;;  %v4042_v63 = vld [vmem:[%s5402_s3 + $0x26c] ss:$28 sps:$4 sm:$0xff]  }
  0x9c   :  { %403 = vmatpush1.bf16.msra.mxu1 %v354_v62  ;;  %v4037_v62 = vld [vmem:[%s5402_s3 + $0x230] ss:$28 sps:$4 sm:$0xff]  }
  0x9d   :  { %404 = vmatprep.subr.bf16.mxu1 %v336_v0  ;;  %v340_v7 = vpop.permute.xlu1 %339  ;;  %v4040_v0 = vld [vmem:[%s5402_s3 + $0x268] ss:$28 sps:$4 sm:$0xff]  }
  0x9e   :  { %v338_v6 = vpop.permute.xlu0 %337 }
  0x9f   :  { %v356_v8 = vsel %vm345_vm1, %v338_v6, %v340_v7  ;;  %v4559_v6 = vld [vmem:[%s5402_s3 + $0xec] ss:$28 sps:$4 sm:$0xff]  }
  0xa0   :  { %405 = vmatpush1.bf16.msra.mxu1 %v355_v1  ;;  %v4552_v1 = vld [vmem:[%s5402_s3 + $0xb4] ss:$28 sps:$4 sm:$0xff]   ;;  %830 = vrot.lane.b32.xlu0 %v4559_v6, %s4230_s20 }
  0xa1   :  { %406 = vmatprep.subr.bf16.mxu1 %v340_v7  ;;  %v344_v10 = vpop.permute.xlu1 %343  ;;  %828 = vrot.lane.b32.xlu1 %v4552_v1, %s4230_s20  ;;  %v4564_v7 = vld [vmem:[%s5402_s3 + $0x124] ss:$28 sps:$4 sm:$0xff]  }
  0xa2   :  { %v342_v9 = vpop.permute.xlu0 %341 }
  0xa3   :  { %v357_v11 = vsel %vm345_vm1, %v342_v9, %v344_v10  ;;  %v4578_v9 = vld [vmem:[%s5402_s3 + $0x194] ss:$28 sps:$4 sm:$0xff]  }
  0xa4   :  { %407 = vmatpush1.bf16.msra.mxu1 %v356_v8  ;;  %v4571_v8 = vld [vmem:[%s5402_s3 + $0x15c] ss:$28 sps:$4 sm:$0xff]  }
  0xa5   :  { %408 = vmatprep.subr.bf16.mxu1 %v344_v10  ;;  %v440_v21 = vpop.permute.xlu1 %439  ;;  %832 = vrot.lane.b32.xlu1 %v4564_v7, %s4230_s20  ;;  %v4585_v10 = vld [vmem:[%s5402_s3 + $0x1cc] ss:$28 sps:$4 sm:$0xff]  }
  0xa6   :  { %v438_v4 = vpop.permute.xlu0 %437  ;;  %834 = vrot.lane.b32.xlu0 %v4571_v8, %s4230_s20 }
  0xa7   :  { %v449_v32 = vsel %vm447_vm2, %v438_v4, %v440_v21 }
  0xa8   :  { %409 = vmatpush1.bf16.msra.mxu1 %v357_v11  ;;  %v4592_v11 = vld [vmem:[%s5402_s3 + $0x204] ss:$28 sps:$4 sm:$0xff]  }
  0xa9   :  { %861 = vmatprep.subr.bf16.mxu1 %v4225_v2  ;;  %v446_v23 = vpop.permute.xlu1 %445  ;;  %836 = vrot.lane.b32.xlu1 %v4578_v9, %s4230_s20 }
  0xaa   :  { %v444_v22 = vpop.permute.xlu0 %443  ;;  %838 = vrot.lane.b32.xlu0 %v4585_v10, %s4230_s20 }
  0xab   :  { %v451_v35 = vsel %vm447_vm2, %v444_v22, %v446_v23 }
  0xad   :  { %v442_v25 = vpop.permute.xlu1 %441  ;;  %840 = vrot.lane.b32.xlu1 %v4592_v11, %s4230_s20 }
  0xae   :  { %v436_v24 = vpop.permute.xlu0 %435  ;;  %v450_v30 = vsel %vm447_vm2, %v442_v25, %v444_v22 }
  0xaf   :  { %v448_v28 = vsel %vm447_vm2, %v436_v24, %v438_v4  ;;  %vm2320_vm2 = vcmask 384000  }
  0xd9   :  { %v190_v12 = vpop.f32.mrb[0].mxu1 }
  0xda   :  { %v192_v13 = vpop.f32.mrb[1].mxu1 }
  0xdb   :  { %v194_v14 = vpop.f32.mrb[2].mxu1 }
  0xdc   :  { %v4430_v15 = vpack.c.bf16 %v194_v14, %v190_v12  ;;  %v196_v16 = vpop.f32.mrb[3].mxu1  ;;  %v722_v12 = vpop.permute.xlu0 %721 }
  0xdd   :  { %v4432_v17 = vpack.c.bf16 %v196_v16, %v192_v13  ;;  %v724_v13 = vpop.permute.xlu1 %723 }
  0xdf   :  { %3587 = vmatprep.mubr.msk.bf16.mxu1 %vm345_vm1, %v4432_v17 }
  0xe0   :  { %419 = vmatmul.mubr.bf16.vlgmr.msra.gmra.mrb[4].mxu1 %v4430_v15  ;;  %v4598_v14 = vpop.permute.xlu0 %725 }
  0xe1   :  { %v4600_v16 = vpop.permute.xlu1 %727 }
  0xe4   :  { %v823_v4 = vpop.permute.xlu0 %822 }
  0xe5   :  { %862 = vmatpush1.bf16.msra.mxu1 %v823_v4  ;;  %v825_v21 = vpop.permute.xlu1 %824  ;;  %v4055_v4 = vld [vmem:[%s5402_s3 + $0xc] ss:$28 sps:$4 sm:$0xff]  }
  0xe6   :  { %863 = vmatprep.subr.bf16.mxu1 %v4225_v2 }
  0xe8   :  { %v827_v22 = vpop.permute.xlu0 %826 }
  0xe9   :  { %864 = vmatpush1.bf16.msra.mxu1 %v825_v21  ;;  %v4060_v21 = vld [vmem:[%s5402_s3 + $0x48] ss:$28 sps:$4 sm:$0xff]  }
  0xea   :  { %865 = vmatprep.subr.bf16.mxu1 %v4225_v2 }
  0xed   :  { %866 = vmatpush1.bf16.msra.mxu1 %v827_v22  ;;  %v4058_v22 = vld [vmem:[%s5402_s3 + $0x44] ss:$28 sps:$4 sm:$0xff]  }
  0xee   :  { %867 = vmatprep.subr.bf16.mxu1 %v4225_v2 }
 0x112   :  { %v831_v24 = vpop.permute.xlu0 %830 }
 0x113   :  { %v829_v23 = vpop.permute.xlu1 %828 }
 0x114   :  { %868 = vmatpush1.bf16.msra.mxu1 %v829_v23  ;;  %v4063_v23 = vld [vmem:[%s5402_s3 + $0x80] ss:$28 sps:$4 sm:$0xff]  }
 0x115   :  { %869 = vmatprep.subr.bf16.mxu1 %v4225_v2 }
 0x117   :  { %v833_v25 = vpop.permute.xlu1 %832 }
 0x118   :  { %870 = vmatpush1.bf16.msra.mxu1 %v831_v24  ;;  %v4061_v24 = vld [vmem:[%s5402_s3 + $0x7c] ss:$28 sps:$4 sm:$0xff]  }
 0x119   :  { %871 = vmatprep.subr.bf16.mxu1 %v4225_v2 }
 0x11c   :  { %872 = vmatpush1.bf16.msra.mxu1 %v833_v25  ;;  %v4066_v25 = vld [vmem:[%s5402_s3 + $0xb8] ss:$28 sps:$4 sm:$0xff]  }
 0x11d   :  { %873 = vmatprep.subr.bf16.mxu1 %v4225_v2 }
 0x1b3   :  { %v420_v26 = vpop.f32.mrb[4].mxu1 }
 0x1b4   :  { %v422_v27 = vpop.f32.mrb[5].mxu1  ;;  %v456_v31 = vmul.f32 %v448_v28, %v420_v26  ;;  %v835_v26 = vpop.permute.xlu0 %834 }
 0x1b5   :  { %v424_v29 = vpop.f32.mrb[6].mxu1  ;;  %v457_v36 = vmul.f32 %v449_v32, %v422_v27  ;;  %874 = vmatpush1.bf16.msra.mxu1 %v835_v26  ;;  %v536_v32 = vlaneseq  ;;  %v4064_v26 = vld [vmem:[%s5402_s3 + $0xb4] ss:$28 sps:$4 sm:$0xff]  }
 0x1b6   :  { %v458_v33 = vmul.f32 %v450_v30, %v424_v29  ;;  %v426_v34 = vpop.f32.mrb[7].mxu1  ;;  %v837_v29 = vpop.permute.xlu1 %836  ;;  %875 = vmatprep.subr.bf16.mxu1 %v4225_v2 }
 0x1b7   :  { %v459_v37 = vmul.f32 %v451_v35, %v426_v34 }
 0x1b8   :  { %v3879_v38 = vpack.c.bf16 %v458_v33, %v456_v31  ;;  %v839_v30 = vpop.permute.xlu0 %838  ;;  %v4612_v33 = vshrl.u32 %v536_v32, 7  ;;  %v4073_v32 = vld [vmem:[%s5402_s3 + $0x15c] ss:$28 sps:$4 sm:$0xff]  }
 0x1b9   :  { %v3877_v39 = vpack.c.bf16 %v459_v37, %v457_v36  ;;  %876 = vmatpush1.bf16.msra.mxu1 %v837_v29  ;;  %v4072_v29 = vld [vmem:[%s5402_s3 + $0x128] ss:$28 sps:$4 sm:$0xff]  }
 0x1ba   :  { %877 = vmatprep.subr.bf16.mxu1 %v4225_v2  ;;  %v841_v31 = vpop.permute.xlu1 %840  ;;  %v4615_v35 = vsub.s32 0, %v4612_v33 }
 0x1bb   :  { %3878 = vmatprep.subr.bf16.mxu0 %v3877_v39 }
 0x1bc   :  { %3880 = vmatpush1.bf16.msra.mxu0 %v3879_v38 }
 0x1bd   :  { %664 = vmatprep.subr.bf16.mxu0 %v4009_v40  ;;  %878 = vmatpush1.bf16.msra.mxu1 %v839_v30  ;;  %v4070_v30 = vld [vmem:[%s5402_s3 + $0x124] ss:$28 sps:$4 sm:$0xff]  }
 0x1be   :  { %879 = vmatprep.subr.bf16.mxu1 %v4225_v2 }
 0x1bf   :  { %3588 = vmatmul.mubr.msk.f32.vlgmr.msra.gmra.mrb[0].mxu0 %vm152_vm0, %v4473_v41 }
 0x1c0   :  { %665 = vmatpush1.bf16.msra.mxu0 %v4007_v42  ;;  %3613 = vmatprep.mubr.msk.bf16.mxu0 %vm345_vm1, %v4432_v17 }
 0x1c1   :  { %666 = vmatprep.subr.bf16.mxu0 %v4012_v43  ;;  %880 = vmatpush1.bf16.msra.mxu1 %v841_v31  ;;  %v4075_v31 = vld [vmem:[%s5402_s3 + $0x160] ss:$28 sps:$4 sm:$0xff]  }
 0x1c2   :  { %881 = vmatprep.subr.bf16.mxu1 %v4225_v2 }
 0x1c4   :  { %667 = vmatpush1.bf16.msra.mxu0 %v4010_v44 }
 0x1c5   :  { %668 = vmatprep.subr.bf16.mxu0 %v4015_v45 }
 0x1c8   :  { %669 = vmatpush1.bf16.msra.mxu0 %v4013_v46 }
 0x1c9   :  { %670 = vmatprep.subr.bf16.mxu0 %v4018_v47 }
 0x1cc   :  { %671 = vmatpush1.bf16.msra.mxu0 %v4016_v48 }
 0x1cd   :  { %672 = vmatprep.subr.bf16.mxu0 %v4021_v49 }
 0x1d0   :  { %673 = vmatpush1.bf16.msra.mxu0 %v4019_v50 }
 0x1d1   :  { %674 = vmatprep.subr.bf16.mxu0 %v4024_v51  ;;  %v730_v51 = vsel %vm729_vm3, %v722_v12, %v724_v13 }
 0x1d4   :  { %675 = vmatpush1.bf16.msra.mxu0 %v4022_v52 }
 0x1d5   :  { %676 = vmatprep.subr.bf16.mxu0 %v4027_v53 }
 0x1d8   :  { %677 = vmatpush1.bf16.msra.mxu0 %v4025_v54 }
 0x1d9   :  { %678 = vmatprep.subr.bf16.mxu0 %v4030_v55 }
 0x1dc   :  { %679 = vmatpush1.bf16.msra.mxu0 %v4028_v56 }
 0x1dd   :  { %680 = vmatprep.subr.bf16.mxu0 %v4033_v57  ;;  %v731_v57 = vsel %vm729_vm3, %v4598_v14, %v4600_v16  ;;  %v4646_v14 = vld [vmem:[%s5402_s3 + $0x23c] ss:$28 sps:$4 sm:$0xff]  }
 0x1e0   :  { %681 = vmatpush1.bf16.msra.mxu0 %v4031_v58 }
 0x1e1   :  { %682 = vmatprep.subr.bf16.mxu0 %v4036_v59 }
 0x1e4   :  { %683 = vmatpush1.bf16.msra.mxu0 %v4034_v60 }
 0x1e5   :  { %684 = vmatprep.subr.bf16.mxu0 %v4039_v61 }
 0x1e8   :  { %685 = vmatpush1.bf16.msra.mxu0 %v4037_v62 }
 0x1e9   :  { %686 = vmatprep.subr.bf16.mxu0 %v4042_v63 }
 0x1ec   :  { %687 = vmatpush1.bf16.msra.mxu0 %v4040_v0 }
 0x1ef   :  { %697 = vmatmul.mubr.bf16.vlgmr.msra.gmra.mrb[4].mxu0 %v4430_v15 }
 0x292   :  { %v529_v27 = vpop.f32.mrb[0].mxu0 }
 0x293   :  { %v531_v28 = vpop.f32.mrb[1].mxu0  ;;  %v534_v34 = vmul.f32 16.0, %v529_v27  ;;  %v4069_v27 = vld [vmem:[%s5402_s3 + $0xf0] ss:$28 sps:$4 sm:$0xff]  }
 0x294   :  { %v535_v36 = vmul.f32 16.0, %v531_v28  ;;  %v4067_v28 = vld [vmem:[%s5402_s3 + $0xec] ss:$28 sps:$4 sm:$0xff]  }
 0x295   :  { %v539_v37 = vrot.slane %v534_v34, %v4615_v35  ;;  %v4078_v34 = vld [vmem:[%s5402_s3 + $0x198] ss:$28 sps:$4 sm:$0xff]  }
 0x296   :  { %v543_v39 = vrot.slane %v535_v36, %v4615_v35  ;;  %v4076_v36 = vld [vmem:[%s5402_s3 + $0x194] ss:$28 sps:$4 sm:$0xff]  }
 0x2c2   :  { %v698_v38 = vpop.f32.mrb[4].mxu0 }
 0x2c3   :  { %v699_v40 = vadd.f32 %v698_v38, %v539_v37  ;;  %v700_v42 = vpop.f32.mrb[5].mxu0  ;;  %v4079_v38 = vld [vmem:[%s5402_s3 + $0x1cc] ss:$28 sps:$4 sm:$0xff]  }
 0x2c4   :  { %v701_v43 = vadd.f32 %v700_v42, %v543_v39  ;;  %v702_v44 = vpop.f32.mrb[6].mxu0  ;;  %v108_v42 = vld [vmem:[%s5402_s3 + $0x34] sm:$0x3] }
 0x2c5   :  { %vm707_vm4 = vcmp.ge.f32.partialorder %v699_v40, 0.0  ;;  %v711_v45 = vmul.f32 0.2, %v699_v40  ;;  %v703_v46 = vadd.f32 %v702_v44, %v539_v37  ;;  %v704_v47 = vpop.f32.mrb[7].mxu0  ;;  %v4081_v37 = vld [vmem:[%s5402_s3 + $0x1d0] ss:$28 sps:$4 sm:$0xff]  }
 0x2c6   :  { %vm708_vm5 = vcmp.ge.f32.partialorder %v701_v43, 0.0  ;;  %v712_v48 = vmul.f32 0.2, %v701_v43  ;;  %v705_v49 = vadd.f32 %v704_v47, %v543_v39  ;;  %v4084_v39 = vld [vmem:[%s5402_s3 + $0x208] ss:$28 sps:$4 sm:$0xff]  }
 0x2c7   :  { %v715_v50 = vsel %vm707_vm4, %v699_v40, %v711_v45  ;;  %vm709_vm6 = vcmp.ge.f32.partialorder %v703_v46, 0.0  ;;  %v713_v52 = vmul.f32 0.2, %v703_v46  ;;  %v107_v40 = vld [vmem:[%s5402_s3 + $0x2c] sm:$0x33] }
 0x2c8   :  { %v716_v53 = vsel %vm708_vm5, %v701_v43, %v712_v48  ;;  %vm710_vm7 = vcmp.ge.f32.partialorder %v705_v49, 0.0  ;;  %v714_v54 = vmul.f32 0.2, %v705_v49  ;;  %v4625_v58 = vadd.f32 %v730_v51, %v715_v50  ;;  %v4082_v43 = vld [vmem:[%s5402_s3 + $0x204] ss:$28 sps:$4 sm:$0xff]   ;;  %v105_v45 = vld [vmem:[%s5402_s3 + $0x10] sm:$0xff] }
 0x2c9   :  { %v4620_v55 = vadd.f32 %v724_v13, %v716_v53  ;;  %v717_v56 = vsel %vm709_vm6, %v703_v46, %v713_v52  ;;  %v4641_v13 = vld [vmem:[%s5402_s3 + $0x274] ss:$28 sps:$4 sm:$0xff]   ;;  %v4087_v44 = vld [vmem:[%s5402_s3 + $0x240] ss:$28 sps:$4 sm:$0xff]   ;;  %v106_v46 = vld [vmem:[%s5402_s3 + $0x18] sm:$0xf]  ;;  %v113_v47 = vunpack.c.h.bf16 %v107_v40  ;;  %v114_v48 = vunpack.c.l.bf16 %v108_v42 }
 0x2ca   :  { %v718_v59 = vsel %vm710_vm7, %v705_v49, %v714_v54  ;;  %v4632_v62 = vadd.f32 %v731_v57, %v717_v56  ;;  %v4085_v49 = vld [vmem:[%s5402_s3 + $0x23c] ss:$28 sps:$4 sm:$0xff]   ;;  %v110_v50 = vunpack.c.h.bf16 %v105_v45  ;;  %v111_v51 = vunpack.c.l.bf16 %v106_v46  ;;  %v4088_v57 = vld [vmem:[%s5402_s3 + $0x274] ss:$28 sps:$4 sm:$0xff]  }
 0x2cb   :  { %v4628_v60 = vadd.f32 %v4600_v16, %v718_v59  ;;  %v740_v61 = vsel %vm345_vm1, %v4620_v55, -inf  ;;  %v4057_v16 = vld [vmem:[%s5402_s3 + $0x10] ss:$28 sps:$4 sm:$0xff]   ;;  %v3951_v52 = vpack.i.bf16 %v114_v48, %v113_v47  ;;  %v109_v54 = vunpack.c.l.bf16 %v105_v45 }
 0x2cc   :  { %v741_v63 = vmax.f32 %v4625_v58, %v740_v61  ;;  %v3946_v53 = vpack.i.bf16 %v111_v51, %v110_v50  ;;  %v112_v56 = vunpack.c.l.bf16 %v107_v40  ;;  %v4090_v61 = vld [vmem:[%s5402_s3 + $0x278] ss:$28 sps:$4 sm:$0xff]   ;;  %vm2469_vm5 = vcmask 392192   ;;  %s4240_s3 = smov 96  }
 0x2cd   :  { %v744_v0 = vsel %vm345_vm1, %v4628_v60, -inf  ;;  %vm2591_vm6 = vcmask 760832   ;;  %vm2659_vm7 = vcmask 236544  }
 0x2ce   :  { %742 = vmax.xlane.f32.xlu0 %v741_v63  ;;  %v745_v12 = vmax.f32 %v4632_v62, %v744_v0  ;;  %v3956_v59 = vpack.i.bf16 %v112_v56, %v109_v54 }
 0x2d0   :  { %746 = vmax.xlane.f32.xlu1 %v745_v12 }
 0x2e1   :  { %844 = vrot.lane.b32.xlu1 %v4641_v13, %s4230_s20 }
 0x2e4   :  { %842 = vrot.lane.b32.xlu0 %v4646_v14, %s4230_s20 }
 0x2e5   :  { %1004 = vrot.lane.b32.xlu1 %v4057_v16, %s4231_s29 }
 0x2e8   :  { %1002 = vrot.lane.b32.xlu0 %v4055_v4, %s4231_s29 }
 0x2e9   :  { %1008 = vrot.lane.b32.xlu1 %v4060_v21, %s4231_s29 }
 0x2ec   :  { %1006 = vrot.lane.b32.xlu0 %v4058_v22, %s4231_s29 }
 0x2ed   :  { %1012 = vrot.lane.b32.xlu1 %v4063_v23, %s4231_s29 }
 0x2f0   :  { %1010 = vrot.lane.b32.xlu0 %v4061_v24, %s4231_s29 }
 0x2f1   :  { %1016 = vrot.lane.b32.xlu1 %v4066_v25, %s4231_s29 }
 0x2f4   :  { %1014 = vrot.lane.b32.xlu0 %v4064_v26, %s4231_s29 }
 0x2f5   :  { %1020 = vrot.lane.b32.xlu1 %v4069_v27, %s4231_s29 }
 0x2f8   :  { %1018 = vrot.lane.b32.xlu0 %v4067_v28, %s4231_s29 }
 0x2f9   :  { %1024 = vrot.lane.b32.xlu1 %v4072_v29, %s4231_s29 }
 0x2fc   :  { %1022 = vrot.lane.b32.xlu0 %v4070_v30, %s4231_s29 }
 0x2fd   :  { %1028 = vrot.lane.b32.xlu1 %v4075_v31, %s4231_s29 }
 0x300   :  { %1026 = vrot.lane.b32.xlu0 %v4073_v32, %s4231_s29 }
 0x301   :  { %1032 = vrot.lane.b32.xlu1 %v4078_v34, %s4231_s29 }
 0x304   :  { %1030 = vrot.lane.b32.xlu0 %v4076_v36, %s4231_s29 }
 0x305   :  { %1036 = vrot.lane.b32.xlu1 %v4081_v37, %s4231_s29 }
 0x308   :  { %1034 = vrot.lane.b32.xlu0 %v4079_v38, %s4231_s29 }
 0x309   :  { %1040 = vrot.lane.b32.xlu1 %v4084_v39, %s4231_s29 }
 0x30c   :  { %1038 = vrot.lane.b32.xlu0 %v4082_v43, %s4231_s29 }
 0x30d   :  { %1044 = vrot.lane.b32.xlu1 %v4087_v44, %s4231_s29 }
 0x310   :  { %1042 = vrot.lane.b32.xlu0 %v4085_v49, %s4231_s29 }
 0x311   :  { %3952 = vrot.lane.b32.xlu1 %v3951_v52, %s4232_s12 }
 0x314   :  { %3947 = vrot.lane.b32.xlu0 %v3946_v53, %s4232_s12 }
 0x315   :  { %1046 = vrot.lane.b32.xlu1 %v4088_v57, %s4231_s29 }
 0x318   :  { %3957 = vrot.lane.b32.xlu0 %v3956_v59, %s4232_s12 }
 0x31c   :  { %1048 = vrot.lane.b32.xlu0 %v4090_v61, %s4231_s29 }
 0x35b   :  { %v743_v63 = vpop.xlane.xlu0 %742 }
 0x35c   :  { %v748_v0 = vsub.f32 %v4625_v58, %v743_v63  ;;  %v749_v12 = vsub.f32 %v4620_v55, %v743_v63 }
 0x35d   :  { %v747_v16 = vpop.xlane.xlu1 %746 }
 0x35e   :  { %v752_v4 = vmul.f32 1.442695, %v748_v0  ;;  %v754_v21 = vmul.f32 1.442695, %v749_v12  ;;  %v750_v22 = vsub.f32 %v4632_v62, %v747_v16  ;;  %v751_v23 = vsub.f32 %v4628_v60, %v747_v16 }
 0x35f   :  { %v843_v24 = vpop.permute.xlu0 %842 }
 0x360   :  { %4162 = vpow2.f32 %v752_v4  ;;  %v756_v25 = vmul.f32 1.442695, %v750_v22  ;;  %v758_v26 = vmul.f32 1.442695, %v751_v23  ;;  %882 = vmatpush1.bf16.msra.mxu1 %v843_v24 }
 0x361   :  { %4164 = vpow2.f32 %v754_v21  ;;  %v845_v27 = vpop.permute.xlu1 %844  ;;  %883 = vmatprep.subr.bf16.mxu1 %v4225_v2 }
 0x362   :  { %4166 = vpow2.f32 %v756_v25 }
 0x363   :  { %4168 = vpow2.f32 %v758_v26  ;;  %v1003_v58 = vpop.permute.xlu0 %1002 }
 0x364   :  { %884 = vmatpush1.bf16.msra.mxu1 %v845_v27 }
 0x365   :  { %v1005_v55 = vpop.permute.xlu1 %1004 }
 0x366   :  { %v1051_v28 = vsel %vm1050_vm8, %v1003_v58, %v1005_v55  ;;  %v1088_v62 = vmul.bf16 %v1005_v55, %v4432_v17 }
 0x367   :  { %v1087_v60 = vmul.bf16 %v1051_v28, %v4430_v15  ;;  %v1007_v29 = vpop.permute.xlu0 %1006 }
 0x368   :  { %1111 = vmatprep.subr.bf16.mxu0 %v1088_v62 }
 0x369   :  { %v1009_v30 = vpop.permute.xlu1 %1008  ;;  %1112 = vmatpush1.bf16.msra.mxu0 %v1087_v60 }
 0x36a   :  { %v4163_v31 = vpop.eup %4162  ;;  %v1052_v32 = vsel %vm1050_vm8, %v1007_v29, %v1009_v30  ;;  %v1090_v34 = vmul.bf16 %v1009_v30, %v4432_v17 }
 0x36b   :  { %v4165_v36 = vpop.eup %4164  ;;  %v1089_v37 = vmul.bf16 %v1052_v32, %v4430_v15  ;;  %v1011_v38 = vpop.permute.xlu0 %1010 }
 0x36c   :  { %v4167_v39 = vpop.eup %4166  ;;  %1113 = vmatprep.subr.bf16.mxu0 %v1090_v34 }
 0x36d   :  { %v4169_v40 = vpop.eup %4168  ;;  %v1013_v42 = vpop.permute.xlu1 %1012  ;;  %1114 = vmatpush1.bf16.msra.mxu0 %v1089_v37  ;;  %v4771_v43 = vpack.c.bf16 %v4167_v39, %v4163_v31 }
 0x36e   :  { %v1053_v44 = vsel %vm1050_vm8, %v1011_v38, %v1013_v42  ;;  %v1092_v45 = vmul.bf16 %v1013_v42, %v4432_v17  ;;  %v761_v46 = vpack.c.bf16 %v4169_v40, %v4165_v36 }
 0x36f   :  { %v1091_v47 = vmul.bf16 %v1053_v44, %v4430_v15  ;;  %v1015_v48 = vpop.permute.xlu0 %1014 }
 0x370   :  { %3626 = vmatprep.mubr.msk.bf16.mxu1 %vm345_vm1, %v761_v46  ;;  %3651 = vmatprep.mubr.msk.bf16.mxu0 %vm345_vm1, %v761_v46 }
 0x371   :  { %894 = vmatmul.mubr.bf16.vlgmr.msra.gmra.mrb[8].mxu1 %v4771_v43  ;;  %1115 = vmatprep.subr.bf16.mxu0 %v1092_v45  ;;  %v1017_v49 = vpop.permute.xlu1 %1016 }
 0x372   :  { %v1054_v50 = vsel %vm1050_vm8, %v1015_v48, %v1017_v49  ;;  %v1094_v51 = vmul.bf16 %v1017_v49, %v4432_v17  ;;  %1116 = vmatpush1.bf16.msra.mxu0 %v1091_v47  ;;  %1255 = vmatprep.mubr.f32.mxu1 %v4228_v18 }
 0x373   :  { %v1093_v52 = vmul.bf16 %v1054_v50, %v4430_v15  ;;  %v1019_v53 = vpop.permute.xlu0 %1018 }
 0x374   :  { %1117 = vmatprep.subr.bf16.mxu0 %v1094_v51 }
 0x375   :  { %v1021_v54 = vpop.permute.xlu1 %1020 }
 0x376   :  { %v1055_v56 = vsel %vm1050_vm8, %v1019_v53, %v1021_v54  ;;  %v1096_v57 = vmul.bf16 %v1021_v54, %v4432_v17  ;;  %1118 = vmatpush1.bf16.msra.mxu0 %v1093_v52 }
 0x377   :  { %v1095_v59 = vmul.bf16 %v1055_v56, %v4430_v15  ;;  %v1023_v61 = vpop.permute.xlu0 %1022 }
 0x378   :  { %1119 = vmatprep.subr.bf16.mxu0 %v1096_v57 }
 0x379   :  { %v1025_v63 = vpop.permute.xlu1 %1024 }
 0x37a   :  { %v1056_v0 = vsel %vm1050_vm8, %v1023_v61, %v1025_v63  ;;  %v1098_v12 = vmul.bf16 %v1025_v63, %v4432_v17  ;;  %1120 = vmatpush1.bf16.msra.mxu0 %v1095_v59 }
 0x37b   :  { %v1097_v16 = vmul.bf16 %v1056_v0, %v4430_v15  ;;  %v1027_v4 = vpop.permute.xlu0 %1026 }
 0x37c   :  { %1121 = vmatprep.subr.bf16.mxu0 %v1098_v12 }
 0x37d   :  { %v1029_v21 = vpop.permute.xlu1 %1028 }
 0x37e   :  { %v1057_v22 = vsel %vm1050_vm8, %v1027_v4, %v1029_v21  ;;  %v1100_v23 = vmul.bf16 %v1029_v21, %v4432_v17  ;;  %1122 = vmatpush1.bf16.msra.mxu0 %v1097_v16 }
 0x37f   :  { %v1099_v24 = vmul.bf16 %v1057_v22, %v4430_v15  ;;  %v1031_v25 = vpop.permute.xlu0 %1030 }
 0x380   :  { %1123 = vmatprep.subr.bf16.mxu0 %v1100_v23 }
 0x381   :  { %v1033_v26 = vpop.permute.xlu1 %1032 }
 0x382   :  { %v1058_v27 = vsel %vm1050_vm8, %v1031_v25, %v1033_v26  ;;  %v1102_v58 = vmul.bf16 %v1033_v26, %v4432_v17  ;;  %1124 = vmatpush1.bf16.msra.mxu0 %v1099_v24 }
 0x383   :  { %v1101_v55 = vmul.bf16 %v1058_v27, %v4430_v15  ;;  %v1035_v28 = vpop.permute.xlu0 %1034 }
 0x384   :  { %1125 = vmatprep.subr.bf16.mxu0 %v1102_v58 }
 0x385   :  { %v1037_v62 = vpop.permute.xlu1 %1036 }
 0x386   :  { %v1059_v60 = vsel %vm1050_vm8, %v1035_v28, %v1037_v62  ;;  %v1104_v29 = vmul.bf16 %v1037_v62, %v4432_v17  ;;  %1126 = vmatpush1.bf16.msra.mxu0 %v1101_v55  ;;  %v4811_v28 = vsub.s32 1, %v4612_v33  ;;  %v3559_v62 = vld [vmem:[%s5400_s1 + $0x3] ss:$8 sm:$0x3] }
 0x387   :  { %v1103_v30 = vmul.bf16 %v1059_v60, %v4430_v15  ;;  %v1039_v31 = vpop.permute.xlu0 %1038 }
 0x388   :  { %1127 = vmatprep.subr.bf16.mxu0 %v1104_v29 }
 0x389   :  { %v1041_v32 = vpop.permute.xlu1 %1040 }
 0x38a   :  { %v1060_v34 = vsel %vm1050_vm8, %v1039_v31, %v1041_v32  ;;  %v1106_v36 = vmul.bf16 %v1041_v32, %v4432_v17  ;;  %1128 = vmatpush1.bf16.msra.mxu0 %v1103_v30  ;;  %v1280_v31 = vrot.slane %v3559_v62, %v4811_v28 }
 0x38b   :  { %v1105_v37 = vmul.bf16 %v1060_v34, %v4430_v15  ;;  %v1043_v38 = vpop.permute.xlu0 %1042  ;;  %v1276_v34 = vrot.slane %v3559_v62, %v4615_v35 }
 0x38c   :  { %1129 = vmatprep.subr.bf16.mxu0 %v1106_v36 }
 0x38d   :  { %v1045_v39 = vpop.permute.xlu1 %1044 }
 0x38e   :  { %v1061_v40 = vsel %vm1050_vm8, %v1043_v38, %v1045_v39  ;;  %v1108_v42 = vmul.bf16 %v1045_v39, %v4432_v17  ;;  %1130 = vmatpush1.bf16.msra.mxu0 %v1105_v37 }
 0x38f   :  { %v1107_v44 = vmul.bf16 %v1061_v40, %v4430_v15  ;;  %v3948_v45 = vpop.permute.xlu0 %3947 }
 0x390   :  { %1131 = vmatprep.subr.bf16.mxu0 %v1108_v42  ;;  %v3950_v53 = vunpack.i.h.bf16 %v3948_v45  ;;  %v3949_v54 = vunpack.i.l.bf16 %v3948_v45 }
 0x391   :  { %v3953_v46 = vpop.permute.xlu1 %3952 }
 0x392   :  { %1132 = vmatpush1.bf16.msra.mxu0 %v1107_v44  ;;  %v3955_v56 = vunpack.i.h.bf16 %v3953_v46  ;;  %v3954_v57 = vunpack.i.l.bf16 %v3953_v46  ;;  %v1174_v63 = vsel %vm1172_vm9, %v3949_v54, %v3950_v53 }
 0x393   :  { %v3958_v47 = vpop.permute.xlu0 %3957 }
 0x394   :  { %v3960_v59 = vunpack.i.h.bf16 %v3958_v47  ;;  %v3959_v61 = vunpack.i.l.bf16 %v3958_v47  ;;  %v1176_v0 = vsel %vm1172_vm9, %v3954_v57, %v3955_v56 }
 0x395   :  { %v1047_v48 = vpop.permute.xlu1 %1046  ;;  %v3881_v4 = vpack.c.bf16 %v1176_v0, %v1174_v63 }
 0x396   :  { %v1175_v12 = vsel %vm1172_vm9, %v3960_v59, %v3954_v57  ;;  %v1173_v16 = vsel %vm1172_vm9, %v3959_v61, %v3949_v54  ;;  %vm2662_vm9 = vcmask 23552  }
 0x397   :  { %v1049_v49 = vpop.permute.xlu0 %1048  ;;  %v3884_v21 = vpack.c.bf16 %v1175_v12, %v1173_v16  ;;  %3883 = vmatprep.subr.msk.bf16.mxu1 %vm3882_vm12, %v3881_v4 }
 0x398   :  { %v1062_v50 = vsel %vm1050_vm8, %v1047_v48, %v1049_v49  ;;  %v1110_v51 = vmul.bf16 %v1049_v49, %v4432_v17  ;;  %vm2669_vm8 = vcmask 1042432  }
 0x399   :  { %v1109_v52 = vmul.bf16 %v1062_v50, %v4430_v15  ;;  %3886 = vmatpush1.bf16.msk.msra.mxu1 %vm3882_vm12, %v3884_v21 }
 0x39a   :  { %1133 = vmatprep.subr.bf16.mxu0 %v1110_v51 }
 0x39b   :  { %1134 = vmatpush1.bf16.msra.mxu0 %v1109_v52 }
 0x39e   :  { %1144 = vmatmul.mubr.bf16.vlgmr.msra.gmra.mrb[8].mxu0 %v4771_v43 }
 0x39f   :  { %3785 = vmatprep.mubr.msk.f32.mxu0 %vm4235_vm14, %v4228_v18 }
 0x444   :  { %v895_v15 = vpop.f32.mrb[8].mxu1 }
 0x445   :  { %4170 = vrcp.f32 %v895_v15  ;;  %v897_v17 = vpop.f32.mrb[9].mxu1 }
 0x446   :  { %v898_v43 = vpop.f32.mrb[10].mxu1 }
 0x447   :  { %v900_v22 = vpop.f32.mrb[11].mxu1  ;;  %4172 = vrcp.f32 %v898_v43 }
 0x44f   :  { %v4171_v23 = vpop.eup %4170 }
 0x450   :  { %3654 = vmatmul.mubr.msk.f32.vlgmr.msra.gmra.mrb[12].mxu1 %vm1179_vm13, %v4171_v23 }
 0x451   :  { %1261 = vmatprep.mubr.f32.mxu1 %v4228_v18  ;;  %v4173_v24 = vpop.eup %4172 }
 0x454   :  { %3655 = vmatmul.mubr.msk.f32.gmra.mrb[14].mxu1 %vm1179_vm13, %v4173_v24 }
 0x455   :  { %1351 = vmatprep.mubr.f32.mxu1 %v4228_v18 }
 0x471   :  { %v1145_v25 = vpop.f32.mrb[8].mxu0 }
 0x472   :  { %v1147_v26 = vpop.f32.mrb[9].mxu0 }
 0x473   :  { %v1149_v27 = vpop.f32.mrb[10].mxu0 }
 0x474   :  { %v1151_v58 = vpop.f32.mrb[11].mxu0 }
 0x523   :  { %v1257_v55 = vpop.f32.mrb[12].mxu1 }
 0x524   :  { %v1268_v60 = vmul.f32 %v1257_v55, %v1145_v25  ;;  %v1259_v29 = vpop.f32.mrb[13].mxu1 }
 0x525   :  { %v1269_v30 = vmul.f32 %v1259_v29, %v1147_v26 }
 0x526   :  { %v1283_v33 = vadd.f32 %v1276_v34, %v1268_v60 }
 0x527   :  { %v1263_v32 = vpop.f32.mrb[14].mxu1  ;;  %v1284_v40 = vadd.f32 %v1280_v31, %v1269_v30 }
 0x528   :  { %v1270_v36 = vmul.f32 %v1263_v32, %v1149_v27  ;;  %v1265_v37 = vpop.f32.mrb[15].mxu1  ;;  %v1499_v32 = vld [vmem:[%s5400_s1 + $0x6] ss:$0 sm:$0xff] }
 0x529   :  { %v1271_v38 = vmul.f32 %v1265_v37, %v1151_v58 }
 0x52a   :  { %v1285_v39 = vadd.f32 %v1276_v34, %v1270_v36 }
 0x52b   :  { %v1286_v42 = vadd.f32 %v1280_v31, %v1271_v38  ;;  %v4234_v31 = vmov 0.0|0.0  }
 0x52c   :  { %v3889_v45 = vpack.c.bf16 %v1285_v39, %v1283_v33  ;;  %3895 = vmatprep.subr.bf16.mxu0 %v4234_v31 }
 0x52d   :  { %v3887_v44 = vpack.c.bf16 %v1286_v42, %v1284_v40 }
 0x52f   :  { %3888 = vmatprep.subr.bf16.mxu1 %v3887_v44 }
 0x530   :  { %3890 = vmatpush1.bf16.msra.mxu1 %v3889_v45 }
 0x533   :  { %3656 = vmatmul.mubr.msk.f32.vlgmr.msra.gmra.mrb[16].mxu1 %vm152_vm0, %v4473_v41 }
 0x534   :  { %1438 = vmatprep.mubr.f32.mxu1 %v4228_v18 }
 0x606   :  { %v1353_v46 = vpop.f32.mrb[16].mxu1 }
 0x607   :  { %v1361_v47 = vrot.slane %v1353_v46, %v4615_v35  ;;  %v1355_v48 = vpop.f32.mrb[17].mxu1 }
 0x608   :  { %v1365_v49 = vrot.slane %v1355_v48, %v4615_v35 }
 0x609   :  { %v1366_v50 = vsub.f32 %v1283_v33, %v1361_v47  ;;  %v1368_v51 = vsub.f32 %v1285_v39, %v1361_v47  ;;  %v4091_v33 = vld [vmem:[%s5401_s2 + $0x4] ss:$16 sps:$4 sm:$0xff]  }
 0x60a   :  { %v1367_v52 = vsub.f32 %v1284_v40, %v1365_v49  ;;  %v1369_v53 = vsub.f32 %v1286_v42, %v1365_v49  ;;  %1727 = vrot.lane.b32.xlu1 %v4091_v33, %s4226_s30  ;;  %s4238_s30 = smov 80  }
 0x60b   :  { %v1370_v54 = vmul.f32 %v1366_v50, %v1366_v50  ;;  %v1372_v56 = vmul.f32 %v1368_v51, %v1368_v51 }
 0x60c   :  { %v1371_v57 = vmul.f32 %v1367_v52, %v1367_v52  ;;  %v1373_v59 = vmul.f32 %v1369_v53, %v1369_v53 }
 0x60d   :  { %v3893_v63 = vpack.c.bf16 %v1372_v56, %v1370_v54  ;;  %v4196_v54 = vld [vmem:[%s5399_s0] sm:$0xff]  ;;  %v4197_v56 = vld [vmem:[%s5399_s0 + $0x28] sm:$0xff] }
 0x60e   :  { %v3891_v61 = vpack.c.bf16 %v1373_v59, %v1371_v57 }
 0x610   :  { %3892 = vmatprep.subr.bf16.mxu1 %v3891_v61 }
 0x611   :  { %3894 = vmatpush1.bf16.msra.mxu1 %v3893_v63 }
 0x612   :  { %1515 = vmatprep.subr.bf16.mxu1 %v4225_v2 }
 0x614   :  { %3657 = vmatmul.mubr.msk.f32.vlgmr.msra.gmra.mrb[18].mxu1 %vm152_vm0, %v4473_v41 }
 0x615   :  { %1516 = vmatpush1.bf16.msra.mxu1 %v4449_v19 }
 0x616   :  { %1517 = vmatprep.subr.bf16.mxu1 %v4225_v2 }
 0x619   :  { %1518 = vmatpush1.bf16.msra.mxu1 %v4454_v20 }
 0x61a   :  { %1519 = vmatprep.subr.bf16.mxu1 %v4225_v2 }
 0x61d   :  { %1520 = vmatpush1.bf16.msra.mxu1 %v4463_v3 }
 0x61e   :  { %1521 = vmatprep.subr.bf16.mxu1 %v4225_v2 }
 0x621   :  { %1522 = vmatpush1.bf16.msra.mxu1 %v4552_v1 }
 0x622   :  { %1523 = vmatprep.subr.bf16.mxu1 %v4225_v2 }
 0x625   :  { %1524 = vmatpush1.bf16.msra.mxu1 %v4559_v6  ;;  %v3658_v6 = vld [vmem:[%s5400_s1 + $0x4] ss:$8 sm:$0x3] }
 0x626   :  { %1525 = vmatprep.subr.bf16.mxu1 %v4225_v2 }
 0x629   :  { %1526 = vmatpush1.bf16.msra.mxu1 %v4564_v7 }
 0x62a   :  { %1527 = vmatprep.subr.bf16.mxu1 %v4225_v2 }
 0x62d   :  { %1528 = vmatpush1.bf16.msra.mxu1 %v4571_v8  ;;  %v3659_v8 = vld [vmem:[%s5400_s1 + $0x5] ss:$8 sm:$0x3] }
 0x62e   :  { %1529 = vmatprep.subr.bf16.mxu1 %v4225_v2  ;;  %v1482_v16 = vrot.slane %v3659_v8, %v4615_v35  ;;  %v1486_v15 = vrot.slane %v3659_v8, %v4811_v28 }
 0x631   :  { %1530 = vmatpush1.bf16.msra.mxu1 %v4578_v9 }
 0x632   :  { %1531 = vmatprep.subr.bf16.mxu1 %v4225_v2 }
 0x635   :  { %1532 = vmatpush1.bf16.msra.mxu1 %v4585_v10 }
 0x636   :  { %1533 = vmatprep.subr.bf16.mxu1 %v4225_v2 }
 0x639   :  { %1534 = vmatpush1.bf16.msra.mxu1 %v4592_v11  ;;  %v1465_v11 = vrot.slane %v3658_v6, %v4615_v35 }
 0x63a   :  { %1535 = vmatprep.subr.bf16.mxu1 %v4225_v2 }
 0x63d   :  { %1536 = vmatpush1.bf16.msra.mxu1 %v4646_v14  ;;  %v1469_v14 = vrot.slane %v3658_v6, %v4811_v28 }
 0x63e   :  { %1537 = vmatprep.subr.bf16.mxu1 %v4225_v2 }
 0x641   :  { %1538 = vmatpush1.bf16.msra.mxu1 %v4641_v13 }
 0x642   :  { %3907 = vmatprep.subr.bf16.mxu1 %v4234_v31 }
 0x6e7   :  { %v1440_v19 = vpop.f32.mrb[18].mxu1 }
 0x6e8   :  { %v1441_v20 = vadd.f32 1e-05, %v1440_v19  ;;  %v1442_v3 = vpop.f32.mrb[19].mxu1  ;;  %v1711_v19 = vld [vmem:[%s5400_s1 + $0x7] ss:$0 sm:$0xff] }
 0x6e9   :  { %v1443_v1 = vadd.f32 1e-05, %v1442_v3 }
 0x6ea   :  { %4174 = vrsqrt.f32 %v1441_v20 }
 0x6eb   :  { %4176 = vrsqrt.f32 %v1443_v1  ;;  %v1714_v1 = vld [vmem:[%s5400_s1 + $0x10] ss:$0 sm:$0xff] }
 0x6f4   :  { %v4175_v7 = vpop.eup %4174 }
 0x6f5   :  { %v4177_v9 = vpop.eup %4176  ;;  %v1450_v10 = vrot.slane %v4175_v7, %v4615_v35 }
 0x6f6   :  { %v1454_v13 = vrot.slane %v4177_v9, %v4615_v35 }
 0x6f7   :  { %v1455_v0 = vmul.f32 %v1450_v10, %v1366_v50  ;;  %v1457_v12 = vmul.f32 %v1450_v10, %v1368_v51 }
 0x6f8   :  { %v1456_v4 = vmul.f32 %v1454_v13, %v1367_v52  ;;  %v1458_v21 = vmul.f32 %v1454_v13, %v1369_v53  ;;  %v1728_v52 = vpop.permute.xlu1 %1727  ;;  %v4236_v53 = vmov 32  }
 0x6f9   :  { %v1472_v17 = vmul.f32 %v1465_v11, %v1455_v0  ;;  %v1474_v43 = vmul.f32 %v1465_v11, %v1457_v12  ;;  %3961 = vset.pattern.permute.xlu0 %v4236_v53  ;;  %3962 = vset.pattern.permute.xlu1 %v4236_v53  ;;  %v4971_v53 = vld [vmem:[%s5403_s4 + $0xa0] ss:$20 sps:$4 sm:$0xff]  }
 0x6fa   :  { %v1473_v22 = vmul.f32 %v1469_v14, %v1456_v4  ;;  %v1475_v23 = vmul.f32 %v1469_v14, %v1458_v21  ;;  %1775 = vperm.xlu0 %3961, %v4196_v54   ;;  %1779 = vperm.xlu1 %3962, %v4197_v56   ;;  %v4976_v54 = vld [vmem:[%s5403_s4 + $0xc8] ss:$20 sps:$4 sm:$0xff]   ;;  %v4983_v56 = vld [vmem:[%s5403_s4 + $0xf0] ss:$20 sps:$4 sm:$0xff]  }
 0x6fb   :  { %v1489_v24 = vadd.f32 %v1482_v16, %v1472_v17  ;;  %v1491_v25 = vadd.f32 %v1482_v16, %v1474_v43 }
 0x6fc   :  { %v1490_v26 = vadd.f32 %v1486_v15, %v1473_v22  ;;  %v1492_v27 = vadd.f32 %v1486_v15, %v1475_v23  ;;  %v1834_v23 = vld [vmem:[%s5400_s1 + $0x11] ss:$0 sm:$0xff] }
 0x6fd   :  { %v1493_v58 = vmax.f32 %v1489_v24, 0.0  ;;  %v1495_v55 = vmax.f32 %v1491_v25, 0.0 }
 0x6fe   :  { %v1494_v62 = vmax.f32 %v1490_v26, 0.0  ;;  %v1496_v60 = vmax.f32 %v1492_v27, 0.0  ;;  %1786 = vrot.lane.b32.xlu1 %v4293_v5, %s4230_s20  ;;  %s4237_s20 = smov 32  }
 0x6ff   :  { %v1497_v30 = vpack.c.bf16 %v1495_v55, %v1493_v58  ;;  %2001 = vrot.lane.b32.xlu0 %v4091_v33, %s4237_s20 }
 0x700   :  { %v1498_v29 = vpack.c.bf16 %v1496_v60, %v1494_v62 }
 0x702   :  { %3660 = vmatprep.mubr.msk.bf16.mxu1 %vm345_vm1, %v1498_v29 }
 0x703   :  { %1548 = vmatmul.mubr.bf16.vlgmr.msra.gmra.mrb[20].mxu1 %v1497_v30 }
 0x704   :  { %3831 = vmatprep.mubr.msk.f32.mxu1 %vm4235_vm14, %v4228_v18 }
 0x779   :  { %v1776_v13 = vpop.permute.xlu0 %1775  ;;  %v1780_v0 = vpop.permute.xlu1 %1779 }
 0x77d   :  { %v1787_v43 = vpop.permute.xlu1 %1786 }
 0x7d6   :  { %v1549_v34 = vpop.f32.mrb[20].mxu1 }
 0x7d7   :  { %v1551_v36 = vpop.f32.mrb[21].mxu1  ;;  %v1550_v38 = vadd.f32 %v1549_v34, %v1499_v32 }
 0x7d8   :  { %v1552_v37 = vpop.f32.mrb[22].mxu1 }
 0x7d9   :  { %v1553_v39 = vadd.f32 %v1552_v37, %v1499_v32  ;;  %v1554_v40 = vpop.f32.mrb[23].mxu1  ;;  %v4917_v32 = vld [vmem:[%s5400_s1] ss:$0 sm:$0xff] }
 0x7db   :  { %v3896_v42 = vpack.c.bf16 %v1553_v39, %v1550_v38 }
 0x7dd   :  { %3897 = vmatpush3.bf16.msra.mxu0 %v3896_v42 }
 0x7de   :  { %3898 = vmatprep.subr.bf16.mxu0 %v4234_v31 }
 0x7e0   :  { %3786 = vmatmul.mubr.msk.f32.vlgmr.msra.gmra.mrb[2].mxu0 %vm152_vm0, %v4473_v41 }
 0x7e1   :  { %3792 = vmatprep.mubr.msk.f32.mxu0 %vm4235_vm14, %v4228_v18 }
 0x8b3   :  { %v1622_v44 = vpop.f32.mrb[2].mxu0 }
 0x8b4   :  { %v1629_v45 = vrot.slane %v1622_v44, %v4615_v35  ;;  %v3787_v46 = vpop.f32.mrb[3].mxu0  ;;  %v2002_v44 = vpop.permute.xlu0 %2001 }
 0x8b5   :  { %v4092_v46 = vld [vmem:[%s5401_s2 + $0x8] ss:$16 sps:$4 sm:$0xff]  }
 0x8b6   :  { %v1630_v47 = vsub.f32 %v1550_v38, %v1629_v45  ;;  %v1631_v48 = vsub.f32 %v1553_v39, %v1629_v45  ;;  %v4094_v45 = vld [vmem:[%s5401_s2 + $0xc] ss:$16 sps:$4 sm:$0xff]  }
 0x8b8   :  { %v1632_v49 = vmul.f32 %v1630_v47, %v1630_v47  ;;  %v1633_v50 = vmul.f32 %v1631_v48, %v1631_v48 }
 0x8ba   :  { %v3899_v51 = vpack.c.bf16 %v1633_v50, %v1632_v49  ;;  %v4947_v49 = vld [vmem:[%s5403_s4] ss:$20 sps:$4 sm:$0xff]   ;;  %v4952_v50 = vld [vmem:[%s5403_s4 + $0x28] ss:$20 sps:$4 sm:$0xff]  }
 0x8bb   :  { %2228 = vrot.lane.b32.xlu1 %v4947_v49, %s4238_s30  ;;  %2230 = vrot.lane.b32.xlu0 %v4952_v50, %s4238_s30 }
 0x8bc   :  { %3900 = vmatpush3.bf16.msra.mxu0 %v3899_v51  ;;  %v4959_v51 = vld [vmem:[%s5403_s4 + $0x50] ss:$20 sps:$4 sm:$0xff]  }
 0x8bd   :  { %3795 = vmatprep.subr.bf16.mxu0 %v4228_v18 }
 0x8bf   :  { %3793 = vmatmul.mubr.msk.f32.vlgmr.msra.gmra.mrb[12].mxu0 %vm152_vm0, %v4473_v41  ;;  %2232 = vrot.lane.b32.xlu1 %v4959_v51, %s4238_s30 }
 0x8c0   :  { %3797 = vmatprep.mubr.msk.bf16.mxu0 %vm4235_vm14, %v4228_v18  ;;  %3796 = vmatpush3.bf16.msra.mxu0 %v1728_v52  ;;  %v4964_v52 = vld [vmem:[%s5403_s4 + $0x78] ss:$20 sps:$4 sm:$0xff]  }
 0x8c1   :  { %3801 = vmatprep.subr.bf16.mxu0 %v4228_v18  ;;  %2234 = vrot.lane.b32.xlu0 %v4964_v52, %s4238_s30 }
 0x8c3   :  { %2236 = vrot.lane.b32.xlu1 %v4971_v53, %s4238_s30 }
 0x8c5   :  { %2238 = vrot.lane.b32.xlu0 %v4976_v54, %s4238_s30 }
 0x8c7   :  { %2240 = vrot.lane.b32.xlu1 %v4983_v56, %s4238_s30 }
 0x992   :  { %v1700_v41 = vpop.f32.mrb[12].mxu0 }
 0x993   :  { %v1701_v57 = vadd.f32 1e-05, %v1700_v41  ;;  %v3794_v59 = vpop.f32.mrb[13].mxu0  ;;  %v4988_v41 = vld [vmem:[%s5403_s4 + $0x118] ss:$20 sps:$4 sm:$0xff]  }
 0x994   :  { %2242 = vrot.lane.b32.xlu0 %v4988_v41, %s4238_s30  ;;  %v5000_v59 = vld [vmem:[%s5403_s4 + $0x168] ss:$20 sps:$4 sm:$0xff]  }
 0x995   :  { %4178 = vrsqrt.f32 %v1701_v57  ;;  %v4995_v57 = vld [vmem:[%s5403_s4 + $0x140] ss:$20 sps:$4 sm:$0xff]  }
 0x996   :  { %2244 = vrot.lane.b32.xlu1 %v4995_v57, %s4238_s30 }
 0x998   :  { %2246 = vrot.lane.b32.xlu0 %v5000_v59, %s4238_s30 }
 0x99f   :  { %v4179_v61 = vpop.eup %4178 }
 0x9a0   :  { %v1708_v63 = vrot.slane %v4179_v61, %v4615_v35  ;;  %v5007_v61 = vld [vmem:[%s5403_s4 + $0x190] ss:$20 sps:$4 sm:$0xff]  }
 0x9a1   :  { %2248 = vrot.lane.b32.xlu1 %v5007_v61, %s4238_s30 }
 0x9a2   :  { %v1709_v20 = vmul.f32 %v1708_v63, %v1630_v47  ;;  %v1710_v3 = vmul.f32 %v1708_v63, %v1631_v48  ;;  %v4097_v47 = vld [vmem:[%s5401_s2 + $0x2c] ss:$16 sps:$4 sm:$0xff]   ;;  %v4095_v48 = vld [vmem:[%s5401_s2 + $0x28] ss:$16 sps:$4 sm:$0xff]  }
 0x9a3   :  { %v5012_v63 = vld [vmem:[%s5403_s4 + $0x1b8] ss:$20 sps:$4 sm:$0xff]  }
 0x9a4   :  { %v1712_v6 = vmul.f32 %v1711_v19, %v1709_v20  ;;  %v1713_v7 = vmul.f32 %v1711_v19, %v1710_v3  ;;  %2250 = vrot.lane.b32.xlu0 %v5012_v63, %s4238_s30 }
 0x9a6   :  { %v1715_v5 = vadd.f32 %v1714_v1, %v1712_v6  ;;  %v1716_v8 = vadd.f32 %v1714_v1, %v1713_v7 }
 0x9a8   :  { %v1717_v9 = vmax.f32 %v1715_v5, 0.0  ;;  %v1718_v10 = vmax.f32 %v1716_v8, 0.0 }
 0x9aa   :  { %v1719_v11 = vpack.c.bf16 %v1718_v10, %v1717_v9  ;;  %v1994_v10 = vld [vmem:[%s5400_s1 + $0x12] ss:$0 sm:$0xff] }
 0x9ac   :  { %3798 = vmatmul.mubr.msk.bf16.vlgmr.msra.gmra.mrb[16].mxu0 %vm152_vm0, %v1719_v11 }
 0x9ad   :  { %3803 = vmatprep.mubr.msk.bf16.mxu0 %vm4235_vm14, %v4228_v18 }
 0xa7f   :  { %v1767_v14 = vpop.f32.mrb[16].mxu0 }
 0xa80   :  { %v3799_v12 = vpop.f32.mrb[17].mxu0  ;;  %v1782_v4 = vmul.f32 %v1776_v13, %v1767_v14  ;;  %v1997_v14 = vld [vmem:[%s5400_s1 + $0x13] ss:$0 sm:$0xff] }
 0xa81   :  { %v1770_v16 = vpop.f32.mrb[18].mxu0 }
 0xa82   :  { %v1783_v21 = vmul.f32 %v1780_v0, %v1770_v16  ;;  %v3800_v15 = vpop.f32.mrb[19].mxu0 }
 0xa84   :  { %v1784_v17 = vpack.c.bf16 %v1783_v21, %v1782_v4 }
 0xa86   :  { %3802 = vmatpush3.bf16.msra.mxu0 %v1784_v17 }
 0xa87   :  { %3901 = vmatprep.subr.bf16.mxu0 %v4234_v31 }
 0xa89   :  { %3804 = vmatmul.mubr.msk.bf16.vlgmr.msra.gmra.mrb[20].mxu0 %vm152_vm0, %v1787_v43 }
 0xa8a   :  { %3811 = vmatprep.mubr.msk.f32.mxu0 %vm4235_vm14, %v4228_v18 }
 0xb5c   :  { %v1825_v22 = vpop.f32.mrb[20].mxu0 }
 0xb5d   :  { %v1832_v24 = vmul.f32 %v1825_v22, %v1776_v13  ;;  %v3805_v25 = vpop.f32.mrb[21].mxu0 }
 0xb5e   :  { %v1828_v26 = vpop.f32.mrb[22].mxu0  ;;  %v2231_v25 = vpop.permute.xlu0 %2230 }
 0xb5f   :  { %v1835_v27 = vadd.f32 %v1834_v23, %v1832_v24  ;;  %v1833_v58 = vmul.f32 %v1828_v26, %v1780_v0  ;;  %v3806_v55 = vpop.f32.mrb[23].mxu0  ;;  %v2000_v0 = vld [vmem:[%s5400_s1 + $0x14] ss:$0 sm:$0xff]  ;;  %v2229_v24 = vpop.permute.xlu1 %2228 }
 0xb61   :  { %v1836_v62 = vadd.f32 %v1834_v23, %v1833_v58  ;;  %v1837_v60 = vmax.f32 %v1835_v27, 0.0 }
 0xb62   :  { %v2235_v27 = vpop.permute.xlu0 %2234 }
 0xb63   :  { %v1838_v29 = vmax.f32 %v1836_v62, 0.0  ;;  %v2233_v26 = vpop.permute.xlu1 %2232 }
 0xb65   :  { %v3902_v30 = vpack.c.bf16 %v1838_v29, %v1837_v60 }
 0xb66   :  { %v2239_v55 = vpop.permute.xlu0 %2238 }
 0xb67   :  { %3903 = vmatpush3.bf16.msra.mxu0 %v3902_v30  ;;  %v2237_v58 = vpop.permute.xlu1 %2236 }
 0xb68   :  { %3904 = vmatprep.subr.bf16.mxu0 %v4234_v31 }
 0xb6a   :  { %3812 = vmatmul.mubr.msk.f32.vlgmr.msra.gmra.mrb[14].mxu0 %vm152_vm0, %v4917_v32 }
 0xb6b   :  { %3818 = vmatprep.mubr.msk.f32.mxu0 %vm4235_vm14, %v4228_v18  ;;  %v2241_v62 = vpop.permute.xlu1 %2240 }
 0xc3d   :  { %v1905_v34 = vpop.f32.mrb[14].mxu0 }
 0xc3e   :  { %v1912_v36 = vrot.slane %v1905_v34, %v4615_v35  ;;  %v3813_v37 = vpop.f32.mrb[15].mxu0 }
 0xc3f   :  { %v2075_v37 = vld [vmem:[%s5399_s0 + $0x18] sm:$0xff] }
 0xc40   :  { %v1913_v38 = vsub.f32 %v1837_v60, %v1912_v36  ;;  %v1914_v39 = vsub.f32 %v1838_v29, %v1912_v36  ;;  %v2243_v60 = vpop.permute.xlu0 %2242  ;;  %v2245_v29 = vpop.permute.xlu1 %2244  ;;  %2312 = vrot.lane.b32.xlu1 %v2075_v37, %s4239_s8 }
 0xc42   :  { %v1915_v40 = vmul.f32 %v1913_v38, %v1913_v38  ;;  %v1916_v42 = vmul.f32 %v1914_v39, %v1914_v39 }
 0xc44   :  { %v3905_v33 = vpack.c.bf16 %v1916_v42, %v1915_v40  ;;  %v2247_v30 = vpop.permute.xlu0 %2246  ;;  %v2249_v34 = vpop.permute.xlu1 %2248  ;;  %v2078_v40 = vld [vmem:[%s5399_s0 + $0x48] sm:$0xff]  ;;  %v4199_v42 = vld [vmem:[%s5399_s0 + $0x18] sm:$0xff] }
 0xc46   :  { %3906 = vmatpush3.bf16.msra.mxu0 %v3905_v33  ;;  %v4200_v33 = vld [vmem:[%s5399_s0 + $0x40] sm:$0xff] }
 0xc47   :  { %3821 = vmatprep.subr.bf16.mxu0 %v4228_v18 }
 0xc48   :  { %v2251_v36 = vpop.permute.xlu0 %2250 }
 0xc49   :  { %3819 = vmatmul.mubr.msk.f32.vlgmr.msra.gmra.mrb[24].mxu0 %vm152_vm0, %v4917_v32 }
 0xc4a   :  { %3822 = vmatpush3.bf16.msra.mxu0 %v2002_v44  ;;  %3823 = vmatprep.mubr.msk.bf16.mxu0 %vm4235_vm14, %v4228_v18 }
 0xc4b   :  { %2123 = vmatprep.subr.bf16.mxu0 %v4094_v45 }
 0xc4d   :  { %3824 = vmatmul.mubr.msk.bf16.vlgmr.msra.gmra.mrb[28].mxu0 %vm152_vm0, %v1719_v11 }
 0xc4e   :  { %2155 = vmatprep.mubr.bf16.mxu0 %v4225_v2  ;;  %2124 = vmatpush1.bf16.msra.mxu0 %v4092_v46 }
 0xc4f   :  { %2125 = vmatprep.subr.bf16.mxu0 %v4097_v47 }
 0xc52   :  { %2126 = vmatpush1.bf16.msra.mxu0 %v4095_v48 }
 0xc53   :  { %2267 = vmatprep.subr.bf16.mxu0 %v4225_v2 }
 0xd1c   :  { %v1983_v19 = vpop.f32.mrb[24].mxu0 }
 0xd1d   :  { %v1984_v20 = vadd.f32 1e-05, %v1983_v19  ;;  %v3820_v3 = vpop.f32.mrb[25].mxu0 }
 0xd1f   :  { %4180 = vrsqrt.f32 %v1984_v20  ;;  %v2313_v20 = vpop.permute.xlu1 %2312 }
 0xd20   :  { %v2038_v1 = vpop.f32.mrb[28].mxu0 }
 0xd21   :  { %v3825_v6 = vpop.f32.mrb[29].mxu0  ;;  %v2039_v21 = vadd.f32 %v2038_v1, %v2000_v0 }
 0xd22   :  { %v2041_v7 = vpop.f32.mrb[30].mxu0 }
 0xd23   :  { %v3826_v5 = vpop.f32.mrb[31].mxu0  ;;  %v2042_v17 = vadd.f32 %v2041_v7, %v2000_v0 }
 0xd29   :  { %v4181_v8 = vpop.eup %4180 }
 0xd2a   :  { %v1991_v9 = vrot.slane %v4181_v8, %v4615_v35 }
 0xd2c   :  { %v1992_v11 = vmul.f32 %v1991_v9, %v1913_v38  ;;  %v1993_v13 = vmul.f32 %v1991_v9, %v1914_v39  ;;  %v2076_v38 = vld [vmem:[%s5399_s0 + $0x20] sm:$0xff] }
 0xd2d   :  { %2314 = vrot.lane.b32.xlu0 %v2076_v38, %s4239_s8  ;;  %v2077_v39 = vld [vmem:[%s5399_s0 + $0x40] sm:$0xff] }
 0xd2e   :  { %v1995_v12 = vmul.f32 %v1994_v10, %v1992_v11  ;;  %v1996_v16 = vmul.f32 %v1994_v10, %v1993_v13  ;;  %2316 = vrot.lane.b32.xlu1 %v2077_v39, %s4239_s8 }
 0xd30   :  { %v1998_v4 = vadd.f32 %v1997_v14, %v1995_v12  ;;  %v1999_v15 = vadd.f32 %v1997_v14, %v1996_v16 }
 0xd31   :  { %2318 = vrot.lane.b32.xlu0 %v2078_v40, %s4239_s8  ;;  %s4201_s8 = scalar_lea.vmem %s3552_s7, 32 }
 0xd32   :  { %v2045_v43 = vadd.f32 %v2039_v21, %v1998_v4  ;;  %v2046_v22 = vadd.f32 %v2042_v17, %v1999_v15  ;;  %2461 = vrot.lane.b32.xlu1 %v4199_v42, %s4229_s15  ;;  %p4202_p0 = scmp.ne.s32.totalorder %s3552_s7, %s4201_s8  ;;  %p4207_p2 = scmp.lt.s32.totalorder %s4201_s8, %s4201_s8 }
 0xd34   :  { %v2098_v23 = vpack.c.bf16 %v2046_v22, %v2045_v43  ;;  %p4208_p3 = por %p4207_p2, %p4206_p1 }
 0xd35   :  { %2463 = vrot.lane.b32.xlu0 %v4200_v33, %s4229_s15 }
 0xd36   :  { %3674 = vmatmul.mubr.msk.bf16.vlgmr.msra.gmra.mrb[32].mxu0 %vm2119_vm15, %v2098_v23  ;;  %v4110_v23 = vld [vmem:[%s5403_s4 + $0x2c] ss:$20 sps:$4 sm:$0xff]   ;;  %p4209_p4 = pnand %p4208_p3, %p4202_p0 }
 0xd37   :  { %2268 = vmatpush1.bf16.msra.mxu0 %v2229_v24  ;;  %v4112_v24 = vld [vmem:[%s5403_s4 + $0x54] ss:$20 sps:$4 sm:$0xff]  }
 0xd38   :  { %2269 = vmatprep.subr.bf16.mxu0 %v4225_v2 }
 0xd3b   :  { %2270 = vmatpush1.bf16.msra.mxu0 %v2231_v25  ;;  %v4111_v25 = vld [vmem:[%s5403_s4 + $0x4] ss:$20 sps:$4 sm:$0xff]  }
 0xd3c   :  { %2271 = vmatprep.subr.bf16.mxu0 %v4225_v2 }
 0xd3f   :  { %2272 = vmatpush1.bf16.msra.mxu0 %v2233_v26  ;;  %v4115_v26 = vld [vmem:[%s5403_s4 + $0x8] ss:$20 sps:$4 sm:$0xff]  }
 0xd40   :  { %2273 = vmatprep.subr.bf16.mxu0 %v4225_v2 }
 0xd43   :  { %2274 = vmatpush1.bf16.msra.mxu0 %v2235_v27  ;;  %v4113_v27 = vld [vmem:[%s5403_s4 + $0x4] ss:$20 sps:$4 sm:$0xff]  }
 0xd44   :  { %2275 = vmatprep.subr.bf16.mxu0 %v4225_v2 }
 0xd47   :  { %2276 = vmatpush1.bf16.msra.mxu0 %v2237_v58  ;;  %v4118_v58 = vld [vmem:[%s5403_s4 + $0x30] ss:$20 sps:$4 sm:$0xff]  }
 0xd48   :  { %2277 = vmatprep.subr.bf16.mxu0 %v4225_v2 }
 0xd4b   :  { %2278 = vmatpush1.bf16.msra.mxu0 %v2239_v55  ;;  %v4116_v55 = vld [vmem:[%s5403_s4 + $0x2c] ss:$20 sps:$4 sm:$0xff]  }
 0xd4c   :  { %2279 = vmatprep.subr.bf16.mxu0 %v4225_v2 }
 0xd4f   :  { %2280 = vmatpush1.bf16.msra.mxu0 %v2241_v62  ;;  %v4121_v62 = vld [vmem:[%s5403_s4 + $0x58] ss:$20 sps:$4 sm:$0xff]  }
 0xd50   :  { %2281 = vmatprep.subr.bf16.mxu0 %v4225_v2 }
 0xd53   :  { %2282 = vmatpush1.bf16.msra.mxu0 %v2243_v60  ;;  %v4119_v60 = vld [vmem:[%s5403_s4 + $0x54] ss:$20 sps:$4 sm:$0xff]  }
 0xd54   :  { %2283 = vmatprep.subr.bf16.mxu0 %v4225_v2 }
 0xd57   :  { %2284 = vmatpush1.bf16.msra.mxu0 %v2245_v29  ;;  %v2085_v29 = vld [vmem:[%s5403_s4 + $0x8] sm:$0x33] }
 0xd58   :  { %2285 = vmatprep.subr.bf16.mxu0 %v4225_v2  ;;  %v2087_v37 = vunpack.c.l.bf16 %v2085_v29 }
 0xd5b   :  { %2286 = vmatpush1.bf16.msra.mxu0 %v2247_v30  ;;  %v2086_v30 = vld [vmem:[%s5403_s4 + $0x10] sm:$0x3] }
 0xd5c   :  { %2287 = vmatprep.subr.bf16.mxu0 %v4225_v2 }
 0xd5f   :  { %2288 = vmatpush1.bf16.msra.mxu0 %v2249_v34  ;;  %v2088_v34 = vunpack.c.h.bf16 %v2085_v29 }
 0xd60   :  { %2289 = vmatprep.subr.bf16.mxu0 %v4225_v2 }
 0xd63   :  { %2290 = vmatpush1.bf16.msra.mxu0 %v2251_v36  ;;  %v2089_v36 = vunpack.c.l.bf16 %v2086_v30 }
 0xd64   :  { %3834 = vmatprep.subr.bf16.mxu0 %v4228_v18 }
 0xd65   :  { %v3963_v38 = vpack.i.bf16 %v2089_v36, %v2088_v34 }
 0xd9f   :  { %v2315_v3 = vpop.permute.xlu0 %2314 }
 0xda0   :  { %v2317_v1 = vpop.permute.xlu1 %2316  ;;  %v2321_v9 = vsel %vm2320_vm2, %v2313_v20, %v2315_v3 }
 0xda3   :  { %v2319_v6 = vpop.permute.xlu0 %2318 }
 0xda4   :  { %v2322_v5 = vsel %vm2320_vm2, %v2317_v1, %v2319_v6  ;;  %v2462_v12 = vpop.permute.xlu1 %2461 }
 0xda7   :  { %v2464_v4 = vpop.permute.xlu0 %2463 }
 0xe09   :  { %v2157_v44 = vpop.f32.mrb[32].mxu0 }
 0xe0a   :  { %v2159_v45 = vpop.f32.mrb[33].mxu0 }
 0xe0b   :  { %v2161_v46 = vpop.f32.mrb[34].mxu0 }
 0xe0c   :  { %v5059_v47 = vpack.c.bf16 %v2161_v46, %v2157_v44  ;;  %v2163_v48 = vpop.f32.mrb[35].mxu0 }
 0xe0d   :  { %v5061_v19 = vpack.c.bf16 %v2163_v48, %v2159_v45 }
 0xe0f   :  { %3687 = vmatprep.mubr.msk.bf16.mxu0 %vm345_vm1, %v5061_v19 }
 0xe10   :  { %2300 = vmatmul.mubr.bf16.vlgmr.msra.gmra.mrb[36].mxu0 %v5059_v47 }
 0xe11   :  { %3840 = vmatprep.mubr.msk.bf16.mxu0 %vm4235_vm14, %v4228_v18 }
 0xee3   :  { %v2301_v7 = vpop.f32.mrb[36].mxu0 }
 0xee4   :  { %v2303_v8 = vpop.f32.mrb[37].mxu0  ;;  %v2325_v11 = vmul.f32 %v2321_v9, %v2301_v7 }
 0xee5   :  { %v2304_v10 = vpop.f32.mrb[38].mxu0 }
 0xee6   :  { %v2326_v13 = vmul.f32 %v2322_v5, %v2304_v10  ;;  %v2306_v14 = vpop.f32.mrb[39].mxu0 }
 0xee8   :  { %v3908_v0 = vpack.c.bf16 %v2326_v13, %v2325_v11 }
 0xeea   :  { %3909 = vmatpush3.bf16.msra.mxu1 %v3908_v0 }
 0xeeb   :  { %2414 = vmatprep.subr.bf16.mxu1 %v4225_v2 }
 0xeed   :  { %3832 = vmatmul.mubr.msk.f32.vlgmr.msra.gmra.mrb[24].mxu1 %vm152_vm0, %v4917_v32 }
 0xeee   :  { %2415 = vmatpush1.bf16.msra.mxu1 %v4947_v49  ;;  %3689 = vmatprep.mubr.msk.bf16.mxu1 %vm345_vm1, %v5061_v19 }
 0xeef   :  { %2416 = vmatprep.subr.bf16.mxu1 %v4225_v2 }
 0xef2   :  { %2417 = vmatpush1.bf16.msra.mxu1 %v4952_v50 }
 0xef3   :  { %2418 = vmatprep.subr.bf16.mxu1 %v4225_v2 }
 0xef6   :  { %2419 = vmatpush1.bf16.msra.mxu1 %v4959_v51 }
 0xef7   :  { %2420 = vmatprep.subr.bf16.mxu1 %v4225_v2 }
 0xefa   :  { %2421 = vmatpush1.bf16.msra.mxu1 %v4964_v52 }
 0xefb   :  { %2422 = vmatprep.subr.bf16.mxu1 %v4225_v2 }
 0xefe   :  { %2423 = vmatpush1.bf16.msra.mxu1 %v4971_v53 }
 0xeff   :  { %2424 = vmatprep.subr.bf16.mxu1 %v4225_v2 }
 0xf02   :  { %2425 = vmatpush1.bf16.msra.mxu1 %v4976_v54 }
 0xf03   :  { %2426 = vmatprep.subr.bf16.mxu1 %v4225_v2 }
 0xf06   :  { %2427 = vmatpush1.bf16.msra.mxu1 %v4983_v56 }
 0xf07   :  { %2428 = vmatprep.subr.bf16.mxu1 %v4225_v2 }
 0xf0a   :  { %2429 = vmatpush1.bf16.msra.mxu1 %v4988_v41 }
 0xf0b   :  { %2430 = vmatprep.subr.bf16.mxu1 %v4225_v2 }
 0xf0e   :  { %2431 = vmatpush1.bf16.msra.mxu1 %v4995_v57 }
 0xf0f   :  { %2432 = vmatprep.subr.bf16.mxu1 %v4225_v2 }
 0xf12   :  { %2433 = vmatpush1.bf16.msra.mxu1 %v5000_v59 }
 0xf13   :  { %2434 = vmatprep.subr.bf16.mxu1 %v4225_v2 }
 0xf16   :  { %2435 = vmatpush1.bf16.msra.mxu1 %v5007_v61 }
 0xf17   :  { %2436 = vmatprep.subr.bf16.mxu1 %v4225_v2 }
 0xf1a   :  { %2437 = vmatpush1.bf16.msra.mxu1 %v5012_v63 }
 0xf1d   :  { %2447 = vmatmul.mubr.bf16.vlgmr.msra.gmra.mrb[28].mxu1 %v5059_v47 }
 0xf1e   :  { %2639 = vmatprep.mubr.bf16.mxu1 %v4225_v2 }
 0xfc0   :  { %v2393_v49 = vpop.f32.mrb[24].mxu1 }
 0xfc1   :  { %v3833_v50 = vpop.f32.mrb[25].mxu1  ;;  %v2397_v51 = vmul.f32 16.0, %v2393_v49 }
 0xfc3   :  { %v2401_v52 = vrot.slane %v2397_v51, %v4615_v35 }
 0xff0   :  { %v2448_v53 = vpop.f32.mrb[28].mxu1 }
 0xff1   :  { %v2449_v54 = vadd.f32 %v2448_v53, %v2401_v52  ;;  %v2450_v56 = vpop.f32.mrb[29].mxu1 }
 0xff2   :  { %v2451_v41 = vpop.f32.mrb[30].mxu1 }
 0xff3   :  { %v2457_v57 = vmul.f32 0.2, %v2449_v54  ;;  %v2452_v59 = vadd.f32 %v2451_v41, %v2401_v52  ;;  %v2453_v61 = vpop.f32.mrb[31].mxu1  ;;  %vm2455_vm3 = vcmp.ge.f32.partialorder %v2449_v54, 0.0 }
 0xff5   :  { %v2458_v16 = vmul.f32 0.2, %v2452_v59  ;;  %v2459_v63 = vsel %vm2455_vm3, %v2449_v54, %v2457_v57  ;;  %vm2456_vm4 = vcmp.ge.f32.partialorder %v2452_v59, 0.0 }
 0xff6   :  { %v2467_v21 = vadd.f32 %v2462_v12, %v2459_v63 }
 0xff7   :  { %v2460_v15 = vsel %vm2456_vm4, %v2452_v59, %v2458_v16 }
 0xff8   :  { %v2468_v17 = vadd.f32 %v2464_v4, %v2460_v15  ;;  %v2470_v43 = vsel %vm2469_vm5, %v2467_v21, -inf }
 0xff9   :  { %2471 = vmax.xlane.f32.xlu1 %v2470_v43 }
 0xffa   :  { %v2473_v22 = vsel %vm2469_vm5, %v2468_v17, -inf }
 0xffb   :  { %2474 = vmax.xlane.f32.xlu0 %v2473_v22 }
0x100a   :  { %2500 = vrot.lane.b32.xlu1 %v4110_v23, %s4240_s3 }
0x100e   :  { %2502 = vrot.lane.b32.xlu1 %v4112_v24, %s4240_s3  ;;  %v3669_v24 = vld [vmem:[%s5400_s1 + $0x15] ss:$8 sm:$0x3] }
0x1011   :  { %2498 = vrot.lane.b32.xlu0 %v4111_v25, %s4240_s3 }
0x1012   :  { %2581 = vrot.lane.b32.xlu1 %v4115_v26, %s4241_s26 }
0x1015   :  { %2579 = vrot.lane.b32.xlu0 %v4113_v27, %s4241_s26 }
0x1016   :  { %2585 = vrot.lane.b32.xlu1 %v4118_v58, %s4241_s26  ;;  %v2763_v58 = vrot.slane %v3669_v24, %v4811_v28 }
0x1019   :  { %2583 = vrot.lane.b32.xlu0 %v4116_v55, %s4241_s26 }
0x101a   :  { %2589 = vrot.lane.b32.xlu1 %v4121_v62, %s4241_s26  ;;  %v2759_v62 = vrot.slane %v3669_v24, %v4615_v35 }
0x101d   :  { %2587 = vrot.lane.b32.xlu0 %v4119_v60, %s4241_s26 }
0x101e   :  { %2653 = vrot.lane.b32.xlu1 %v2087_v37, %s4242_s14 }
0x1021   :  { %3964 = vrot.lane.b32.xlu0 %v3963_v38, %s4242_s14 }
0x1086   :  { %v2472_v39 = vpop.xlane.xlu1 %2471 }
0x1087   :  { %v2476_v40 = vsub.f32 %v2467_v21, %v2472_v39 }
0x1088   :  { %v2475_v42 = vpop.xlane.xlu0 %2474 }
0x1089   :  { %v2478_v33 = vmul.f32 1.442695, %v2476_v40  ;;  %v2477_v44 = vsub.f32 %v2468_v17, %v2475_v42  ;;  %v4122_v42 = vld [vmem:[%s5403_s4] ss:$20 sps:$4 sm:$0xff]  }
0x108a   :  { %v2501_v45 = vpop.permute.xlu1 %2500  ;;  %3103 = vrot.lane.b32.xlu0 %v4122_v42, %s4237_s20 }
0x108b   :  { %v2480_v46 = vmul.f32 1.442695, %v2477_v44  ;;  %4182 = vpow2.f32 %v2478_v33  ;;  %v4124_v33 = vld [vmem:[%s5403_s4 + $0x4] ss:$20 sps:$4 sm:$0xff]   ;;  %v4125_v44 = vld [vmem:[%s5403_s4 + $0x28] ss:$20 sps:$4 sm:$0xff]  }
0x108c   :  { %v2499_v48 = vpop.permute.xlu0 %2498  ;;  %3105 = vrot.lane.b32.xlu1 %v4124_v33, %s4237_s20 }
0x108d   :  { %4184 = vpow2.f32 %v2480_v46  ;;  %3835 = vmatpush3.bf16.msra.mxu0 %v2499_v48  ;;  %v4128_v46 = vld [vmem:[%s5403_s4 + $0x50] ss:$20 sps:$4 sm:$0xff]   ;;  %v4130_v48 = vld [vmem:[%s5403_s4 + $0x54] ss:$20 sps:$4 sm:$0xff]  }
0x108e   :  { %v2503_v20 = vpop.permute.xlu1 %2502  ;;  %3836 = vmatprep.subr.bf16.mxu0 %v4228_v18  ;;  %3107 = vrot.lane.b32.xlu0 %v4125_v44, %s4237_s20 }
0x1090   :  { %v2580_v3 = vpop.permute.xlu0 %2579 }
0x1091   :  { %3837 = vmatpush3.bf16.msra.mxu0 %v2501_v45  ;;  %v4127_v45 = vld [vmem:[%s5403_s4 + $0x2c] ss:$20 sps:$4 sm:$0xff]  }
0x1092   :  { %v2582_v1 = vpop.permute.xlu1 %2581  ;;  %3838 = vmatprep.subr.bf16.mxu0 %v4228_v18  ;;  %3109 = vrot.lane.b32.xlu1 %v4127_v45, %s4237_s20 }
0x1093   :  { %v2592_v6 = vsel %vm2591_vm6, %v2580_v3, %v2582_v1  ;;  %v2602_v7 = vmul.bf16 %v2582_v1, %v5061_v19  ;;  %3111 = vrot.lane.b32.xlu0 %v4128_v46, %s4237_s20  ;;  %v4133_v3 = vld [vmem:[%s5403_s4 + $0x7c] ss:$20 sps:$4 sm:$0xff]   ;;  %v4134_v1 = vld [vmem:[%s5403_s4 + $0xa0] ss:$20 sps:$4 sm:$0xff]  }
0x1094   :  { %v2601_v5 = vmul.bf16 %v2592_v6, %v5059_v47  ;;  %v2584_v8 = vpop.permute.xlu0 %2583  ;;  %v4136_v6 = vld [vmem:[%s5403_s4 + $0xa4] ss:$20 sps:$4 sm:$0xff]  }
0x1095   :  { %2607 = vmatprep.subr.bf16.mxu1 %v2602_v7  ;;  %3839 = vmatpush3.bf16.msra.mxu0 %v2503_v20  ;;  %v4183_v9 = vpop.eup %4182  ;;  %v4131_v20 = vld [vmem:[%s5403_s4 + $0x78] ss:$20 sps:$4 sm:$0xff]   ;;  %v4137_v7 = vld [vmem:[%s5403_s4 + $0xc8] ss:$20 sps:$4 sm:$0xff]  }
0x1096   :  { %2608 = vmatpush1.bf16.msra.mxu1 %v2601_v5  ;;  %v2586_v10 = vpop.permute.xlu1 %2585  ;;  %3113 = vrot.lane.b32.xlu1 %v4130_v48, %s4237_s20  ;;  %v4139_v5 = vld [vmem:[%s5403_s4 + $0xcc] ss:$20 sps:$4 sm:$0xff]  }
0x1097   :  { %v4185_v11 = vpop.eup %4184  ;;  %v2593_v13 = vsel %vm2591_vm6, %v2584_v8, %v2586_v10  ;;  %v2604_v14 = vmul.bf16 %v2586_v10, %v5061_v19  ;;  %3115 = vrot.lane.b32.xlu0 %v4131_v20, %s4237_s20  ;;  %v4140_v8 = vld [vmem:[%s5403_s4 + $0xf0] ss:$20 sps:$4 sm:$0xff]   ;;  %v4143_v10 = vld [vmem:[%s5403_s4 + $0x118] ss:$20 sps:$4 sm:$0xff]  }
0x1098   :  { %v2603_v0 = vmul.bf16 %v2593_v13, %v5059_v47  ;;  %v2588_v49 = vpop.permute.xlu0 %2587  ;;  %v2482_v50 = vpack.c.bf16 %v4185_v11, %v4183_v9  ;;  %v4142_v9 = vld [vmem:[%s5403_s4 + $0xf4] ss:$20 sps:$4 sm:$0xff]   ;;  %v4145_v11 = vld [vmem:[%s5403_s4 + $0x11c] ss:$20 sps:$4 sm:$0xff]  }
0x1099   :  { %2609 = vmatprep.subr.bf16.mxu1 %v2604_v14  ;;  %v4146_v13 = vld [vmem:[%s5403_s4 + $0x140] ss:$20 sps:$4 sm:$0xff]   ;;  %v4148_v14 = vld [vmem:[%s5403_s4 + $0x144] ss:$20 sps:$4 sm:$0xff]  }
0x109a   :  { %3841 = vmatmul.mubr.msk.bf16.vlgmr.msra.gmra.mrb[40].mxu0 %vm2469_vm5, %v2482_v50  ;;  %2610 = vmatpush1.bf16.msra.mxu1 %v2603_v0  ;;  %v2590_v51 = vpop.permute.xlu1 %2589  ;;  %v4149_v0 = vld [vmem:[%s5403_s4 + $0x168] ss:$20 sps:$4 sm:$0xff]  }
0x109b   :  { %v2594_v52 = vsel %vm2591_vm6, %v2588_v49, %v2590_v51  ;;  %v2606_v53 = vmul.bf16 %v2590_v51, %v5061_v19  ;;  %2738 = vmatprep.mubr.f32.mxu0 %v4228_v18  ;;  %3117 = vrot.lane.b32.xlu1 %v4133_v3, %s4237_s20  ;;  %v4151_v49 = vld [vmem:[%s5403_s4 + $0x16c] ss:$20 sps:$4 sm:$0xff]   ;;  %v4154_v51 = vld [vmem:[%s5403_s4 + $0x194] ss:$20 sps:$4 sm:$0xff]  }
0x109c   :  { %v2605_v54 = vmul.bf16 %v2594_v52, %v5059_v47  ;;  %v3965_v56 = vpop.permute.xlu0 %3964  ;;  %3119 = vrot.lane.b32.xlu0 %v4134_v1, %s4237_s20  ;;  %v4155_v52 = vld [vmem:[%s5403_s4 + $0x1b8] ss:$20 sps:$4 sm:$0xff]  }
0x109d   :  { %2611 = vmatprep.subr.bf16.mxu1 %v2606_v53  ;;  %v3967_v57 = vunpack.i.h.bf16 %v3965_v56  ;;  %v3966_v59 = vunpack.i.l.bf16 %v3965_v56  ;;  %v4157_v53 = vld [vmem:[%s5403_s4 + $0x1bc] ss:$20 sps:$4 sm:$0xff]  }
0x109e   :  { %2612 = vmatpush1.bf16.msra.mxu1 %v2605_v54  ;;  %v2654_v41 = vpop.permute.xlu1 %2653 }
0x109f   :  { %v2660_v61 = vsel %vm2659_vm7, %v2654_v41, %v3966_v59  ;;  %v2661_v12 = vsel %vm2659_vm7, %v3966_v59, %v3967_v57  ;;  %3121 = vrot.lane.b32.xlu1 %v4136_v6, %s4237_s20 }
0x10a0   :  { %3701 = vmatprep.subr.msk.mxu0 %vm2669_vm8, %v2661_v12  ;;  %3123 = vrot.lane.b32.xlu0 %v4137_v7, %s4237_s20 }
0x10a1   :  { %3700 = vmatmul.mubr.msk.bf16.vlgmr.msra.gmra.mrb[32].mxu1 %vm2469_vm5, %v2482_v50  ;;  %3702 = vmatpush1.msk.msra.mxu0 %vm2669_vm8, %v2660_v61  ;;  %v4152_v50 = vld [vmem:[%s5403_s4 + $0x190] ss:$20 sps:$4 sm:$0xff]  }
0x10a2   :  { %2921 = vmatprep.mubr.f32.mxu1 %v4228_v18 }
0x10a3   :  { %3125 = vrot.lane.b32.xlu1 %v4139_v5, %s4237_s20 }
0x10a4   :  { %3127 = vrot.lane.b32.xlu0 %v4140_v8, %s4237_s20 }
0x10a7   :  { %3129 = vrot.lane.b32.xlu1 %v4142_v9, %s4237_s20 }
0x10a8   :  { %3131 = vrot.lane.b32.xlu0 %v4143_v10, %s4237_s20 }
0x10ab   :  { %3133 = vrot.lane.b32.xlu1 %v4145_v11, %s4237_s20 }
0x10ac   :  { %3135 = vrot.lane.b32.xlu0 %v4146_v13, %s4237_s20 }
0x10af   :  { %3137 = vrot.lane.b32.xlu1 %v4148_v14, %s4237_s20 }
0x10b0   :  { %3139 = vrot.lane.b32.xlu0 %v4149_v0, %s4237_s20 }
0x10b3   :  { %3141 = vrot.lane.b32.xlu1 %v4151_v49, %s4237_s20 }
0x10b4   :  { %3143 = vrot.lane.b32.xlu0 %v4152_v50, %s4237_s20  ;;  %v3707_v50 = vld [vmem:[%s5400_s1 + $0x16] ss:$8 sm:$0x3] }
0x10b7   :  { %3145 = vrot.lane.b32.xlu1 %v4154_v51, %s4237_s20 }
0x10b8   :  { %3147 = vrot.lane.b32.xlu0 %v4155_v52, %s4237_s20 }
0x10bb   :  { %3149 = vrot.lane.b32.xlu1 %v4157_v53, %s4237_s20 }
0x10fc   :  { %v3104_v59 = vpop.permute.xlu0 %3103 }
0x10fe   :  { %v3106_v61 = vpop.permute.xlu1 %3105 }
0x116d   :  { %v2544_v19 = vpop.f32.mrb[40].mxu0 }
0x116e   :  { %4186 = vrcp.f32 %v2544_v19  ;;  %v3842_v16 = vpop.f32.mrb[41].mxu0 }
0x116f   :  { %v2547_v47 = vpop.f32.mrb[42].mxu0  ;;  %v3152_v16 = vsel %vm2119_vm15, %v3104_v59, %v3106_v61 }
0x1170   :  { %v3843_v63 = vpop.f32.mrb[43].mxu0  ;;  %4188 = vrcp.f32 %v2547_v47 }
0x1174   :  { %v2641_v4 = vpop.f32.mrb[32].mxu1 }
0x1175   :  { %v2643_v21 = vpop.f32.mrb[33].mxu1 }
0x1176   :  { %v2645_v15 = vpop.f32.mrb[34].mxu1 }
0x1177   :  { %v2647_v17 = vpop.f32.mrb[35].mxu1 }
0x1178   :  { %v4187_v43 = vpop.eup %4186 }
0x1179   :  { %3703 = vmatmul.mubr.msk.f32.vlgmr.msra.gmra.mrb[26].mxu0 %vm2662_vm9, %v4187_v43  ;;  %v3108_v43 = vpop.permute.xlu0 %3107 }
0x117a   :  { %2744 = vmatprep.mubr.f32.mxu0 %v4228_v18  ;;  %v4189_v22 = vpop.eup %4188 }
0x117d   :  { %3704 = vmatmul.mubr.msk.f32.gmra.mrb[44].mxu0 %vm2662_vm9, %v4189_v22  ;;  %v3110_v22 = vpop.permute.xlu1 %3109 }
0x117e   :  { %2834 = vmatprep.mubr.f32.mxu0 %v4228_v18 }
0x124c   :  { %v2740_v23 = vpop.f32.mrb[26].mxu0 }
0x124d   :  { %v2751_v25 = vmul.f32 %v2740_v23, %v2641_v4  ;;  %v2742_v26 = vpop.f32.mrb[27].mxu0  ;;  %v3153_v23 = vsel %vm2119_vm15, %v3108_v43, %v3110_v22 }
0x124e   :  { %v2752_v27 = vmul.f32 %v2742_v26, %v2643_v21  ;;  %v3112_v26 = vpop.permute.xlu0 %3111 }
0x124f   :  { %v2766_v38 = vadd.f32 %v2759_v62, %v2751_v25 }
0x1250   :  { %v2746_v55 = vpop.f32.mrb[44].mxu0  ;;  %v5164_v36 = vadd.f32 %v2763_v58, %v2752_v27  ;;  %v3114_v27 = vpop.permute.xlu1 %3113 }
0x1251   :  { %v2753_v60 = vmul.f32 %v2746_v55, %v2645_v15  ;;  %v2748_v29 = vpop.f32.mrb[45].mxu0 }
0x1252   :  { %v2754_v30 = vmul.f32 %v2748_v29, %v2647_v17  ;;  %v3116_v55 = vpop.permute.xlu0 %3115 }
0x1253   :  { %v5162_v34 = vadd.f32 %v2759_v62, %v2753_v60 }
0x1254   :  { %v5166_v37 = vadd.f32 %v2763_v58, %v2754_v30  ;;  %v3154_v58 = vsel %vm2119_vm15, %v3112_v26, %v3114_v27  ;;  %v3118_v62 = vpop.permute.xlu1 %3117 }
0x1255   :  { %v3912_v40 = vpack.c.bf16 %v5162_v34, %v2766_v38  ;;  %v3155_v60 = vsel %vm2119_vm15, %v3116_v55, %v3118_v62 }
0x1256   :  { %v3910_v39 = vpack.c.bf16 %v5166_v37, %v5164_v36  ;;  %v3120_v29 = vpop.permute.xlu0 %3119 }
0x1258   :  { %3911 = vmatprep.subr.bf16.mxu0 %v3910_v39  ;;  %v3122_v30 = vpop.permute.xlu1 %3121 }
0x1259   :  { %3913 = vmatpush1.bf16.msra.mxu0 %v3912_v40 }
0x125a   :  { %3179 = vmatprep.subr.bf16.mxu0 %v4225_v2 }
0x125c   :  { %3705 = vmatmul.mubr.msk.f32.vlgmr.msra.gmra.mrb[46].mxu0 %vm152_vm0, %v4917_v32 }
0x125d   :  { %3180 = vmatpush1.bf16.msra.mxu0 %v3152_v16 }
0x125e   :  { %3181 = vmatprep.subr.bf16.mxu0 %v4225_v2 }
0x1261   :  { %3182 = vmatpush1.bf16.msra.mxu0 %v3153_v23 }
0x1262   :  { %3183 = vmatprep.subr.bf16.mxu0 %v4225_v2 }
0x1265   :  { %3184 = vmatpush1.bf16.msra.mxu0 %v3154_v58 }
0x1266   :  { %3185 = vmatprep.subr.bf16.mxu0 %v4225_v2 }
0x1269   :  { %3186 = vmatpush1.bf16.msra.mxu0 %v3155_v60 }
0x126a   :  { %3187 = vmatprep.subr.bf16.mxu0 %v4225_v2 }
0x132f   :  { %v2836_v54 = vpop.f32.mrb[46].mxu0 }
0x1330   :  { %v2844_v56 = vrot.slane %v2836_v54, %v4615_v35  ;;  %v2838_v41 = vpop.f32.mrb[47].mxu0  ;;  %v2948_v54 = vrot.slane %v3707_v50, %v4615_v35 }
0x1331   :  { %v2848_v57 = vrot.slane %v2838_v41, %v4615_v35  ;;  %v2952_v41 = vrot.slane %v3707_v50, %v4811_v28 }
0x1332   :  { %v5272_v12 = vsub.f32 %v2766_v38, %v2844_v56  ;;  %v5275_v19 = vsub.f32 %v5162_v34, %v2844_v56  ;;  %v3156_v34 = vsel %vm2119_vm15, %v3120_v29, %v3122_v30 }
0x1333   :  { %v5279_v47 = vsub.f32 %v5164_v36, %v2848_v57  ;;  %v5282_v63 = vsub.f32 %v5166_v37, %v2848_v57  ;;  %3188 = vmatpush1.bf16.msra.mxu0 %v3156_v34  ;;  %v3124_v36 = vpop.permute.xlu0 %3123  ;;  %v3126_v37 = vpop.permute.xlu1 %3125 }
0x1334   :  { %v2853_v4 = vmul.f32 %v5272_v12, %v5272_v12  ;;  %v2855_v21 = vmul.f32 %v5275_v19, %v5275_v19  ;;  %3189 = vmatprep.subr.bf16.mxu0 %v4225_v2  ;;  %v3157_v38 = vsel %vm2119_vm15, %v3124_v36, %v3126_v37 }
0x1335   :  { %v2854_v15 = vmul.f32 %v5279_v47, %v5279_v47  ;;  %v2856_v17 = vmul.f32 %v5282_v63, %v5282_v63 }
0x1336   :  { %v3916_v25 = vpack.c.bf16 %v2855_v21, %v2853_v4 }
0x1337   :  { %v3914_v24 = vpack.c.bf16 %v2856_v17, %v2854_v15  ;;  %3190 = vmatpush1.bf16.msra.mxu0 %v3157_v38  ;;  %v3128_v39 = vpop.permute.xlu0 %3127  ;;  %v3130_v40 = vpop.permute.xlu1 %3129 }
0x1338   :  { %3191 = vmatprep.subr.bf16.mxu0 %v4225_v2  ;;  %v3158_v42 = vsel %vm2119_vm15, %v3128_v39, %v3130_v40 }
0x1339   :  { %3915 = vmatprep.subr.bf16.mxu1 %v3914_v24 }
0x133a   :  { %3917 = vmatpush1.bf16.msra.mxu1 %v3916_v25 }
0x133b   :  { %3918 = vmatprep.subr.bf16.mxu1 %v4234_v31  ;;  %3192 = vmatpush1.bf16.msra.mxu0 %v3158_v42  ;;  %v3132_v33 = vpop.permute.xlu0 %3131  ;;  %v3134_v44 = vpop.permute.xlu1 %3133 }
0x133c   :  { %3193 = vmatprep.subr.bf16.mxu0 %v4225_v2  ;;  %v3159_v45 = vsel %vm2119_vm15, %v3132_v33, %v3134_v44 }
0x133d   :  { %3706 = vmatmul.mubr.msk.f32.vlgmr.msra.gmra.mrb[26].mxu1 %vm152_vm0, %v4917_v32 }
0x133e   :  { %3848 = vmatprep.mubr.msk.f32.mxu1 %vm4235_vm14, %v4228_v18 }
0x133f   :  { %3194 = vmatpush1.bf16.msra.mxu0 %v3159_v45  ;;  %v3136_v46 = vpop.permute.xlu0 %3135  ;;  %v3138_v48 = vpop.permute.xlu1 %3137 }
0x1340   :  { %3195 = vmatprep.subr.bf16.mxu0 %v4225_v2  ;;  %v3160_v20 = vsel %vm2119_vm15, %v3136_v46, %v3138_v48  ;;  %v4158_v46 = vld [vmem:[%s5403_s4 + $0x10] ss:$20 sps:$4 sm:$0xff]   ;;  %v4159_v48 = vld [vmem:[%s5403_s4 + $0x38] ss:$20 sps:$4 sm:$0xff]  }
0x1341   :  { %3488 = vrot.lane.b32.xlu0 %v4158_v46, %s4241_s26  ;;  %3490 = vrot.lane.b32.xlu1 %v4159_v48, %s4241_s26 }
0x1343   :  { %3196 = vmatpush1.bf16.msra.mxu0 %v3160_v20  ;;  %v3140_v3 = vpop.permute.xlu0 %3139  ;;  %v3142_v1 = vpop.permute.xlu1 %3141 }
0x1344   :  { %3197 = vmatprep.subr.bf16.mxu0 %v4225_v2  ;;  %v3161_v6 = vsel %vm2119_vm15, %v3140_v3, %v3142_v1 }
0x1347   :  { %3198 = vmatpush1.bf16.msra.mxu0 %v3161_v6  ;;  %v3144_v7 = vpop.permute.xlu0 %3143  ;;  %v3146_v5 = vpop.permute.xlu1 %3145 }
0x1348   :  { %3199 = vmatprep.subr.bf16.mxu0 %v4225_v2  ;;  %v3162_v8 = vsel %vm2119_vm15, %v3144_v7, %v3146_v5  ;;  %v3375_v5 = vld [vmem:[%s5400_s1 + $0x21] ss:$0 sm:$0xff] }
0x134b   :  { %3200 = vmatpush1.bf16.msra.mxu0 %v3162_v8  ;;  %v3148_v9 = vpop.permute.xlu0 %3147  ;;  %v3150_v10 = vpop.permute.xlu1 %3149 }
0x134c   :  { %3201 = vmatprep.subr.bf16.mxu0 %v4225_v2  ;;  %v3163_v11 = vsel %vm2119_vm15, %v3148_v9, %v3150_v10  ;;  %v3708_v2 = vld [vmem:[%s5400_s1 + $0x17] ss:$8 sm:$0x3]  ;;  %v3378_v10 = vld [vmem:[%s5400_s1 + $0x22] ss:$0 sm:$0xff] }
0x134d   :  { %v2965_v61 = vrot.slane %v3708_v2, %v4615_v35  ;;  %v2969_v21 = vrot.slane %v3708_v2, %v4811_v28  ;;  %v3006_v28 = vld [vmem:[%s5400_s1 + $0x20] ss:$0 sm:$0xff] }
0x134f   :  { %3202 = vmatpush1.bf16.msra.mxu0 %v3163_v11 }
0x1410   :  { %v2923_v13 = vpop.f32.mrb[26].mxu1 }
0x1411   :  { %v2924_v14 = vadd.f32 1e-05, %v2923_v13  ;;  %v2925_v0 = vpop.f32.mrb[27].mxu1 }
0x1412   :  { %v2926_v49 = vadd.f32 1e-05, %v2925_v0 }
0x1413   :  { %4190 = vrsqrt.f32 %v2924_v14 }
0x1414   :  { %4192 = vrsqrt.f32 %v2926_v49 }
0x141d   :  { %v4191_v51 = vpop.eup %4190 }
0x141e   :  { %v4193_v52 = vpop.eup %4192  ;;  %v2933_v53 = vrot.slane %v4191_v51, %v4615_v35 }
0x141f   :  { %v2937_v56 = vrot.slane %v4193_v52, %v4615_v35  ;;  %v3489_v52 = vpop.permute.xlu0 %3488 }
0x1420   :  { %v2938_v57 = vmul.f32 %v2933_v53, %v5272_v12  ;;  %v2940_v59 = vmul.f32 %v2933_v53, %v5275_v19  ;;  %v3491_v53 = vpop.permute.xlu1 %3490 }
0x1421   :  { %v2939_v16 = vmul.f32 %v2937_v56, %v5279_v47  ;;  %v2941_v4 = vmul.f32 %v2937_v56, %v5282_v63 }
0x1422   :  { %v2955_v15 = vmul.f32 %v2948_v54, %v2938_v57  ;;  %v2957_v17 = vmul.f32 %v2948_v54, %v2940_v59 }
0x1423   :  { %v2956_v43 = vmul.f32 %v2952_v41, %v2939_v16  ;;  %v2958_v22 = vmul.f32 %v2952_v41, %v2941_v4 }
0x1424   :  { %v2972_v23 = vadd.f32 %v2965_v61, %v2955_v15  ;;  %v2974_v24 = vadd.f32 %v2965_v61, %v2957_v17  ;;  %v3467_v61 = vld [vmem:[%s5400_s1 + $0x23] ss:$0 sm:$0xff] }
0x1425   :  { %v2973_v25 = vadd.f32 %v2969_v21, %v2956_v43  ;;  %v2975_v26 = vadd.f32 %v2969_v21, %v2958_v22 }
0x1426   :  { %v2976_v27 = vmax.f32 %v2972_v23, 0.0  ;;  %v2978_v12 = vmax.f32 %v2974_v24, 0.0 }
0x1427   :  { %v2977_v58 = vmax.f32 %v2973_v25, 0.0  ;;  %v2979_v19 = vmax.f32 %v2975_v26, 0.0 }
0x1428   :  { %v2980_v62 = vpack.c.bf16 %v2978_v12, %v2976_v27 }
0x1429   :  { %v2981_v55 = vpack.c.bf16 %v2979_v19, %v2977_v58 }
0x142b   :  { %3733 = vmatprep.mubr.msk.bf16.mxu0 %vm345_vm1, %v2981_v55 }
0x142c   :  { %3212 = vmatmul.mubr.bf16.vlgmr.msra.gmra.mrb[48].mxu0 %v2980_v62 }
0x14ff   :  { %v3213_v47 = vpop.f32.mrb[48].mxu0 }
0x1500   :  { %v3215_v63 = vpop.f32.mrb[49].mxu0  ;;  %v3214_v29 = vadd.f32 %v3213_v47, %v3006_v28 }
0x1501   :  { %v3216_v60 = vpop.f32.mrb[50].mxu0 }
0x1502   :  { %v3217_v30 = vadd.f32 %v3216_v60, %v3006_v28  ;;  %v3218_v34 = vpop.f32.mrb[51].mxu0 }
0x1504   :  { %v3919_v36 = vpack.c.bf16 %v3217_v30, %v3214_v29 }
0x1506   :  { %3920 = vmatpush3.bf16.msra.mxu1 %v3919_v36 }
0x1507   :  { %3921 = vmatprep.subr.bf16.mxu1 %v4234_v31 }
0x1509   :  { %3849 = vmatmul.mubr.msk.f32.vlgmr.msra.gmra.mrb[36].mxu1 %vm152_vm0, %v4917_v32 }
0x150a   :  { %3855 = vmatprep.mubr.msk.f32.mxu1 %vm4235_vm14, %v4228_v18 }
0x15dc   :  { %v3286_v37 = vpop.f32.mrb[36].mxu1 }
0x15dd   :  { %v3293_v38 = vrot.slane %v3286_v37, %v4615_v35  ;;  %v3850_v39 = vpop.f32.mrb[37].mxu1 }
0x15df   :  { %v3294_v40 = vsub.f32 %v3214_v29, %v3293_v38  ;;  %v3295_v42 = vsub.f32 %v3217_v30, %v3293_v38 }
0x15e1   :  { %v3296_v33 = vmul.f32 %v3294_v40, %v3294_v40  ;;  %v3297_v44 = vmul.f32 %v3295_v42, %v3295_v42 }
0x15e3   :  { %v3922_v45 = vpack.c.bf16 %v3297_v44, %v3296_v33 }
0x15e5   :  { %3923 = vmatpush3.bf16.msra.mxu1 %v3922_v45 }
0x15e6   :  { %3924 = vmatprep.subr.bf16.mxu1 %v4234_v31  ;;  %v4160_v31 = vld [vmem:[%s5403_s4 + $0x60] ss:$20 sps:$4 sm:$0xff]  }
0x15e7   :  { %3492 = vrot.lane.b32.xlu0 %v4160_v31, %s4241_s26 }
0x15e8   :  { %3856 = vmatmul.mubr.msk.f32.vlgmr.msra.gmra.mrb[38].mxu1 %vm152_vm0, %v4917_v32  ;;  %v4161_v32 = vld [vmem:[%s5403_s4 + $0x88] ss:$20 sps:$4 sm:$0xff]  }
0x15e9   :  { %3862 = vmatprep.mubr.msk.f32.mxu1 %vm4235_vm14, %v4228_v18  ;;  %3494 = vrot.lane.b32.xlu1 %v4161_v32, %s4241_s26 }
0x1659   :  { %v3493_v54 = vpop.permute.xlu0 %3492 }
0x165b   :  { %v3495_v56 = vpop.permute.xlu1 %3494 }
0x16bb   :  { %v3364_v20 = vpop.f32.mrb[38].mxu1 }
0x16bc   :  { %v3365_v3 = vadd.f32 1e-05, %v3364_v20  ;;  %v3857_v1 = vpop.f32.mrb[39].mxu1 }
0x16be   :  { %4194 = vrsqrt.f32 %v3365_v3 }
0x16c8   :  { %v4195_v6 = vpop.eup %4194 }
0x16c9   :  { %v3372_v7 = vrot.slane %v4195_v6, %v4615_v35  ;;  %v3383_v35 = vld [vmem:[%s5400_s1] sm:$0x6] }
0x16ca   :  { %v3385_v2 = vrot.slane %v3383_v35, 1 }
0x16cb   :  { %v3373_v8 = vmul.f32 %v3372_v7, %v3294_v40  ;;  %v3374_v9 = vmul.f32 %v3372_v7, %v3295_v42 }
0x16cd   :  { %v3376_v11 = vmul.f32 %v3375_v5, %v3373_v8  ;;  %v3377_v13 = vmul.f32 %v3375_v5, %v3374_v9 }
0x16cf   :  { %v3379_v14 = vadd.f32 %v3378_v10, %v3376_v11  ;;  %v3380_v0 = vadd.f32 %v3378_v10, %v3377_v13 }
0x16d1   :  { %v3381_v49 = vmax.f32 %v3379_v14, 0.0  ;;  %v3382_v50 = vmax.f32 %v3380_v0, 0.0 }
0x16d3   :  { %v3925_v51 = vpack.c.bf16 %v3382_v50, %v3381_v49 }
0x16d5   :  { %3926 = vmatpush3.bf16.msra.mxu1 %v3925_v51 }
0x16d6   :  { %3865 = vmatprep.subr.bf16.mxu1 %v4228_v18 }
0x16d8   :  { %3863 = vmatmul.mubr.msk.f32.vlgmr.msra.gmra.mrb[40].mxu1 %vm152_vm0, %v3385_v2  ;;  %vm3543_vm0 = vcmask 74752  }
0x16d9   :  { %3866 = vmatpush3.bf16.msra.mxu1 %v3489_v52  ;;  %3873 = vmatprep.mubr.msk.bf16.mxu1 %vm4235_vm14, %v4228_v18 }
0x16da   :  { %3867 = vmatprep.subr.bf16.mxu1 %v4228_v18 }
0x16dd   :  { %3868 = vmatpush3.bf16.msra.mxu1 %v3491_v53 }
0x16de   :  { %3869 = vmatprep.subr.bf16.mxu1 %v4228_v18 }
0x16e1   :  { %3870 = vmatpush3.bf16.msra.mxu1 %v3493_v54 }
0x16e2   :  { %3871 = vmatprep.subr.bf16.mxu1 %v4228_v18 }
0x16e5   :  { %3872 = vmatpush3.bf16.msra.mxu1 %v3495_v56 }
0x17ab   :  { %v3454_v41 = vpop.f32.mrb[40].mxu1 }
0x17ac   :  { %v3458_v57 = vpack.c.bf16 %v3454_v41, %v3454_v41  ;;  %v3864_v59 = vpop.f32.mrb[41].mxu1 }
0x17ae   :  { %3874 = vmatmul.mubr.msk.bf16.vlgmr.msra.gmra.mrb[44].mxu1 %vm345_vm1, %v3458_v57 }
0x1881   :  { %v3537_v16 = vpop.f32.mrb[44].mxu1 }
0x1882   :  { %v3538_v4 = vadd.f32 %v3537_v16, %v3467_v61  ;;  %v3875_v21 = vpop.f32.mrb[45].mxu1 }
0x1883   :  { %v3540_v15 = vpop.f32.mrb[46].mxu1 }
0x1884   :  { %v3876_v17 = vpop.f32.mrb[47].mxu1  ;;  %3544 = vst.msk [vmem:[#allocation2] sm:$0x3] %vm3543_vm0, %v3538_v4 }
0x1885   :  { %4212 = shalt.err (!%p4209_p4)
}
0x1886   :  { %s4213_s1 = scalar_lea.hbm %s5404_s5, 32 }
0x1887   :  { %p4214_p5 = scmp.ne.s32.totalorder %s5404_s5, %s4213_s1  ;;  %p4217_p6 = scmp.lt.u32.totalorder %s4213_s1, %s5404_s5 }
0x1889   :  { %p4219_p7 = pnand %p4217_p6, %p4214_p5 }
0x188b   :  { %4222 = shalt.err (!%p4219_p7)
}
0x188c   :  { %3554 = dma.vmem_to_hbm [thread:$0]  %s3552_s7, 32, %s5404_s5, [#allocation3]  }
0x188d   :  { %4223 = dma.done.wait [#allocation3], 32  }
0x188e   :  { %4224 = vsyncadd [#allocation3], 4294967264 }
0x188f   :  { %3558 = vsyncpa [#allocation3], 1 }

</bundles_post_ra>
